<compile_context>
chip_gen: v7x
topology: tpu7x:2x2x1
jax: 0.10.0
libtpu: 0.0.40
codegen_flags: <defaults>
</compile_context>

<pallas_src>
import functools

import jax
import jax.numpy as jnp
from jax.experimental import pallas as pl
from jax.experimental.pallas import tpu as pltpu


def _gelu(x):
    # TODO(synk): PyTorch nn.GELU() defaults to the exact erf form; the tanh
    # approximation is used since erf is not guaranteed to lower in Mosaic.
    return jax.nn.gelu(x, approximate=True)


def hybrid_block_kernel(
    x_ref, gamma_ref, beta_ref,
    wc1_ref, b1_ref, wc2_ref, b2_ref,
    wqkv_ref, bqkv_ref, wo_ref, bo_ref, fusion_ref,
    out_ref,
    *, n_heads, seq_len,
):
    M, D = x_ref.shape                                     # M = block_b * seq_len rows
    S = seq_len
    H = n_heads
    hd = D // H
    Bb = M // S

    # ---------------- LayerNorm (eps = 1e-5, PyTorch default), f32 ----------------
    x = x_ref[...].astype(jnp.float32)                     # (M, D)
    mean = jnp.mean(x, axis=-1, keepdims=True)
    var = jnp.mean(jnp.square(x - mean), axis=-1, keepdims=True)
    xn = (x - mean) * jax.lax.rsqrt(var + 1e-5)
    xn = xn * gamma_ref[...] + beta_ref[...]               # (M, D) f32
    xn_bf = xn.astype(jnp.bfloat16)
    # `x` is not referenced again: the residual is re-read from VMEM at the end,
    # so the (M, D) f32 copy of x does not stay live across the whole kernel.

    # Row position within its own batch element + conv boundary masks, hoisted
    # and materialized ONCE for both convs (shifts used: +/-1 for k=3, +/-1, +/-2 for k=5).
    pos = jax.lax.broadcasted_iota(jnp.int32, (M, 1), 0) % S
    masks = {}
    for s in (1, 2, -1, -2):
        cond = (pos >= s) if s > 0 else (pos < S + s)
        masks[s] = jnp.broadcast_to(
            jnp.where(cond, 1.0, 0.0).astype(jnp.float32), (M, D))

    # ---- Conv1d("same") = one wide bf16 matmul + XLU rolls (mask-mul == zero pad) ----
    def conv1d_same(inp_bf, wcat_ref, bias_ref, k):
        pad = (k - 1) // 2
        y = jnp.dot(inp_bf, wcat_ref[...],
                    preferred_element_type=jnp.float32)    # (M, k*D) f32
        acc = jnp.zeros((M, D), jnp.float32)
        for t in range(k):                                 # static unroll over taps
            tap = y[:, t * D:(t + 1) * D]
            s = pad - t
            if s == 0:
                acc = acc + tap
            else:
                acc = acc + pltpu.roll(tap, shift=s % M, axis=0) * masks[s]
        return acc + bias_ref[...]
        # NOTE: at large D, switch to per-tap (M, D) dot+accumulate to cap the
        # (M, k*D) f32 live range (same FLOPs, still MXU).

    c1 = _gelu(conv1d_same(xn_bf, wc1_ref, b1_ref, 3))
    x_conv = _gelu(conv1d_same(c1.astype(jnp.bfloat16), wc2_ref, b2_ref, 5))   # (M, D) f32

    # -------- Self-attention: fused QKV projection (scale pre-folded into Wq/bq) --------
    qkv = jnp.dot(xn_bf, wqkv_ref[...],
                  preferred_element_type=jnp.float32) + bqkv_ref[...]          # (M, 3D) f32
    qkv3 = qkv.astype(jnp.bfloat16).reshape(Bb, S, 3 * D)                      # split rows only

    # Heads batched over the batch dim with 3-D einsums (no per-(batch, head)
    # loop, no hd-wide masked stores); contexts assembled into one lane-dense
    # (M, D) value kept in registers and fed straight into the out-projection.
    ctx_parts = []
    for h in range(H):                                     # static unroll: small H
        o = h * hd
        qh = qkv3[:, :, o:o + hd]                          # (Bb, S, hd)
        kh = qkv3[:, :, D + o:D + o + hd]
        vh = qkv3[:, :, 2 * D + o:2 * D + o + hd]
        sc = jnp.einsum('bqd,bkd->bqk', qh, kh,
                        preferred_element_type=jnp.float32)                    # (Bb, S, S)
        mmax = jnp.max(sc, axis=-1, keepdims=True)
        e = jnp.exp(sc - mmax)
        p = e / jnp.sum(e, axis=-1, keepdims=True)         # exact softmax (torch parity)
        ctx_parts.append(jnp.einsum('bqk,bkd->bqd', p.astype(jnp.bfloat16), vh,
                                    preferred_element_type=jnp.float32))       # (Bb, S, hd)
    ctx = jnp.concatenate(ctx_parts, axis=-1).reshape(M, D).astype(jnp.bfloat16)
    x_attn = jnp.dot(ctx, wo_ref[...],
                     preferred_element_type=jnp.float32) + bo_ref[...]         # (M, D) f32

    # -------- Fusion + residual (dropout = identity at inference) --------
    w = fusion_ref[0]
    resid = x_ref[...].astype(jnp.float32)                 # re-read: short live range
    out_ref[...] = (resid + w * x_conv + (1.0 - w) * x_attn).astype(out_ref.dtype)


def _tpu_vmem_capacity_bytes():
    try:
        info = pltpu.get_tpu_info()
        return int(getattr(info, "vmem_capacity_bytes", 64 << 20))
    except Exception:
        return 64 << 20          # conservative default: v7x per-TC VMEM


def _num_tensorcores():
    try:
        kind = jax.devices()[0].device_kind.lower()
    except Exception:
        return 1
    # v7x has 2 TensorCores per chip; v5e/v6e have 1 (grid is a serial loop there).
    return 2 if "v7" in kind else 1


def _pick_block_b(B, S, D, vmem_budget, min_grid_steps):
    """Largest batch-per-block whose working set fits the VMEM budget while
    keeping at least `min_grid_steps` grid steps (>=2 only on 2-TC chips)."""
    per_bb = 40 * S * D * 4      # ~40 (S, D)-f32-equivalents of live intermediates
    best = 1
    for bb in range(1, B + 1):
        if B % bb == 0 and B // bb >= min_grid_steps and bb * per_bb <= vmem_budget:
            best = bb
    return best


def hybrid_block(x, params, n_heads, *, block_b=None):
    B, S, D = x.shape
    (gamma, beta, wc1, b1, wc2, b2, wqkv, bqkv, wo, bo, fusion) = params

    vmem_cap = _tpu_vmem_capacity_bytes()
    vmem_budget = (vmem_cap * 3) // 4        # leave headroom for compiler scratch
    if block_b is None:
        block_b = _pick_block_b(B, S, D, vmem_budget, _num_tensorcores())
    assert B % block_b == 0
    M = block_b * S

    # Flatten batch into rows: every matmul sees a lane/sublane-dense (M, D) block.
    # NOTE: for real (non-toy) configs make D a multiple of 128 so all operands
    # and the output store are lane-dense.
    x2 = x.reshape(B * S, D)

    # Constant-index weight/bias blocks.  (At real weight sizes these should be
    # single-buffered via pipeline_mode=pl.Buffered(1); negligible here.)
    def const_spec(a):
        nd = a.ndim
        return pl.BlockSpec(a.shape, lambda i, _nd=nd: (0,) * _nd)

    in_specs = [
        pl.BlockSpec((M, D), lambda i: (i, 0)),             # x rows
        const_spec(gamma), const_spec(beta),                # layernorm gamma, beta
        const_spec(wc1), const_spec(b1),                    # conv1 taps (D, 3D), bias
        const_spec(wc2), const_spec(b2),                    # conv2 taps (D, 5D), bias
        const_spec(wqkv), const_spec(bqkv),                 # fused QKV (D, 3D), bias
        const_spec(wo), const_spec(bo),                     # out proj (D, D), bias
        pl.BlockSpec(memory_space=pltpu.MemorySpace.SMEM),  # fusion scalar
    ]
    out_spec = pl.BlockSpec((M, D), lambda i: (i, 0))

    # VMEM request: pipelined x/out blocks + weights + f32 working set, capped
    # well below the physical per-core capacity (64 MiB on v7x, 128 MiB v5e/v6e).
    param_bytes = sum(int(p.size) * p.dtype.itemsize
                      for p in (gamma, beta, wc1, b1, wc2, b2, wqkv, bqkv, wo, bo))
    block_bytes = M * D * 4
    working = 40 * block_bytes + n_heads * (M // S) * S * S * 4
    vmem_limit = int(min(vmem_budget,
                         max(16 << 20, 2 * param_bytes + 4 * block_bytes + working)))

    kernel = functools.partial(hybrid_block_kernel, n_heads=n_heads, seq_len=S)
    out2 = pl.pallas_call(
        kernel,
        grid=(B // block_b,),
        in_specs=in_specs,
        out_specs=out_spec,
        out_shape=jax.ShapeDtypeStruct((B * S, D), x.dtype),
        compiler_params=pltpu.CompilerParams(
            dimension_semantics=("parallel",),
            vmem_limit_bytes=vmem_limit),
    )(x2, gamma, beta, wc1, b1, wc2, b2, wqkv, bqkv, wo, bo, fusion)
    return out2.reshape(B, S, D)


def init_params(key, d_model, n_heads):
    D = d_model
    hd = D // n_heads
    ks = jax.random.split(key, 8)
    scale = 0.1

    gamma = jnp.ones((1, D), jnp.float32)
    beta = jnp.zeros((1, D), jnp.float32)

    # Conv1d weights in PyTorch layout (out_c, in_c, k): the k per-tap (in, out)
    # matrices are concatenated along the output dim so each conv is ONE matmul.
    w1_pt = scale * jax.random.normal(ks[0], (D, D, 3), jnp.float32)
    wc1 = jnp.concatenate([w1_pt[:, :, t].T for t in range(3)], axis=1).astype(jnp.bfloat16)
    b1 = scale * jax.random.normal(ks[1], (1, D), jnp.float32)
    w2_pt = scale * jax.random.normal(ks[2], (D, D, 5), jnp.float32)
    wc2 = jnp.concatenate([w2_pt[:, :, t].T for t in range(5)], axis=1).astype(jnp.bfloat16)
    b2 = scale * jax.random.normal(ks[3], (1, D), jnp.float32)

    # MultiheadAttention in_proj (3D, D) kept fused as (D, 3D) = [Wq | Wk | Wv];
    # the 1/sqrt(head_dim) attention scale is folded into the Q columns/bias.
    in_proj = scale * jax.random.normal(ks[4], (3 * D, D), jnp.float32)
    in_bias = scale * jax.random.normal(ks[5], (3 * D,), jnp.float32)
    qk_scale = float(hd) ** -0.5
    wqkv = in_proj.T.at[:, :D].multiply(qk_scale).astype(jnp.bfloat16)          # (D, 3D)
    bqkv = in_bias.reshape(1, 3 * D).at[:, :D].multiply(qk_scale)               # (1, 3D) f32

    # out_proj.weight (D, D), stored transposed so the kernel does ctx @ Wo.
    wo = (scale * jax.random.normal(ks[6], (D, D), jnp.float32)).T.astype(jnp.bfloat16)
    bo = scale * jax.random.normal(ks[7], (1, D), jnp.float32)

    fusion = jnp.full((1,), 0.7, jnp.float32)

    return (gamma, beta, wc1, b1, wc2, b2, wqkv, bqkv, wo, bo, fusion)


if __name__ == "__main__":
    B, S, D, H = 4, 16, 32, 4
    key = jax.random.PRNGKey(0)
    kx, kp = jax.random.split(key)

    x = jax.random.normal(kx, (B, S, D), jnp.float32)
    params = init_params(kp, D, H)

    out = hybrid_block(x, params, n_heads=H)
    jax.block_until_ready(out)
    assert out.shape == (B, S, D) and out.dtype == jnp.float32
    assert bool(jnp.all(jnp.isfinite(out)))
    print("KERNEL_OK")
</pallas_src>

<mosaic_0001>
module attributes {stable_mosaic.version = 11 : i64} {
  func.func @hybrid_block_kernel(%arg0: i32, %arg1: memref<64x32xf32, #tpu.memory_space<vmem>>, %arg2: memref<1x32xf32, #tpu.memory_space<vmem>>, %arg3: memref<1x32xf32, #tpu.memory_space<vmem>>, %arg4: memref<32x96xbf16, #tpu.memory_space<vmem>>, %arg5: memref<1x32xf32, #tpu.memory_space<vmem>>, %arg6: memref<32x160xbf16, #tpu.memory_space<vmem>>, %arg7: memref<1x32xf32, #tpu.memory_space<vmem>>, %arg8: memref<32x96xbf16, #tpu.memory_space<vmem>>, %arg9: memref<1x96xf32, #tpu.memory_space<vmem>>, %arg10: memref<32x32xbf16, #tpu.memory_space<vmem>>, %arg11: memref<1x32xf32, #tpu.memory_space<vmem>>, %arg12: memref<1xf32, #tpu.memory_space<smem>>, %arg13: memref<64x32xf32, #tpu.memory_space<vmem>>) attributes {dimension_semantics = [#tpu.dimension_semantics<parallel>], iteration_bounds = array<i64: 1>, scalar_prefetch = 0 : i64, scratch_operands = 0 : i64, tpu.core_type = #tpu.core_type<tc>, window_params = [{transform_indices = @transform_0, window_bounds = array<i64: 64, 32>}, {pipeline_mode = #tpu.pipeline_mode<synchronous>, transform_indices = @transform_1, window_bounds = array<i64: 1, 32>}, {pipeline_mode = #tpu.pipeline_mode<synchronous>, transform_indices = @transform_2, window_bounds = array<i64: 1, 32>}, {pipeline_mode = #tpu.pipeline_mode<synchronous>, transform_indices = @transform_3, window_bounds = array<i64: 32, 96>}, {pipeline_mode = #tpu.pipeline_mode<synchronous>, transform_indices = @transform_4, window_bounds = array<i64: 1, 32>}, {pipeline_mode = #tpu.pipeline_mode<synchronous>, transform_indices = @transform_5, window_bounds = array<i64: 32, 160>}, {pipeline_mode = #tpu.pipeline_mode<synchronous>, transform_indices = @transform_6, window_bounds = array<i64: 1, 32>}, {pipeline_mode = #tpu.pipeline_mode<synchronous>, transform_indices = @transform_7, window_bounds = array<i64: 32, 96>}, {pipeline_mode = #tpu.pipeline_mode<synchronous>, transform_indices = @transform_8, window_bounds = array<i64: 1, 96>}, {pipeline_mode = #tpu.pipeline_mode<synchronous>, transform_indices = @transform_9, window_bounds = array<i64: 32, 32>}, {pipeline_mode = #tpu.pipeline_mode<synchronous>, transform_indices = @transform_10, window_bounds = array<i64: 1, 32>}, {transform_indices = @transform_11, window_bounds = array<i64: 1>}, {transform_indices = @transform_12, window_bounds = array<i64: 64, 32>}]} {
    %c0 = arith.constant 0 : index
    %c0_0 = arith.constant 0 : index
    %0 = vector.load %arg1[%c0, %c0_0] : memref<64x32xf32, #tpu.memory_space<vmem>>, vector<64x32xf32>
    %cst = arith.constant dense<0.000000e+00> : vector<64xf32>
    %1 = vector.multi_reduction <add>, %0, %cst [1] : vector<64x32xf32> to vector<64xf32>
    %2 = vector.shape_cast %1 : vector<64xf32> to vector<64x1xf32>
    %cst_1 = arith.constant 3.200000e+01 : f32
    %3 = vector.broadcast %cst_1 : f32 to vector<64x1xf32>
    %4 = arith.divf %2, %3 : vector<64x1xf32>
    %5 = vector.broadcast %4 : vector<64x1xf32> to vector<64x32xf32>
    %6 = arith.subf %0, %5 : vector<64x32xf32>
    %7 = arith.mulf %6, %6 : vector<64x32xf32>
    %cst_2 = arith.constant dense<0.000000e+00> : vector<64xf32>
    %8 = vector.multi_reduction <add>, %7, %cst_2 [1] : vector<64x32xf32> to vector<64xf32>
    %9 = vector.shape_cast %8 : vector<64xf32> to vector<64x1xf32>
    %cst_3 = arith.constant 3.200000e+01 : f32
    %10 = vector.broadcast %cst_3 : f32 to vector<64x1xf32>
    %11 = arith.divf %9, %10 : vector<64x1xf32>
    %12 = vector.broadcast %4 : vector<64x1xf32> to vector<64x32xf32>
    %13 = arith.subf %0, %12 : vector<64x32xf32>
    %cst_4 = arith.constant 9.99999974E-6 : f32
    %14 = vector.broadcast %cst_4 : f32 to vector<64x1xf32>
    %15 = arith.addf %11, %14 : vector<64x1xf32>
    %16 = math.rsqrt %15 : vector<64x1xf32>
    %17 = vector.broadcast %16 : vector<64x1xf32> to vector<64x32xf32>
    %18 = arith.mulf %13, %17 : vector<64x32xf32>
    %c0_5 = arith.constant 0 : index
    %c0_6 = arith.constant 0 : index
    %19 = vector.load %arg2[%c0_5, %c0_6] : memref<1x32xf32, #tpu.memory_space<vmem>>, vector<1x32xf32>
    %20 = vector.broadcast %19 : vector<1x32xf32> to vector<64x32xf32>
    %21 = arith.mulf %18, %20 : vector<64x32xf32>
    %c0_7 = arith.constant 0 : index
    %c0_8 = arith.constant 0 : index
    %22 = vector.load %arg3[%c0_7, %c0_8] : memref<1x32xf32, #tpu.memory_space<vmem>>, vector<1x32xf32>
    %23 = vector.broadcast %22 : vector<1x32xf32> to vector<64x32xf32>
    %24 = arith.addf %21, %23 : vector<64x32xf32>
    %25 = arith.truncf %24 : vector<64x32xf32> to vector<64x32xbf16>
    %26 = tpu.iota {dimensions = array<i32: 0>} : vector<64x1xi32>
    %c16_i32 = arith.constant 16 : i32
    %c0_i32 = arith.constant 0 : i32
    %27 = arith.cmpi eq, %c16_i32, %c0_i32 : i32
    %c1_i32 = arith.constant 1 : i32
    %28 = arith.select %27, %c1_i32, %c16_i32 : i32
    %29 = vector.broadcast %28 : i32 to vector<64x1xi32>
    %30 = arith.remsi %26, %29 : vector<64x1xi32>
    %c0_i32_9 = arith.constant 0 : i32
    %31 = vector.broadcast %c0_i32_9 : i32 to vector<64x1xi32>
    %32 = arith.cmpi ne, %30, %31 : vector<64x1xi32>
    %c0_i32_10 = arith.constant 0 : i32
    %33 = vector.broadcast %c0_i32_10 : i32 to vector<64x1xi32>
    %34 = arith.cmpi slt, %30, %33 : vector<64x1xi32>
    %c0_i32_11 = arith.constant 0 : i32
    %35 = arith.cmpi slt, %28, %c0_i32_11 : i32
    %36 = vector.broadcast %35 : i1 to vector<64x1xi1>
    %37 = vector.broadcast %36 : vector<64x1xi1> to vector<64x1xi1>
    %38 = arith.xori %34, %37 : vector<64x1xi1>
    %39 = arith.andi %38, %32 : vector<64x1xi1>
    %40 = vector.broadcast %28 : i32 to vector<64x1xi32>
    %41 = arith.addi %30, %40 : vector<64x1xi32>
    %42 = arith.select %39, %41, %30 : vector<64x1xi1>, vector<64x1xi32>
    %c1_i32_12 = arith.constant 1 : i32
    %43 = vector.broadcast %c1_i32_12 : i32 to vector<64x1xi32>
    %44 = arith.cmpi sge, %42, %43 : vector<64x1xi32>
    %cst_13 = arith.constant 1.000000e+00 : f32
    %cst_14 = arith.constant 0.000000e+00 : f32
    %45 = vector.broadcast %cst_13 : f32 to vector<64x1xf32>
    %46 = vector.broadcast %cst_14 : f32 to vector<64x1xf32>
    %47 = arith.select %44, %45, %46 : vector<64x1xi1>, vector<64x1xf32>
    %48 = vector.shape_cast %47 : vector<64x1xf32> to vector<64x1xf32>
    %49 = vector.broadcast %48 : vector<64x1xf32> to vector<64x32xf32>
    %c2_i32 = arith.constant 2 : i32
    %50 = vector.broadcast %c2_i32 : i32 to vector<64x1xi32>
    %51 = arith.cmpi sge, %42, %50 : vector<64x1xi32>
    %cst_15 = arith.constant 1.000000e+00 : f32
    %cst_16 = arith.constant 0.000000e+00 : f32
    %52 = vector.broadcast %cst_15 : f32 to vector<64x1xf32>
    %53 = vector.broadcast %cst_16 : f32 to vector<64x1xf32>
    %54 = arith.select %51, %52, %53 : vector<64x1xi1>, vector<64x1xf32>
    %55 = vector.shape_cast %54 : vector<64x1xf32> to vector<64x1xf32>
    %56 = vector.broadcast %55 : vector<64x1xf32> to vector<64x32xf32>
    %c15_i32 = arith.constant 15 : i32
    %57 = vector.broadcast %c15_i32 : i32 to vector<64x1xi32>
    %58 = arith.cmpi slt, %42, %57 : vector<64x1xi32>
    %cst_17 = arith.constant 1.000000e+00 : f32
    %cst_18 = arith.constant 0.000000e+00 : f32
    %59 = vector.broadcast %cst_17 : f32 to vector<64x1xf32>
    %60 = vector.broadcast %cst_18 : f32 to vector<64x1xf32>
    %61 = arith.select %58, %59, %60 : vector<64x1xi1>, vector<64x1xf32>
    %62 = vector.shape_cast %61 : vector<64x1xf32> to vector<64x1xf32>
    %63 = vector.broadcast %62 : vector<64x1xf32> to vector<64x32xf32>
    %c14_i32 = arith.constant 14 : i32
    %64 = vector.broadcast %c14_i32 : i32 to vector<64x1xi32>
    %65 = arith.cmpi slt, %42, %64 : vector<64x1xi32>
    %cst_19 = arith.constant 1.000000e+00 : f32
    %cst_20 = arith.constant 0.000000e+00 : f32
    %66 = vector.broadcast %cst_19 : f32 to vector<64x1xf32>
    %67 = vector.broadcast %cst_20 : f32 to vector<64x1xf32>
    %68 = arith.select %65, %66, %67 : vector<64x1xi1>, vector<64x1xf32>
    %69 = vector.shape_cast %68 : vector<64x1xf32> to vector<64x1xf32>
    %70 = vector.broadcast %69 : vector<64x1xf32> to vector<64x32xf32>
    %c0_21 = arith.constant 0 : index
    %c0_22 = arith.constant 0 : index
    %71 = vector.load %arg4[%c0_21, %c0_22] : memref<32x96xbf16, #tpu.memory_space<vmem>>, vector<32x96xbf16>
    %cst_23 = arith.constant dense<0.000000e+00> : vector<64x96xf32>
    %72 = tpu.matmul %25, %71, %cst_23 {dimension_numbers = #tpu.dot_dimension_numbers<[1], [0], [0], [1], [0, 0, 1, 1], [], []>} : vector<64x32xbf16>, vector<32x96xbf16>, vector<64x96xf32> -> vector<64x96xf32>
    %cst_24 = arith.constant 0.000000e+00 : f32
    %73 = vector.broadcast %cst_24 : f32 to vector<64x32xf32>
    %74 = vector.extract_strided_slice %72 {offsets = [0, 0], sizes = [64, 32], strides = [1, 1]} : vector<64x96xf32> to vector<64x32xf32>
    %c1_i32_25 = arith.constant 1 : i32
    %75 = tpu.dynamic_rotate %74 by %c1_i32_25 dim 0 : vector<64x32xf32>, i32 -> vector<64x32xf32>
    %76 = arith.mulf %75, %49 : vector<64x32xf32>
    %77 = arith.addf %73, %76 : vector<64x32xf32>
    %78 = vector.extract_strided_slice %72 {offsets = [0, 32], sizes = [64, 32], strides = [1, 1]} : vector<64x96xf32> to vector<64x32xf32>
    %79 = arith.addf %77, %78 : vector<64x32xf32>
    %80 = vector.extract_strided_slice %72 {offsets = [0, 64], sizes = [64, 32], strides = [1, 1]} : vector<64x96xf32> to vector<64x32xf32>
    %c63_i32 = arith.constant 63 : i32
    %81 = tpu.dynamic_rotate %80 by %c63_i32 dim 0 : vector<64x32xf32>, i32 -> vector<64x32xf32>
    %82 = arith.mulf %81, %63 : vector<64x32xf32>
    %83 = arith.addf %79, %82 : vector<64x32xf32>
    %c0_26 = arith.constant 0 : index
    %c0_27 = arith.constant 0 : index
    %84 = vector.load %arg5[%c0_26, %c0_27] : memref<1x32xf32, #tpu.memory_space<vmem>>, vector<1x32xf32>
    %85 = vector.broadcast %84 : vector<1x32xf32> to vector<64x32xf32>
    %86 = arith.addf %83, %85 : vector<64x32xf32>
    %87 = arith.mulf %86, %86 : vector<64x32xf32>
    %88 = arith.mulf %86, %87 : vector<64x32xf32>
    %cst_28 = arith.constant 4.471500e-02 : f32
    %89 = vector.broadcast %cst_28 : f32 to vector<64x32xf32>
    %90 = arith.mulf %89, %88 : vector<64x32xf32>
    %91 = arith.addf %86, %90 : vector<64x32xf32>
    %cst_29 = arith.constant 0.797884583 : f32
    %92 = vector.broadcast %cst_29 : f32 to vector<64x32xf32>
    %93 = arith.mulf %92, %91 : vector<64x32xf32>
    %94 = math.tanh %93 : vector<64x32xf32>
    %cst_30 = arith.constant 1.000000e+00 : f32
    %95 = vector.broadcast %cst_30 : f32 to vector<64x32xf32>
    %96 = arith.addf %95, %94 : vector<64x32xf32>
    %cst_31 = arith.constant 5.000000e-01 : f32
    %97 = vector.broadcast %cst_31 : f32 to vector<64x32xf32>
    %98 = arith.mulf %97, %96 : vector<64x32xf32>
    %99 = arith.mulf %86, %98 : vector<64x32xf32>
    %100 = arith.truncf %99 : vector<64x32xf32> to vector<64x32xbf16>
    %c0_32 = arith.constant 0 : index
    %c0_33 = arith.constant 0 : index
    %101 = vector.load %arg6[%c0_32, %c0_33] : memref<32x160xbf16, #tpu.memory_space<vmem>>, vector<32x160xbf16>
    %cst_34 = arith.constant dense<0.000000e+00> : vector<64x160xf32>
    %102 = tpu.matmul %100, %101, %cst_34 {dimension_numbers = #tpu.dot_dimension_numbers<[1], [0], [0], [1], [0, 0, 1, 1], [], []>} : vector<64x32xbf16>, vector<32x160xbf16>, vector<64x160xf32> -> vector<64x160xf32>
    %cst_35 = arith.constant 0.000000e+00 : f32
    %103 = vector.broadcast %cst_35 : f32 to vector<64x32xf32>
    %104 = vector.extract_strided_slice %102 {offsets = [0, 0], sizes = [64, 32], strides = [1, 1]} : vector<64x160xf32> to vector<64x32xf32>
    %c2_i32_36 = arith.constant 2 : i32
    %105 = tpu.dynamic_rotate %104 by %c2_i32_36 dim 0 : vector<64x32xf32>, i32 -> vector<64x32xf32>
    %106 = arith.mulf %105, %56 : vector<64x32xf32>
    %107 = arith.addf %103, %106 : vector<64x32xf32>
    %108 = vector.extract_strided_slice %102 {offsets = [0, 32], sizes = [64, 32], strides = [1, 1]} : vector<64x160xf32> to vector<64x32xf32>
    %c1_i32_37 = arith.constant 1 : i32
    %109 = tpu.dynamic_rotate %108 by %c1_i32_37 dim 0 : vector<64x32xf32>, i32 -> vector<64x32xf32>
    %110 = arith.mulf %109, %49 : vector<64x32xf32>
    %111 = arith.addf %107, %110 : vector<64x32xf32>
    %112 = vector.extract_strided_slice %102 {offsets = [0, 64], sizes = [64, 32], strides = [1, 1]} : vector<64x160xf32> to vector<64x32xf32>
    %113 = arith.addf %111, %112 : vector<64x32xf32>
    %114 = vector.extract_strided_slice %102 {offsets = [0, 96], sizes = [64, 32], strides = [1, 1]} : vector<64x160xf32> to vector<64x32xf32>
    %c63_i32_38 = arith.constant 63 : i32
    %115 = tpu.dynamic_rotate %114 by %c63_i32_38 dim 0 : vector<64x32xf32>, i32 -> vector<64x32xf32>
    %116 = arith.mulf %115, %63 : vector<64x32xf32>
    %117 = arith.addf %113, %116 : vector<64x32xf32>
    %118 = vector.extract_strided_slice %102 {offsets = [0, 128], sizes = [64, 32], strides = [1, 1]} : vector<64x160xf32> to vector<64x32xf32>
    %c62_i32 = arith.constant 62 : i32
    %119 = tpu.dynamic_rotate %118 by %c62_i32 dim 0 : vector<64x32xf32>, i32 -> vector<64x32xf32>
    %120 = arith.mulf %119, %70 : vector<64x32xf32>
    %121 = arith.addf %117, %120 : vector<64x32xf32>
    %c0_39 = arith.constant 0 : index
    %c0_40 = arith.constant 0 : index
    %122 = vector.load %arg7[%c0_39, %c0_40] : memref<1x32xf32, #tpu.memory_space<vmem>>, vector<1x32xf32>
    %123 = vector.broadcast %122 : vector<1x32xf32> to vector<64x32xf32>
    %124 = arith.addf %121, %123 : vector<64x32xf32>
    %125 = arith.mulf %124, %124 : vector<64x32xf32>
    %126 = arith.mulf %124, %125 : vector<64x32xf32>
    %cst_41 = arith.constant 4.471500e-02 : f32
    %127 = vector.broadcast %cst_41 : f32 to vector<64x32xf32>
    %128 = arith.mulf %127, %126 : vector<64x32xf32>
    %129 = arith.addf %124, %128 : vector<64x32xf32>
    %cst_42 = arith.constant 0.797884583 : f32
    %130 = vector.broadcast %cst_42 : f32 to vector<64x32xf32>
    %131 = arith.mulf %130, %129 : vector<64x32xf32>
    %132 = math.tanh %131 : vector<64x32xf32>
    %cst_43 = arith.constant 1.000000e+00 : f32
    %133 = vector.broadcast %cst_43 : f32 to vector<64x32xf32>
    %134 = arith.addf %133, %132 : vector<64x32xf32>
    %cst_44 = arith.constant 5.000000e-01 : f32
    %135 = vector.broadcast %cst_44 : f32 to vector<64x32xf32>
    %136 = arith.mulf %135, %134 : vector<64x32xf32>
    %137 = arith.mulf %124, %136 : vector<64x32xf32>
    %c0_45 = arith.constant 0 : index
    %c0_46 = arith.constant 0 : index
    %138 = vector.load %arg8[%c0_45, %c0_46] : memref<32x96xbf16, #tpu.memory_space<vmem>>, vector<32x96xbf16>
    %cst_47 = arith.constant dense<0.000000e+00> : vector<64x96xf32>
    %139 = tpu.matmul %25, %138, %cst_47 {dimension_numbers = #tpu.dot_dimension_numbers<[1], [0], [0], [1], [0, 0, 1, 1], [], []>} : vector<64x32xbf16>, vector<32x96xbf16>, vector<64x96xf32> -> vector<64x96xf32>
    %c0_48 = arith.constant 0 : index
    %c0_49 = arith.constant 0 : index
    %140 = vector.load %arg9[%c0_48, %c0_49] : memref<1x96xf32, #tpu.memory_space<vmem>>, vector<1x96xf32>
    %141 = vector.broadcast %140 : vector<1x96xf32> to vector<64x96xf32>
    %142 = arith.addf %139, %141 : vector<64x96xf32>
    %143 = arith.truncf %142 : vector<64x96xf32> to vector<64x96xbf16>
    %144 = vector.shape_cast %143 : vector<64x96xbf16> to vector<4x16x96xbf16>
    %145 = vector.extract_strided_slice %144 {offsets = [0, 0, 0], sizes = [4, 16, 8], strides = [1, 1, 1]} : vector<4x16x96xbf16> to vector<4x16x8xbf16>
    %146 = vector.extract_strided_slice %144 {offsets = [0, 0, 32], sizes = [4, 16, 8], strides = [1, 1, 1]} : vector<4x16x96xbf16> to vector<4x16x8xbf16>
    %147 = vector.extract_strided_slice %144 {offsets = [0, 0, 64], sizes = [4, 16, 8], strides = [1, 1, 1]} : vector<4x16x96xbf16> to vector<4x16x8xbf16>
    "tpu.trace_start"() <{level = 10 : i32, message = "bqd,bkd->bqk"}> : () -> ()
    %cst_50 = arith.constant dense<0.000000e+00> : vector<4x16x16xf32>
    %148 = tpu.matmul %145, %146, %cst_50 {dimension_numbers = #tpu.dot_dimension_numbers<[2], [2], [1], [1], [0, 0, 0, 1, 1, 1], [0], [0]>} : vector<4x16x8xbf16>, vector<4x16x8xbf16>, vector<4x16x16xf32> -> vector<4x16x16xf32>
    "tpu.trace_stop"() : () -> ()
    %cst_51 = arith.constant dense<0xFF800000> : vector<4x16xf32>
    %149 = vector.multi_reduction <maximumf>, %148, %cst_51 [2] : vector<4x16x16xf32> to vector<4x16xf32>
    %150 = vector.shape_cast %149 : vector<4x16xf32> to vector<4x16x1xf32>
    %151 = vector.broadcast %150 : vector<4x16x1xf32> to vector<4x16x16xf32>
    %152 = arith.subf %148, %151 : vector<4x16x16xf32>
    %153 = math.exp %152 : vector<4x16x16xf32>
    %cst_52 = arith.constant dense<0.000000e+00> : vector<4x16xf32>
    %154 = vector.multi_reduction <add>, %153, %cst_52 [2] : vector<4x16x16xf32> to vector<4x16xf32>
    %155 = vector.shape_cast %154 : vector<4x16xf32> to vector<4x16x1xf32>
    %156 = vector.broadcast %155 : vector<4x16x1xf32> to vector<4x16x16xf32>
    %157 = arith.divf %153, %156 : vector<4x16x16xf32>
    %158 = arith.truncf %157 : vector<4x16x16xf32> to vector<4x16x16xbf16>
    "tpu.trace_start"() <{level = 10 : i32, message = "bqk,bkd->bqd"}> : () -> ()
    %cst_53 = arith.constant dense<0.000000e+00> : vector<4x16x8xf32>
    %159 = tpu.matmul %158, %147, %cst_53 {dimension_numbers = #tpu.dot_dimension_numbers<[2], [1], [1], [2], [0, 0, 0, 1, 1, 2], [0], [0]>} : vector<4x16x16xbf16>, vector<4x16x8xbf16>, vector<4x16x8xf32> -> vector<4x16x8xf32>
    "tpu.trace_stop"() : () -> ()
    %160 = vector.extract_strided_slice %144 {offsets = [0, 0, 8], sizes = [4, 16, 8], strides = [1, 1, 1]} : vector<4x16x96xbf16> to vector<4x16x8xbf16>
    %161 = vector.extract_strided_slice %144 {offsets = [0, 0, 40], sizes = [4, 16, 8], strides = [1, 1, 1]} : vector<4x16x96xbf16> to vector<4x16x8xbf16>
    %162 = vector.extract_strided_slice %144 {offsets = [0, 0, 72], sizes = [4, 16, 8], strides = [1, 1, 1]} : vector<4x16x96xbf16> to vector<4x16x8xbf16>
    "tpu.trace_start"() <{level = 10 : i32, message = "bqd,bkd->bqk"}> : () -> ()
    %cst_54 = arith.constant dense<0.000000e+00> : vector<4x16x16xf32>
    %163 = tpu.matmul %160, %161, %cst_54 {dimension_numbers = #tpu.dot_dimension_numbers<[2], [2], [1], [1], [0, 0, 0, 1, 1, 1], [0], [0]>} : vector<4x16x8xbf16>, vector<4x16x8xbf16>, vector<4x16x16xf32> -> vector<4x16x16xf32>
    "tpu.trace_stop"() : () -> ()
    %cst_55 = arith.constant dense<0xFF800000> : vector<4x16xf32>
    %164 = vector.multi_reduction <maximumf>, %163, %cst_55 [2] : vector<4x16x16xf32> to vector<4x16xf32>
    %165 = vector.shape_cast %164 : vector<4x16xf32> to vector<4x16x1xf32>
    %166 = vector.broadcast %165 : vector<4x16x1xf32> to vector<4x16x16xf32>
    %167 = arith.subf %163, %166 : vector<4x16x16xf32>
    %168 = math.exp %167 : vector<4x16x16xf32>
    %cst_56 = arith.constant dense<0.000000e+00> : vector<4x16xf32>
    %169 = vector.multi_reduction <add>, %168, %cst_56 [2] : vector<4x16x16xf32> to vector<4x16xf32>
    %170 = vector.shape_cast %169 : vector<4x16xf32> to vector<4x16x1xf32>
    %171 = vector.broadcast %170 : vector<4x16x1xf32> to vector<4x16x16xf32>
    %172 = arith.divf %168, %171 : vector<4x16x16xf32>
    %173 = arith.truncf %172 : vector<4x16x16xf32> to vector<4x16x16xbf16>
    "tpu.trace_start"() <{level = 10 : i32, message = "bqk,bkd->bqd"}> : () -> ()
    %cst_57 = arith.constant dense<0.000000e+00> : vector<4x16x8xf32>
    %174 = tpu.matmul %173, %162, %cst_57 {dimension_numbers = #tpu.dot_dimension_numbers<[2], [1], [1], [2], [0, 0, 0, 1, 1, 2], [0], [0]>} : vector<4x16x16xbf16>, vector<4x16x8xbf16>, vector<4x16x8xf32> -> vector<4x16x8xf32>
    "tpu.trace_stop"() : () -> ()
    %175 = vector.extract_strided_slice %144 {offsets = [0, 0, 16], sizes = [4, 16, 8], strides = [1, 1, 1]} : vector<4x16x96xbf16> to vector<4x16x8xbf16>
    %176 = vector.extract_strided_slice %144 {offsets = [0, 0, 48], sizes = [4, 16, 8], strides = [1, 1, 1]} : vector<4x16x96xbf16> to vector<4x16x8xbf16>
    %177 = vector.extract_strided_slice %144 {offsets = [0, 0, 80], sizes = [4, 16, 8], strides = [1, 1, 1]} : vector<4x16x96xbf16> to vector<4x16x8xbf16>
    "tpu.trace_start"() <{level = 10 : i32, message = "bqd,bkd->bqk"}> : () -> ()
    %cst_58 = arith.constant dense<0.000000e+00> : vector<4x16x16xf32>
    %178 = tpu.matmul %175, %176, %cst_58 {dimension_numbers = #tpu.dot_dimension_numbers<[2], [2], [1], [1], [0, 0, 0, 1, 1, 1], [0], [0]>} : vector<4x16x8xbf16>, vector<4x16x8xbf16>, vector<4x16x16xf32> -> vector<4x16x16xf32>
    "tpu.trace_stop"() : () -> ()
    %cst_59 = arith.constant dense<0xFF800000> : vector<4x16xf32>
    %179 = vector.multi_reduction <maximumf>, %178, %cst_59 [2] : vector<4x16x16xf32> to vector<4x16xf32>
    %180 = vector.shape_cast %179 : vector<4x16xf32> to vector<4x16x1xf32>
    %181 = vector.broadcast %180 : vector<4x16x1xf32> to vector<4x16x16xf32>
    %182 = arith.subf %178, %181 : vector<4x16x16xf32>
    %183 = math.exp %182 : vector<4x16x16xf32>
    %cst_60 = arith.constant dense<0.000000e+00> : vector<4x16xf32>
    %184 = vector.multi_reduction <add>, %183, %cst_60 [2] : vector<4x16x16xf32> to vector<4x16xf32>
    %185 = vector.shape_cast %184 : vector<4x16xf32> to vector<4x16x1xf32>
    %186 = vector.broadcast %185 : vector<4x16x1xf32> to vector<4x16x16xf32>
    %187 = arith.divf %183, %186 : vector<4x16x16xf32>
    %188 = arith.truncf %187 : vector<4x16x16xf32> to vector<4x16x16xbf16>
    "tpu.trace_start"() <{level = 10 : i32, message = "bqk,bkd->bqd"}> : () -> ()
    %cst_61 = arith.constant dense<0.000000e+00> : vector<4x16x8xf32>
    %189 = tpu.matmul %188, %177, %cst_61 {dimension_numbers = #tpu.dot_dimension_numbers<[2], [1], [1], [2], [0, 0, 0, 1, 1, 2], [0], [0]>} : vector<4x16x16xbf16>, vector<4x16x8xbf16>, vector<4x16x8xf32> -> vector<4x16x8xf32>
    "tpu.trace_stop"() : () -> ()
    %190 = vector.extract_strided_slice %144 {offsets = [0, 0, 24], sizes = [4, 16, 8], strides = [1, 1, 1]} : vector<4x16x96xbf16> to vector<4x16x8xbf16>
    %191 = vector.extract_strided_slice %144 {offsets = [0, 0, 56], sizes = [4, 16, 8], strides = [1, 1, 1]} : vector<4x16x96xbf16> to vector<4x16x8xbf16>
    %192 = vector.extract_strided_slice %144 {offsets = [0, 0, 88], sizes = [4, 16, 8], strides = [1, 1, 1]} : vector<4x16x96xbf16> to vector<4x16x8xbf16>
    "tpu.trace_start"() <{level = 10 : i32, message = "bqd,bkd->bqk"}> : () -> ()
    %cst_62 = arith.constant dense<0.000000e+00> : vector<4x16x16xf32>
    %193 = tpu.matmul %190, %191, %cst_62 {dimension_numbers = #tpu.dot_dimension_numbers<[2], [2], [1], [1], [0, 0, 0, 1, 1, 1], [0], [0]>} : vector<4x16x8xbf16>, vector<4x16x8xbf16>, vector<4x16x16xf32> -> vector<4x16x16xf32>
    "tpu.trace_stop"() : () -> ()
    %cst_63 = arith.constant dense<0xFF800000> : vector<4x16xf32>
    %194 = vector.multi_reduction <maximumf>, %193, %cst_63 [2] : vector<4x16x16xf32> to vector<4x16xf32>
    %195 = vector.shape_cast %194 : vector<4x16xf32> to vector<4x16x1xf32>
    %196 = vector.broadcast %195 : vector<4x16x1xf32> to vector<4x16x16xf32>
    %197 = arith.subf %193, %196 : vector<4x16x16xf32>
    %198 = math.exp %197 : vector<4x16x16xf32>
    %cst_64 = arith.constant dense<0.000000e+00> : vector<4x16xf32>
    %199 = vector.multi_reduction <add>, %198, %cst_64 [2] : vector<4x16x16xf32> to vector<4x16xf32>
    %200 = vector.shape_cast %199 : vector<4x16xf32> to vector<4x16x1xf32>
    %201 = vector.broadcast %200 : vector<4x16x1xf32> to vector<4x16x16xf32>
    %202 = arith.divf %198, %201 : vector<4x16x16xf32>
    %203 = arith.truncf %202 : vector<4x16x16xf32> to vector<4x16x16xbf16>
    "tpu.trace_start"() <{level = 10 : i32, message = "bqk,bkd->bqd"}> : () -> ()
    %cst_65 = arith.constant dense<0.000000e+00> : vector<4x16x8xf32>
    %204 = tpu.matmul %203, %192, %cst_65 {dimension_numbers = #tpu.dot_dimension_numbers<[2], [1], [1], [2], [0, 0, 0, 1, 1, 2], [0], [0]>} : vector<4x16x16xbf16>, vector<4x16x8xbf16>, vector<4x16x8xf32> -> vector<4x16x8xf32>
    "tpu.trace_stop"() : () -> ()
    %205 = tpu.concatenate %159, %174, %189, %204 in 2 : vector<4x16x8xf32>, vector<4x16x8xf32>, vector<4x16x8xf32>, vector<4x16x8xf32> -> vector<4x16x32xf32>
    %206 = vector.shape_cast %205 : vector<4x16x32xf32> to vector<64x32xf32>
    %207 = arith.truncf %206 : vector<64x32xf32> to vector<64x32xbf16>
    %c0_66 = arith.constant 0 : index
    %c0_67 = arith.constant 0 : index
    %208 = vector.load %arg10[%c0_66, %c0_67] : memref<32x32xbf16, #tpu.memory_space<vmem>>, vector<32x32xbf16>
    %cst_68 = arith.constant dense<0.000000e+00> : vector<64x32xf32>
    %209 = tpu.matmul %207, %208, %cst_68 {dimension_numbers = #tpu.dot_dimension_numbers<[1], [0], [0], [1], [0, 0, 1, 1], [], []>} : vector<64x32xbf16>, vector<32x32xbf16>, vector<64x32xf32> -> vector<64x32xf32>
    %c0_69 = arith.constant 0 : index
    %c0_70 = arith.constant 0 : index
    %210 = vector.load %arg11[%c0_69, %c0_70] : memref<1x32xf32, #tpu.memory_space<vmem>>, vector<1x32xf32>
    %211 = vector.broadcast %210 : vector<1x32xf32> to vector<64x32xf32>
    %212 = arith.addf %209, %211 : vector<64x32xf32>
    %c0_71 = arith.constant 0 : index
    %213 = memref.load %arg12[%c0_71] : memref<1xf32, #tpu.memory_space<smem>>
    %c0_72 = arith.constant 0 : index
    %c0_73 = arith.constant 0 : index
    %214 = vector.load %arg1[%c0_72, %c0_73] : memref<64x32xf32, #tpu.memory_space<vmem>>, vector<64x32xf32>
    %215 = vector.broadcast %213 : f32 to vector<64x32xf32>
    %216 = arith.mulf %215, %137 : vector<64x32xf32>
    %217 = arith.addf %214, %216 : vector<64x32xf32>
    %cst_74 = arith.constant 1.000000e+00 : f32
    %218 = arith.subf %cst_74, %213 : f32
    %219 = vector.broadcast %218 : f32 to vector<64x32xf32>
    %220 = arith.mulf %219, %212 : vector<64x32xf32>
    %221 = arith.addf %217, %220 : vector<64x32xf32>
    %c0_75 = arith.constant 0 : index
    %c0_76 = arith.constant 0 : index
    %222 = vector.load %arg13[%c0_75, %c0_76] : memref<64x32xf32, #tpu.memory_space<vmem>>, vector<64x32xf32>
    tpu.vector_store %arg13[%c0_75, %c0_76], %221 {strides = array<i32>} : memref<64x32xf32, #tpu.memory_space<vmem>>, vector<64x32xf32>,
    return
  }
  func.func @transform_0(%arg0: i32) -> (i32, i32) {
    %c0_i32 = arith.constant 0 : i32
    %c0_i32_0 = arith.constant 0 : i32
    return %arg0, %c0_i32 : i32, i32
  }
  func.func @transform_1(%arg0: i32) -> (i32, i32) {
    %c0_i32 = arith.constant 0 : i32
    %c0_i32_0 = arith.constant 0 : i32
    %c0_i32_1 = arith.constant 0 : i32
    return %c0_i32, %c0_i32_0 : i32, i32
  }
  func.func @transform_2(%arg0: i32) -> (i32, i32) {
    %c0_i32 = arith.constant 0 : i32
    %c0_i32_0 = arith.constant 0 : i32
    %c0_i32_1 = arith.constant 0 : i32
    return %c0_i32, %c0_i32_0 : i32, i32
  }
  func.func @transform_3(%arg0: i32) -> (i32, i32) {
    %c0_i32 = arith.constant 0 : i32
    %c0_i32_0 = arith.constant 0 : i32
    %c0_i32_1 = arith.constant 0 : i32
    return %c0_i32, %c0_i32_0 : i32, i32
  }
  func.func @transform_4(%arg0: i32) -> (i32, i32) {
    %c0_i32 = arith.constant 0 : i32
    %c0_i32_0 = arith.constant 0 : i32
    %c0_i32_1 = arith.constant 0 : i32
    return %c0_i32, %c0_i32_0 : i32, i32
  }
  func.func @transform_5(%arg0: i32) -> (i32, i32) {
    %c0_i32 = arith.constant 0 : i32
    %c0_i32_0 = arith.constant 0 : i32
    %c0_i32_1 = arith.constant 0 : i32
    return %c0_i32, %c0_i32_0 : i32, i32
  }
  func.func @transform_6(%arg0: i32) -> (i32, i32) {
    %c0_i32 = arith.constant 0 : i32
    %c0_i32_0 = arith.constant 0 : i32
    %c0_i32_1 = arith.constant 0 : i32
    return %c0_i32, %c0_i32_0 : i32, i32
  }
  func.func @transform_7(%arg0: i32) -> (i32, i32) {
    %c0_i32 = arith.constant 0 : i32
    %c0_i32_0 = arith.constant 0 : i32
    %c0_i32_1 = arith.constant 0 : i32
    return %c0_i32, %c0_i32_0 : i32, i32
  }
  func.func @transform_8(%arg0: i32) -> (i32, i32) {
    %c0_i32 = arith.constant 0 : i32
    %c0_i32_0 = arith.constant 0 : i32
    %c0_i32_1 = arith.constant 0 : i32
    return %c0_i32, %c0_i32_0 : i32, i32
  }
  func.func @transform_9(%arg0: i32) -> (i32, i32) {
    %c0_i32 = arith.constant 0 : i32
    %c0_i32_0 = arith.constant 0 : i32
    %c0_i32_1 = arith.constant 0 : i32
    return %c0_i32, %c0_i32_0 : i32, i32
  }
  func.func @transform_10(%arg0: i32) -> (i32, i32) {
    %c0_i32 = arith.constant 0 : i32
    %c0_i32_0 = arith.constant 0 : i32
    %c0_i32_1 = arith.constant 0 : i32
    return %c0_i32, %c0_i32_0 : i32, i32
  }
  func.func @transform_11(%arg0: i32) -> i32 {
    %c0_i32 = arith.constant 0 : i32
    %c0_i32_0 = arith.constant 0 : i32
    return %c0_i32 : i32
  }
  func.func @transform_12(%arg0: i32) -> (i32, i32) {
    %c0_i32 = arith.constant 0 : i32
    %c0_i32_0 = arith.constant 0 : i32
    return %arg0, %c0_i32 : i32, i32
  }
}

</mosaic_0001>

<bundles_post_ra>
// kernel: tpu_custom_call.1
= control target key start
LH: loop header
LB: loop body
LE: loop exit
PB: predicated region body
PF: predicated region fallthrough
CT: control target
= control target key end

     0   :  { %vm51_vm0 = vcmask 261120   ;;  %s4041_s28 = smov 96   ;;  %vm4042_vm2 = vmmov 0   ;;  %vm1183_vm12 = vcmask 64512   ;;  %vm1381_vm13 = vcmask 130048   ;;  %s4045_s21 = smov 120   ;;  %s5440_s0 = inlined_call_operand.vmem [shape: f32[64,32], index: 0, kind: input, shape index: {}]   ;;  %s5441_s3 = inlined_call_operand.vmem [shape: bf16[32,96], index: 3, kind: input, shape index: {}]   ;;  %s5442_s7 = inlined_call_operand.vmem [shape: bf16[32,96], index: 7, kind: input, shape index: {}]   ;;  %s5443_s1 = inlined_call_operand.vmem [shape: f32[1,32], index: 1, kind: input, shape index: {}]   ;;  %s5444_s2 = inlined_call_operand.vmem [shape: f32[1,32], index: 2, kind: input, shape index: {}]   ;;  %s5445_s8 = inlined_call_operand.vmem [shape: f32[1,96], index: 8, kind: input, shape index: {}]   ;;  %s5446_s5 = inlined_call_operand.vmem [shape: bf16[32,160], index: 5, kind: input, shape index: {}]   ;;  %s5447_s4 = inlined_call_operand.vmem [shape: f32[1,32], index: 4, kind: input, shape index: {}]   ;;  %s5448_s9 = inlined_call_operand.vmem [shape: bf16[32,32], index: 9, kind: input, shape index: {}]   ;;  %s5449_s6 = inlined_call_operand.vmem [shape: f32[1,32], index: 6, kind: input, shape index: {}]   ;;  %s5450_s11 = inlined_call_operand.<no memory space> [shape: f32[1], index: 11, kind: input, shape index: {}]   ;;  %s5451_s10 = inlined_call_operand.vmem [shape: f32[1,32], index: 10, kind: input, shape index: {}]   ;;  %s5452_s12 = inlined_call_operand.vmem [shape: f32[64,32], index: 12, kind: output, shape index: {}]  }
   0x1   :  { %v43_v0 = vld [vmem:[%s5440_s0] sm:$0xff]  ;;  %v45_v1 = vld [vmem:[%s5440_s0 + $0x10] sm:$0xff]  ;;  %v44_v2 = vld [vmem:[%s5440_s0 + $0x8] sm:$0xff]  ;;  %s4046_s22 = smov 56   ;;  %s4047_s23 = smov 80  }
   0x2   :  { %v52_v3 = vsel %vm51_vm0, %v43_v0, 0.0  ;;  %v58_v4 = vsel %vm51_vm0, %v45_v1, 0.0  ;;  %v46_v5 = vld [vmem:[%s5440_s0 + $0x18] sm:$0xff]  ;;  %v55_v6 = vsel %vm51_vm0, %v44_v2, 0.0  ;;  %v47_v8 = vld [vmem:[%s5440_s0 + $0x20] sm:$0xff]  ;;  %v48_v9 = vld [vmem:[%s5440_s0 + $0x28] sm:$0xff] }
   0x3   :  { %53 = vadd.xlane.f32.xlu0 %v52_v3  ;;  %59 = vadd.xlane.f32.xlu1 %v58_v4  ;;  %v61_v7 = vsel %vm51_vm0, %v46_v5, 0.0  ;;  %v64_v10 = vsel %vm51_vm0, %v47_v8, 0.0  ;;  %v67_v11 = vsel %vm51_vm0, %v48_v9, 0.0  ;;  %v49_v12 = vld [vmem:[%s5440_s0 + $0x30] sm:$0xff]  ;;  %v50_v13 = vld [vmem:[%s5440_s0 + $0x38] sm:$0xff]  ;;  %v3851_v56 = vld [vmem:[%s5441_s3] sm:$0xff]  }
   0x4   :  { %v70_v14 = vsel %vm51_vm0, %v49_v12, 0.0  ;;  %v73_v15 = vsel %vm51_vm0, %v50_v13, 0.0  ;;  %v3852_v57 = vld [vmem:[%s5441_s3 + $0x8] sm:$0xff]   ;;  %3541 = vmatprep.subr.bf16.mxu0 %v3851_v56  ;;  %3769 = vmatprep.subr.bf16.mxu1 %v3851_v56  ;;  %v4203_v58 = vld [vmem:[%s5442_s7] sm:$0xff]   ;;  %s4048_s24 = smov 112   ;;  %s4049_s3 = smov 48  }
   0x5   :  { %3542 = vmatpush3.bf16.msra.mxu0 %v3851_v56  ;;  %3771 = vmatpush3.bf16.msra.mxu1 %v3851_v56  ;;  %s4050_s25 = smov 72   ;;  %s4051_s26 = smov 104  }
   0x6   :  { %3543 = vmatprep.subr.bf16.mxu0 %v3852_v57  ;;  %3770 = vmatprep.subr.bf16.mxu1 %v3852_v57  ;;  %s4052_s27 = smov 40   ;;  %s4055_s14 = smov 24  }
   0x7   :  { %56 = vadd.xlane.f32.xlu0 %v55_v6  ;;  %62 = vadd.xlane.f32.xlu1 %v61_v7  ;;  %s3365_s16 = ssub.f32 1.0, %s5450_s11 }
   0x9   :  { %3544 = vmatpush3.bf16.msra.mxu0 %v3852_v57  ;;  %3772 = vmatpush3.bf16.msra.mxu1 %v3852_v57 }
   0xa   :  { %3553 = vmatprep.subr.bf16.mxu0 %v4203_v58 }
   0xb   :  { %65 = vadd.xlane.f32.xlu0 %v64_v10  ;;  %68 = vadd.xlane.f32.xlu1 %v67_v11 }
   0xf   :  { %71 = vadd.xlane.f32.xlu0 %v70_v14  ;;  %74 = vadd.xlane.f32.xlu1 %v73_v15 }
  0x90   :  { %v54_v16 = vpop.xlane.xlu0 %53  ;;  %v60_v17 = vpop.xlane.xlu1 %59 }
  0x91   :  { %v77_v18 = vmul.f32 0.03125, %v54_v16  ;;  %v79_v19 = vmul.f32 0.03125, %v60_v17 }
  0x93   :  { %v4154_v20 = vsub.f32 %v43_v0, %v77_v18  ;;  %v4156_v21 = vsub.f32 %v45_v1, %v79_v19 }
  0x94   :  { %v57_v22 = vpop.xlane.xlu0 %56  ;;  %v63_v23 = vpop.xlane.xlu1 %62 }
  0x95   :  { %v78_v24 = vmul.f32 0.03125, %v57_v22  ;;  %v80_v25 = vmul.f32 0.03125, %v63_v23  ;;  %v93_v26 = vmul.f32 %v4154_v20, %v4154_v20  ;;  %v95_v27 = vmul.f32 %v4156_v21, %v4156_v21  ;;  %v3395_v22 = vld [vmem:[%s5443_s1] ss:$0 sm:$0xff]  ;;  %s4053_s1 = smov 8  }
  0x97   :  { %v4162_v28 = vsub.f32 %v44_v2, %v78_v24  ;;  %v4164_v29 = vsub.f32 %v46_v5, %v80_v25  ;;  %v101_v30 = vsel %vm51_vm0, %v93_v26, 0.0  ;;  %v107_v33 = vsel %vm51_vm0, %v95_v27, 0.0 }
  0x98   :  { %102 = vadd.xlane.f32.xlu0 %v101_v30  ;;  %v66_v31 = vpop.xlane.xlu0 %65  ;;  %v69_v32 = vpop.xlane.xlu1 %68  ;;  %v3396_v30 = vld [vmem:[%s5444_s2] ss:$0 sm:$0xff]  ;;  %s4054_s2 = smov 16  }
  0x99   :  { %v81_v34 = vmul.f32 0.03125, %v66_v31  ;;  %v82_v35 = vmul.f32 0.03125, %v69_v32  ;;  %v94_v36 = vmul.f32 %v4162_v28, %v4162_v28  ;;  %v96_v37 = vmul.f32 %v4164_v29, %v4164_v29 }
  0x9b   :  { %v4172_v38 = vsub.f32 %v47_v8, %v81_v34  ;;  %v4174_v39 = vsub.f32 %v48_v9, %v82_v35  ;;  %v104_v40 = vsel %vm51_vm0, %v94_v36, 0.0  ;;  %v110_v43 = vsel %vm51_vm0, %v96_v37, 0.0 }
  0x9c   :  { %108 = vadd.xlane.f32.xlu0 %v107_v33  ;;  %105 = vadd.xlane.f32.xlu1 %v104_v40  ;;  %v72_v41 = vpop.xlane.xlu0 %71  ;;  %v75_v42 = vpop.xlane.xlu1 %74 }
  0x9d   :  { %v83_v44 = vmul.f32 0.03125, %v72_v41  ;;  %v84_v45 = vmul.f32 0.03125, %v75_v42  ;;  %v97_v46 = vmul.f32 %v4172_v38, %v4172_v38  ;;  %v98_v47 = vmul.f32 %v4174_v39, %v4174_v39 }
  0x9f   :  { %v4182_v48 = vsub.f32 %v49_v12, %v83_v44  ;;  %v4184_v49 = vsub.f32 %v50_v13, %v84_v45  ;;  %v113_v50 = vsel %vm51_vm0, %v97_v46, 0.0  ;;  %v116_v51 = vsel %vm51_vm0, %v98_v47, 0.0 }
  0xa0   :  { %111 = vadd.xlane.f32.xlu1 %v110_v43  ;;  %114 = vadd.xlane.f32.xlu0 %v113_v50 }
  0xa1   :  { %v99_v52 = vmul.f32 %v4182_v48, %v4182_v48  ;;  %v100_v53 = vmul.f32 %v4184_v49, %v4184_v49 }
  0xa3   :  { %v119_v54 = vsel %vm51_vm0, %v99_v52, 0.0  ;;  %v122_v55 = vsel %vm51_vm0, %v100_v53, 0.0 }
  0xa4   :  { %117 = vadd.xlane.f32.xlu1 %v116_v51  ;;  %120 = vadd.xlane.f32.xlu0 %v119_v54 }
  0xa8   :  { %123 = vadd.xlane.f32.xlu1 %v122_v55 }
 0x125   :  { %v103_v59 = vpop.xlane.xlu0 %102 }
 0x126   :  { %v125_v60 = vmul.f32 0.03125, %v103_v59 }
 0x128   :  { %v133_v61 = vadd.f32 1e-05, %v125_v60 }
 0x129   :  { %v106_v62 = vpop.xlane.xlu1 %105  ;;  %v109_v63 = vpop.xlane.xlu0 %108 }
 0x12a   :  { %3863 = vrsqrt.f32 %v133_v61  ;;  %v126_v0 = vmul.f32 0.03125, %v106_v62  ;;  %v127_v1 = vmul.f32 0.03125, %v109_v63 }
 0x12c   :  { %v134_v2 = vadd.f32 1e-05, %v126_v0  ;;  %v135_v3 = vadd.f32 1e-05, %v127_v1 }
 0x12d   :  { %v112_v4 = vpop.xlane.xlu1 %111  ;;  %v115_v5 = vpop.xlane.xlu0 %114 }
 0x12e   :  { %3865 = vrsqrt.f32 %v134_v2  ;;  %v128_v6 = vmul.f32 0.03125, %v112_v4  ;;  %v129_v7 = vmul.f32 0.03125, %v115_v5 }
 0x12f   :  { %3867 = vrsqrt.f32 %v135_v3 }
 0x130   :  { %v136_v8 = vadd.f32 1e-05, %v128_v6  ;;  %v137_v9 = vadd.f32 1e-05, %v129_v7 }
 0x131   :  { %v118_v10 = vpop.xlane.xlu1 %117  ;;  %v121_v11 = vpop.xlane.xlu0 %120 }
 0x132   :  { %3869 = vrsqrt.f32 %v136_v8  ;;  %v130_v12 = vmul.f32 0.03125, %v118_v10  ;;  %v131_v13 = vmul.f32 0.03125, %v121_v11  ;;  %v3413_v10 = vld [vmem:[%s5445_s8] ss:$0 sm:$0xff] }
 0x133   :  { %3871 = vrsqrt.f32 %v137_v9 }
 0x134   :  { %v3864_v14 = vpop.eup %3863  ;;  %v138_v15 = vadd.f32 1e-05, %v130_v12  ;;  %v139_v16 = vadd.f32 1e-05, %v131_v13 }
 0x135   :  { %v124_v17 = vpop.xlane.xlu1 %123  ;;  %v149_v18 = vmul.f32 %v3864_v14, %v4154_v20 }
 0x136   :  { %3873 = vrsqrt.f32 %v138_v15  ;;  %v132_v19 = vmul.f32 0.03125, %v124_v17 }
 0x137   :  { %3875 = vrsqrt.f32 %v139_v16  ;;  %v164_v27 = vmul.f32 %v3395_v22, %v149_v18 }
 0x138   :  { %v3866_v23 = vpop.eup %3865  ;;  %v140_v24 = vadd.f32 1e-05, %v132_v19 }
 0x139   :  { %v3868_v25 = vpop.eup %3867  ;;  %v150_v26 = vmul.f32 %v3866_v23, %v4162_v28  ;;  %v179_v34 = vadd.f32 %v3396_v30, %v164_v27 }
 0x13a   :  { %3877 = vrsqrt.f32 %v140_v24  ;;  %v151_v20 = vmul.f32 %v3868_v25, %v4156_v21 }
 0x13b   :  { %v165_v31 = vmul.f32 %v3395_v22, %v150_v26 }
 0x13c   :  { %v3870_v32 = vpop.eup %3869  ;;  %v166_v37 = vmul.f32 %v3395_v22, %v151_v20 }
 0x13d   :  { %v3872_v33 = vpop.eup %3871  ;;  %v180_v35 = vadd.f32 %v3396_v30, %v165_v31  ;;  %v152_v36 = vmul.f32 %v3870_v32, %v4164_v29  ;;  %v3854_v29 = vld [vmem:[%s5442_s7 + $0x8] sm:$0xff]   ;;  %s4040_s7 = smov 64  }
 0x13e   :  { %v153_v40 = vmul.f32 %v3872_v33, %v4172_v38  ;;  %v181_v44 = vadd.f32 %v3396_v30, %v166_v37 }
 0x13f   :  { %v187_v41 = vpack.c.bf16 %v180_v35, %v179_v34  ;;  %v167_v28 = vmul.f32 %v3395_v22, %v152_v36  ;;  %v3857_v36 = vld [vmem:[%s5446_s5 + $0x4] ss:$8 sps:$4 sm:$0xff]  }
 0x140   :  { %v3874_v42 = vpop.eup %3873  ;;  %v168_v46 = vmul.f32 %v3395_v22, %v153_v40  ;;  %v3855_v40 = vld [vmem:[%s5446_s5] ss:$8 sps:$4 sm:$0xff]   ;;  %710 = vmatprep.subr.bf16.mxu1 %v3857_v36 }
 0x141   :  { %v3876_v43 = vpop.eup %3875  ;;  %3545 = vmatprep.mubr.msk.bf16.mxu0 %vm51_vm0, %v187_v41  ;;  %v182_v45 = vadd.f32 %v3396_v30, %v167_v28  ;;  %v154_v21 = vmul.f32 %v3874_v42, %v4174_v39 }
 0x142   :  { %v155_v47 = vmul.f32 %v3876_v43, %v4182_v48  ;;  %v183_v52 = vadd.f32 %v3396_v30, %v168_v46 }
 0x143   :  { %v188_v50 = vpack.c.bf16 %v182_v45, %v181_v44  ;;  %v169_v51 = vmul.f32 %v3395_v22, %v154_v21  ;;  %v3860_v21 = vld [vmem:[%s5446_s5 + $0x14] ss:$8 sps:$4 sm:$0xff]  }
 0x144   :  { %v3878_v38 = vpop.eup %3877  ;;  %v170_v55 = vmul.f32 %v3395_v22, %v155_v47  ;;  %v3858_v47 = vld [vmem:[%s5446_s5 + $0x10] ss:$8 sps:$4 sm:$0xff]  }
 0x145   :  { %3546 = vmatmul.mubr.msk.bf16.vlgmr.msra.gmra.mrb[0].mxu0 %vm51_vm0, %v188_v50  ;;  %v184_v53 = vadd.f32 %v3396_v30, %v169_v51  ;;  %v156_v54 = vmul.f32 %v3878_v38, %v4184_v49  ;;  %v5461_v49 = vmov 0.0   ;;  %v4043_v51 = vmov 0  }
 0x146   :  { %3554 = vmatpush3.bf16.msra.mxu0 %v4203_v58  ;;  %3557 = vmatprep.mubr.msk.bf16.mxu0 %vm51_vm0, %v187_v41  ;;  %v185_v56 = vadd.f32 %v3396_v30, %v170_v55  ;;  %v191_v58 = vlaneseq }
 0x147   :  { %v189_v39 = vpack.c.bf16 %v184_v53, %v183_v52  ;;  %3555 = vmatprep.subr.bf16.mxu0 %v3854_v29  ;;  %v171_v48 = vmul.f32 %v3395_v22, %v156_v54 }
 0x148   :  { %v4233_v61 = vshrl.u32 %v191_v58, 7 }
 0x149   :  { %3549 = vmatprep.mubr.msk.bf16.mxu1 %vm51_vm0, %v189_v39  ;;  %v186_v57 = vadd.f32 %v3396_v30, %v171_v48 }
 0x14a   :  { %3556 = vmatpush3.bf16.msra.mxu0 %v3854_v29  ;;  %vm461_vm1 = vcmp.lt.s32.totalorder %v4233_v61, 1  ;;  %v4320_v29 = vadd.s32 8, %v4233_v61  ;;  %v5458_v52 = vand.u32 15, %v4233_v61  ;;  %v4325_v53 = vadd.s32 16, %v4233_v61 }
 0x14b   :  { %v190_v59 = vpack.c.bf16 %v186_v57, %v185_v56  ;;  %3565 = vmatprep.subr.bf16.mxu0 %v5461_v49  ;;  %v4332_v55 = vadd.s32 24, %v4233_v61  ;;  %vm558_vm5 = vcmp.lt.s32.totalorder %v4233_v61, 7  ;;  %vm791_vm14 = vcmp.lt.s32.totalorder %v4233_v61, 2 }
 0x14c   :  { %5476 = vst [vmem:[#allocation3_spill] sm:$0xff] %v4320_v29  ;;  %v5456_v38 = vand.u32 15, %v4320_v29  ;;  %5477 = vst [vmem:[#allocation4_spill] sm:$0xff] %v4325_v53  ;;  %vm296_vm4 = vcmp.ge.s32.totalorder %v5458_v52, 1  ;;  %v5457_v48 = vand.u32 15, %v4325_v53  ;;  %vm976_vm15 = vcmp.lt.s32.totalorder %v4233_v61, 6 }
 0x14d   :  { %3550 = vmatmul.mubr.msk.bf16.vlgmr.msra.gmra.mrb[0].mxu1 %vm51_vm0, %v190_v59  ;;  %3558 = vmatmul.mubr.msk.bf16.vlgmr.msra.gmra.mrb[4].mxu0 %vm51_vm0, %v188_v50  ;;  %5478 = vst [vmem:[#allocation5_spill] sm:$0xff] %v4332_v55 }
 0x14e   :  { %3561 = vmatprep.mubr.msk.bf16.mxu0 %vm51_vm0, %v189_v39  ;;  %711 = vmatpush1.bf16.msra.mxu1 %v3855_v40  ;;  %vm329_vm3 = vcmp.lt.s32.totalorder %v5456_v38, 15  ;;  %vm298_vm6 = vcmp.ge.s32.totalorder %v5457_v48, 1 }
 0x14f   :  { %712 = vmatprep.subr.bf16.mxu1 %v3860_v21  ;;  %742 = vmatprep.mubr.bf16.mxu1 %v4043_v51  ;;  %v4339_v58 = vsel %vm329_vm3, 1.0, %v5461_v49 }
 0x150   :  { %5479 = vst [vmem:[#allocation6_spill] sm:$0xff] %v4339_v58 }
 0x152   :  { %713 = vmatpush1.bf16.msra.mxu1 %v3858_v47 }
 0x153   :  { %3571 = vmatprep.subr.bf16.mxu1 %v5461_v49 }
 0x155   :  { %3562 = vmatmul.mubr.msk.bf16.gmra.mrb[8].mxu0 %vm51_vm0, %v190_v59 }
 0x156   :  { %3567 = vmatprep.mubr.msk.bf16.mxu0 %vm4042_vm2, %v5461_v49 }
 0x218   :  { %v3547_v60 = vpop.f32.mrb[0].mxu0 }
 0x219   :  { %530 = vrot.lane.b32.xlu1 %v3547_v60, %s4040_s7  ;;  %v422_v62 = vpop.f32.mrb[1].mxu0  ;;  %v455_v0 = vrot.slane %v3547_v60, 7 }
 0x21a   :  { %v3548_v63 = vpop.f32.mrb[2].mxu0  ;;  %v453_v3 = vrot.slane %v422_v62, 7 }
 0x21b   :  { %v456_v1 = vrot.slane %v3548_v63, 7  ;;  %v425_v2 = vpop.f32.mrb[3].mxu0 }
 0x21c   :  { %v454_v4 = vrot.slane %v425_v2, 7  ;;  %528 = vrot.lane.b32.xlu0 %v425_v2, %s4040_s7 }
 0x21d   :  { %526 = vrot.lane.b32.xlu1 %v422_v62, %s4040_s7  ;;  %v4241_v5 = vsel %vm461_vm1, %v455_v0, %v456_v1 }
 0x21e   :  { %v4245_v6 = vsel %vm461_vm1, %v453_v3, %v454_v4  ;;  %v4249_v7 = vsel %vm461_vm1, %v454_v4, %v455_v0  ;;  %v5455_v0 = vand.u32 15, %v4332_v55 }
 0x220   :  { %496 = vrot.lane.b32.xlu0 %v425_v2, %s4041_s28  ;;  %v3551_v8 = vpop.f32.mrb[0].mxu1  ;;  %v3559_v9 = vpop.f32.mrb[4].mxu0  ;;  %vm331_vm7 = vcmp.lt.s32.totalorder %v5455_v0, 15 }
 0x221   :  { %494 = vrot.lane.b32.xlu1 %v422_v62, %s4041_s28  ;;  %v438_v11 = vpop.f32.mrb[1].mxu1  ;;  %v1145_v12 = vpop.f32.mrb[5].mxu0  ;;  %v459_v16 = vrot.slane %v3551_v8, 7  ;;  %v1154_v17 = vadd.f32 %v3559_v9, %v3413_v10  ;;  %v4355_v9 = vadd.s32 32, %v4233_v61 }
 0x222   :  { %v457_v13 = vrot.slane %v438_v11, 7  ;;  %v3552_v14 = vpop.f32.mrb[2].mxu1  ;;  %v3560_v15 = vpop.f32.mrb[6].mxu0  ;;  %v1146_v24 = vadd.f32 %v3413_v10, %v1145_v12  ;;  %v4363_v12 = vadd.s32 40, %v4233_v61 }
 0x223   :  { %v460_v18 = vrot.slane %v3552_v14, 7  ;;  %v1157_v19 = vadd.f32 %v3560_v15, %v3413_v10  ;;  %v441_v22 = vpop.f32.mrb[3].mxu1  ;;  %v1148_v23 = vpop.f32.mrb[7].mxu0 }
 0x224   :  { %v458_v25 = vrot.slane %v441_v22, 7  ;;  %v1149_v26 = vadd.f32 %v3413_v10, %v1148_v23  ;;  %534 = vrot.lane.b32.xlu0 %v438_v11, %s4040_s7  ;;  %v4259_v27 = vsel %vm461_vm1, %v456_v1, %v457_v13  ;;  %5481 = vst [vmem:[#allocation8_spill] sm:$0xff] %v4363_v12  ;;  %v4382_v23 = vadd.s32 48, %v4233_v61 }
 0x225   :  { %v4261_v30 = vpack.c.bf16 %v1157_v19, %v1154_v17  ;;  %532 = vrot.lane.b32.xlu1 %v3548_v63, %s4040_s7  ;;  %v4266_v20 = vsel %vm461_vm1, %v460_v18, %v453_v3  ;;  %v4270_v31 = vsel %vm461_vm1, %v459_v16, %v460_v18 }
 0x226   :  { %v4272_v32 = vpack.c.bf16 %v1149_v26, %v1146_v24  ;;  %v4276_v33 = vsel %vm461_vm1, %v457_v13, %v458_v25  ;;  %v4280_v34 = vsel %vm461_vm1, %v458_v25, %v459_v16  ;;  %v4374_v16 = vsel %vm298_vm6, 1.0, %v5461_v49 }
 0x227   :  { %5482 = vst [vmem:[#allocation9_spill] sm:$0xff] %v4374_v16  ;;  %v4388_v26 = vsel %vm331_vm7, 1.0, %v5461_v49 }
 0x228   :  { %v3563_v35 = vpop.f32.mrb[8].mxu0  ;;  %500 = vrot.lane.b32.xlu0 %v3548_v63, %s4041_s28  ;;  %5483 = vst [vmem:[#allocation10_spill] sm:$0xff] %v4388_v26 }
 0x229   :  { %498 = vrot.lane.b32.xlu1 %v3547_v60, %s4041_s28  ;;  %v1161_v37 = vpop.f32.mrb[9].mxu0  ;;  %v1170_v28 = vadd.f32 %v3563_v35, %v3413_v10  ;;  %v4342_v60 = vsel %vm296_vm4, 1.0, %v5461_v49 }
 0x22a   :  { %v3564_v41 = vpop.f32.mrb[10].mxu0  ;;  %v1162_v44 = vadd.f32 %v3413_v10, %v1161_v37  ;;  %5480 = vst [vmem:[#allocation7_spill] sm:$0xff] %v4342_v60  ;;  %v470_v3 = vmul.f32 %v4266_v20, %v4342_v60  ;;  %v5454_v20 = vand.u32 15, %v4363_v12 }
 0x22b   :  { %v1173_v42 = vadd.f32 %v3564_v41, %v3413_v10  ;;  %v1164_v43 = vpop.f32.mrb[11].mxu0  ;;  %v472_v41 = vmul.f32 %v4249_v7, %v4374_v16 }
 0x22c   :  { %v1165_v45 = vadd.f32 %v3413_v10, %v1164_v43  ;;  %538 = vrot.lane.b32.xlu0 %v3551_v8, %s4040_s7  ;;  %v4360_v10 = vld [vmem:[%s5447_s4] ss:$0 sm:$0xff]  ;;  %vm4411_vm9 = vcmp.lt.s32.totalorder %v5454_v20, 15  ;;  %s4044_s4 = smov 88  }
 0x22d   :  { %v4294_v46 = vpack.c.bf16 %v1173_v42, %v1170_v28  ;;  %536 = vrot.lane.b32.xlu1 %v441_v22, %s4040_s7 }
 0x22e   :  { %v4300_v50 = vpack.c.bf16 %v1165_v45, %v1162_v44 }
 0x230   :  { %504 = vrot.lane.b32.xlu0 %v441_v22, %s4041_s28  ;;  %v5460_v22 = vand.u32 15, %v4355_v9 }
 0x231   :  { %502 = vrot.lane.b32.xlu1 %v438_v11, %s4041_s28 }
 0x232   :  { %vm4404_vm8 = vcmp.ge.s32.totalorder %v5460_v22, 1 }
 0x234   :  { %506 = vrot.lane.b32.xlu0 %v3551_v8, %s4041_s28 }
 0x235   :  { %540 = vrot.lane.b32.xlu1 %v3552_v14, %s4040_s7 }
 0x238   :  { %1181 = vrot.lane.b32.xlu0 %v4272_v32, %s4041_s28 }
 0x239   :  { %508 = vrot.lane.b32.xlu1 %v3552_v14, %s4041_s28 }
 0x23c   :  { %1282 = vrot.lane.b32.xlu0 %v4300_v50, %s4041_s28 }
 0x23d   :  { %1232 = vrot.lane.b32.xlu1 %v4261_v30, %s4041_s28 }
 0x241   :  { %1332 = vrot.lane.b32.xlu1 %v4294_v46, %s4041_s28 }
 0x28b   :  { %v531_v54 = vpop.permute.xlu1 %530 }
 0x28c   :  { %v552_v56 = vrot.slane %v531_v54, 1  ;;  %v5459_v54 = vand.u32 15, %v4382_v23 }
 0x28e   :  { %v529_v39 = vpop.permute.xlu0 %528  ;;  %vm302_vm10 = vcmp.ge.s32.totalorder %v5459_v54, 1 }
 0x28f   :  { %v551_v57 = vrot.slane %v529_v39, 1  ;;  %v4336_v59 = vpop.permute.xlu1 %526 }
 0x290   :  { %v550_v63 = vrot.slane %v4336_v59, 1 }
 0x291   :  { %v564_v62 = vsel %vm558_vm5, %v551_v57, %v552_v56 }
 0x292   :  { %v568_v1 = vmul.f32 %v564_v62, %v4339_v58  ;;  %v497_v2 = vpop.permute.xlu0 %496  ;;  %v4419_v62 = vadd.s32 56, %v4233_v61 }
 0x293   :  { %v519_v4 = vadd.f32 %v497_v2, %v4245_v6  ;;  %v495_v8 = vpop.permute.xlu1 %494  ;;  %v565_v6 = vsel %vm558_vm5, %v550_v63, %v551_v57 }
 0x294   :  { %v518_v11 = vadd.f32 %v495_v8, %v470_v3  ;;  %5488 = vst [vmem:[#allocation11_spill] sm:$0xff] %v4419_v62 }
 0x295   :  { %v576_v13 = vadd.f32 %v568_v1, %v519_v4 }
 0x296   :  { %v575_v14 = vadd.f32 %v565_v6, %v518_v11  ;;  %v4371_v15 = vpop.permute.xlu0 %534  ;;  %v4428_v6 = vsel %vm4404_vm8, 1.0, %v5461_v49 }
 0x297   :  { %v4377_v17 = vadd.f32 %v4360_v10, %v576_v13  ;;  %v554_v18 = vrot.slane %v4371_v15, 1  ;;  %v533_v19 = vpop.permute.xlu1 %532  ;;  %5489 = vst [vmem:[#allocation12_spill] sm:$0xff] %v4428_v6 }
 0x298   :  { %v4385_v24 = vadd.f32 %v4360_v10, %v575_v14  ;;  %v553_v25 = vrot.slane %v533_v19, 1  ;;  %v4437_v19 = vsel %vm4411_vm9, 1.0, %v5461_v49 }
 0x299   :  { %v599_v35 = vmul.f32 %v4377_v17, %v4377_v17  ;;  %5490 = vst [vmem:[#allocation13_spill] sm:$0xff] %v4437_v19 }
 0x29a   :  { %v598_v36 = vmul.f32 %v4385_v24, %v4385_v24  ;;  %v562_v37 = vsel %vm558_vm5, %v553_v25, %v554_v18  ;;  %v501_v40 = vpop.permute.xlu0 %500  ;;  %v563_v57 = vsel %vm558_vm5, %v552_v56, %v553_v25 }
 0x29b   :  { %v607_v28 = vmul.f32 %v599_v35, %v4377_v17  ;;  %v570_v42 = vmul.f32 %v562_v37, %v4388_v26  ;;  %v521_v43 = vadd.f32 %v501_v40, %v4241_v5  ;;  %v499_v44 = vpop.permute.xlu1 %498 }
 0x29c   :  { %v606_v21 = vmul.f32 %v598_v36, %v4385_v24  ;;  %v520_v47 = vadd.f32 %v499_v44, %v472_v41  ;;  %v5453_v36 = vand.u32 15, %v4419_v62 }
 0x29d   :  { %v615_v39 = vmul.f32 0.044715, %v607_v28  ;;  %v578_v5 = vadd.f32 %v570_v42, %v521_v43  ;;  %v474_v42 = vmul.f32 %v4259_v27, %v4428_v6 }
 0x29e   :  { %v614_v1 = vmul.f32 0.044715, %v606_v21  ;;  %v577_v2 = vadd.f32 %v563_v57, %v520_v47  ;;  %v539_v3 = vpop.permute.xlu0 %538  ;;  %vm335_vm11 = vcmp.lt.s32.totalorder %v5453_v36, 15 }
 0x29f   :  { %v623_v4 = vadd.f32 %v615_v39, %v4377_v17  ;;  %v4423_v8 = vadd.f32 %v4360_v10, %v578_v5  ;;  %v556_v11 = vrot.slane %v539_v3, 1  ;;  %v537_v13 = vpop.permute.xlu1 %536  ;;  %v4455_v39 = vsel %vm302_vm10, 1.0, %v5461_v49 }
 0x2a0   :  { %v622_v56 = vadd.f32 %v614_v1, %v4385_v24  ;;  %v4432_v14 = vadd.f32 %v4360_v10, %v577_v2  ;;  %v555_v15 = vrot.slane %v537_v13, 1  ;;  %5491 = vst [vmem:[#allocation14_spill] sm:$0xff] %v4455_v39  ;;  %v476_v13 = vmul.f32 %v4280_v34, %v4455_v39 }
 0x2a1   :  { %v631_v25 = vmul.f32 0.7978846, %v623_v4  ;;  %v601_v35 = vmul.f32 %v4423_v8, %v4423_v8 }
 0x2a2   :  { %v630_v37 = vmul.f32 0.7978846, %v622_v56  ;;  %v600_v40 = vmul.f32 %v4432_v14, %v4432_v14  ;;  %v560_v41 = vsel %vm558_vm5, %v555_v15, %v556_v11  ;;  %v505_v28 = vpop.permute.xlu0 %504  ;;  %v561_v27 = vsel %vm558_vm5, %v554_v18, %v555_v15 }
 0x2a3   :  { %3879 = vtanh.f32 %v631_v25  ;;  %v609_v43 = vmul.f32 %v601_v35, %v4423_v8  ;;  %v572_v44 = vmul.f32 %v560_v41, %v4437_v19  ;;  %v523_v45 = vadd.f32 %v505_v28, %v4276_v33  ;;  %v503_v21 = vpop.permute.xlu1 %502 }
 0x2a4   :  { %3881 = vtanh.f32 %v630_v37  ;;  %v608_v47 = vmul.f32 %v600_v40, %v4432_v14  ;;  %v522_v7 = vadd.f32 %v503_v21, %v474_v42  ;;  %v4472_v35 = vsel %vm335_vm11, 1.0, %v5461_v49 }
 0x2a5   :  { %v617_v5 = vmul.f32 0.044715, %v609_v43  ;;  %v580_v57 = vadd.f32 %v572_v44, %v523_v45  ;;  %5492 = vst [vmem:[#allocation15_spill] sm:$0xff] %v4472_v35 }
 0x2a6   :  { %v616_v1 = vmul.f32 0.044715, %v608_v47  ;;  %v579_v2 = vadd.f32 %v561_v27, %v522_v7  ;;  %v507_v3 = vpop.permute.xlu0 %506 }
 0x2a7   :  { %v625_v33 = vadd.f32 %v617_v5, %v4423_v8  ;;  %v4463_v4 = vadd.f32 %v4360_v10, %v580_v57  ;;  %v541_v56 = vpop.permute.xlu1 %540  ;;  %v524_v41 = vadd.f32 %v507_v3, %v476_v13 }
 0x2a8   :  { %v624_v25 = vadd.f32 %v616_v1, %v4432_v14  ;;  %v4469_v18 = vadd.f32 %v4360_v10, %v579_v2  ;;  %v557_v15 = vrot.slane %v541_v56, 1 }
 0x2a9   :  { %v633_v37 = vmul.f32 0.7978846, %v625_v33  ;;  %v603_v40 = vmul.f32 %v4463_v4, %v4463_v4 }
 0x2aa   :  { %v632_v28 = vmul.f32 0.7978846, %v624_v25  ;;  %v602_v34 = vmul.f32 %v4469_v18, %v4469_v18  ;;  %v559_v42 = vsel %vm558_vm5, %v556_v11, %v557_v15  ;;  %v566_v43 = vsel %vm558_vm5, %v557_v15, %v550_v63  ;;  %v1182_v44 = vpop.permute.xlu0 %1181 }
 0x2ab   :  { %v611_v45 = vmul.f32 %v603_v40, %v4463_v4  ;;  %v581_v21 = vadd.f32 %v559_v42, %v524_v41  ;;  %v1188_v47 = vsel %vm1183_vm12, %v1182_v44, 0  ;;  %v574_v7 = vmul.f32 %v566_v43, %v4472_v35  ;;  %v509_v5 = vpop.permute.xlu1 %508 }
 0x2ac   :  { %v610_v57 = vmul.f32 %v602_v34, %v4469_v18  ;;  %v525_v27 = vadd.f32 %v509_v5, %v4270_v31  ;;  %3566 = vmatpush3.bf16.xpose.msra.mxu0 %v1188_v47  ;;  %3883 = vtanh.f32 %v632_v28 }
 0x2ad   :  { %v3880_v11 = vpop.eup %3879  ;;  %v619_v59 = vmul.f32 0.044715, %v611_v45  ;;  %v4490_v1 = vadd.f32 %v4360_v10, %v581_v21  ;;  %3577 = vmatprep.subr.bf16.mxu0 %v5461_v49  ;;  %3885 = vtanh.f32 %v633_v37 }
 0x2ae   :  { %v3882_v63 = vpop.eup %3881  ;;  %v647_v2 = vadd.f32 1.0, %v3880_v11  ;;  %v618_v3 = vmul.f32 0.044715, %v610_v57  ;;  %v582_v33 = vadd.f32 %v574_v7, %v525_v27  ;;  %v1283_v41 = vpop.permute.xlu0 %1282 }
 0x2af   :  { %v646_v13 = vadd.f32 1.0, %v3882_v63  ;;  %v627_v56 = vadd.f32 %v619_v59, %v4463_v4  ;;  %v604_v31 = vmul.f32 %v4490_v1, %v4490_v1  ;;  %v1288_v21 = vsel %vm1183_vm12, %v1283_v41, 0  ;;  %v1233_v7 = vpop.permute.xlu1 %1232 }
 0x2b0   :  { %v655_v25 = vmul.f32 0.5, %v647_v2  ;;  %v626_v15 = vadd.f32 %v618_v3, %v4469_v18  ;;  %v4498_v40 = vadd.f32 %v4360_v10, %v582_v33  ;;  %v1238_v11 = vsel %vm1183_vm12, %v1233_v7, 0 }
 0x2b1   :  { %v654_v28 = vmul.f32 0.5, %v646_v13  ;;  %v635_v34 = vmul.f32 0.7978846, %v627_v56  ;;  %v612_v37 = vmul.f32 %v604_v31, %v4490_v1 }
 0x2b2   :  { %v663_v42 = vmul.f32 %v655_v25, %v4377_v17  ;;  %v634_v43 = vmul.f32 0.7978846, %v626_v15  ;;  %v605_v44 = vmul.f32 %v4498_v40, %v4498_v40 }
 0x2b3   :  { %v662_v45 = vmul.f32 %v654_v28, %v4385_v24  ;;  %3568 = vmatmul.mubr.msk.bf16.vlgmr.msra.gmra.mrb[12].mxu0 %vm1183_vm12, %v4272_v32  ;;  %3887 = vtanh.f32 %v635_v34  ;;  %v620_v10 = vmul.f32 0.044715, %v612_v37 }
 0x2b4   :  { %v613_v47 = vmul.f32 %v605_v44, %v4498_v40  ;;  %3578 = vmatpush3.bf16.xpose.msra.mxu0 %v1288_v21  ;;  %3579 = vmatprep.mubr.msk.bf16.mxu0 %vm4042_vm2, %v5461_v49  ;;  %3889 = vtanh.f32 %v634_v43 }
 0x2b5   :  { %v670_v17 = vpack.c.bf16 %v663_v42, %v662_v45  ;;  %v628_v5 = vadd.f32 %v620_v10, %v4490_v1  ;;  %3589 = vmatprep.subr.bf16.mxu0 %v5461_v49 }
 0x2b6   :  { %v3884_v24 = vpop.eup %3883  ;;  %v621_v57 = vmul.f32 0.044715, %v613_v47 }
 0x2b7   :  { %v3886_v27 = vpop.eup %3885  ;;  %3408 = vmatmul.mubr.msk.bf16.vlgmr.msra.gmra.mrb[4].mxu1 %vm51_vm0, %v670_v17  ;;  %v648_v59 = vadd.f32 1.0, %v3884_v24  ;;  %v636_v63 = vmul.f32 0.7978846, %v628_v5 }
 0x2b8   :  { %v629_v2 = vadd.f32 %v621_v57, %v4498_v40  ;;  %3572 = vmatpush3.bf16.xpose.msra.mxu1 %v1238_v11  ;;  %752 = vmatprep.mubr.bf16.mxu1 %v4043_v51  ;;  %v649_v3 = vadd.f32 1.0, %v3886_v27 }
 0x2b9   :  { %v656_v33 = vmul.f32 0.5, %v648_v59  ;;  %3891 = vtanh.f32 %v636_v63  ;;  %3583 = vmatprep.subr.bf16.mxu1 %v5461_v49 }
 0x2ba   :  { %v637_v13 = vmul.f32 0.7978846, %v629_v2  ;;  %v657_v56 = vmul.f32 0.5, %v649_v3 }
 0x2bb   :  { %3580 = vmatmul.mubr.msk.bf16.vlgmr.msra.gmra.mrb[16].mxu0 %vm1183_vm12, %v4300_v50  ;;  %v664_v31 = vmul.f32 %v656_v33, %v4432_v14 }
 0x2bc   :  { %v665_v25 = vmul.f32 %v657_v56, %v4423_v8  ;;  %3893 = vtanh.f32 %v637_v13  ;;  %3591 = vmatprep.mubr.msk.bf16.mxu0 %vm4042_vm2, %v5461_v49 }
 0x2bd   :  { %v3888_v15 = vpop.eup %3887 }
 0x2be   :  { %v3890_v41 = vpop.eup %3889  ;;  %v671_v28 = vpack.c.bf16 %v665_v25, %v664_v31  ;;  %v651_v34 = vadd.f32 1.0, %v3888_v15 }
 0x2bf   :  { %v650_v37 = vadd.f32 1.0, %v3890_v41 }
 0x2c0   :  { %3409 = vmatmul.mubr.msk.bf16.gmra.mrb[8].mxu1 %vm51_vm0, %v671_v28  ;;  %v659_v42 = vmul.f32 0.5, %v651_v34 }
 0x2c1   :  { %762 = vmatprep.mubr.bf16.mxu1 %v4043_v51  ;;  %v658_v43 = vmul.f32 0.5, %v650_v37 }
 0x2c2   :  { %v667_v44 = vmul.f32 %v659_v42, %v4463_v4  ;;  %v1333_v4 = vpop.permute.xlu1 %1332 }
 0x2c3   :  { %v3892_v14 = vpop.eup %3891  ;;  %v666_v8 = vmul.f32 %v658_v43, %v4469_v18  ;;  %v1338_v18 = vsel %vm1183_vm12, %v1333_v4, 0 }
 0x2c4   :  { %v652_v45 = vadd.f32 1.0, %v3892_v14 }
 0x2c5   :  { %v672_v21 = vpack.c.bf16 %v667_v44, %v666_v8 }
 0x2c6   :  { %v3894_v10 = vpop.eup %3893  ;;  %v660_v7 = vmul.f32 0.5, %v652_v45 }
 0x2c7   :  { %v653_v47 = vadd.f32 1.0, %v3894_v10 }
 0x2c8   :  { %3410 = vmatmul.mubr.msk.bf16.gmra.mrb[12].mxu1 %vm51_vm0, %v672_v21  ;;  %v668_v5 = vmul.f32 %v660_v7, %v4490_v1 }
 0x2c9   :  { %772 = vmatprep.mubr.bf16.mxu1 %v4043_v51  ;;  %v661_v17 = vmul.f32 0.5, %v653_v47 }
 0x2cb   :  { %v669_v24 = vmul.f32 %v661_v17, %v4498_v40 }
 0x2cd   :  { %v673_v57 = vpack.c.bf16 %v669_v24, %v668_v5 }
 0x2d0   :  { %3411 = vmatmul.mubr.msk.bf16.gmra.mrb[16].mxu1 %vm51_vm0, %v673_v57 }
 0x2d1   :  { %3573 = vmatprep.mubr.msk.bf16.mxu1 %vm4042_vm2, %v5461_v49 }
 0x2d8   :  { %3574 = vmatmul.mubr.msk.bf16.vlgmr.msra.gmra.mrb[20].mxu1 %vm1183_vm12, %v4261_v30 }
 0x2d9   :  { %3584 = vmatpush3.bf16.xpose.msra.mxu1 %v1338_v18  ;;  %3585 = vmatprep.mubr.msk.bf16.mxu1 %vm4042_vm2, %v5461_v49 }
 0x2da   :  { %3595 = vmatprep.subr.bf16.mxu1 %v5461_v49 }
 0x2e0   :  { %3586 = vmatmul.mubr.msk.bf16.vlgmr.msra.gmra.mrb[24].mxu1 %vm1183_vm12, %v4294_v46 }
 0x2e1   :  { %3597 = vmatprep.mubr.msk.bf16.mxu1 %vm4042_vm2, %v5461_v49 }
 0x386   :  { %v4545_v51 = vpop.f32.mrb[12].mxu0 }
 0x387   :  { %v3569_v1 = vpop.f32.mrb[13].mxu0  ;;  %v1382_v40 = vsel %vm1381_vm13, %v4545_v51, -inf }
 0x388   :  { %1383 = vmax.xlane.f32.xlu0 %v1382_v40  ;;  %v4549_v27 = vpop.f32.mrb[14].mxu0 }
 0x389   :  { %v3570_v11 = vpop.f32.mrb[15].mxu0  ;;  %v1385_v59 = vsel %vm1381_vm13, %v4549_v27, -inf }
 0x38a   :  { %v4553_v63 = vpop.f32.mrb[4].mxu1  ;;  %1386 = vmax.xlane.f32.xlu1 %v1385_v59 }
 0x38b   :  { %v746_v2 = vpop.f32.mrb[5].mxu1  ;;  %v783_v33 = vrot.slane %v4553_v63, 6 }
 0x38c   :  { %v4555_v3 = vpop.f32.mrb[6].mxu1  ;;  %v968_v31 = vrot.slane %v746_v2, 2 }
 0x38d   :  { %v784_v13 = vrot.slane %v4555_v3, 6  ;;  %v750_v56 = vpop.f32.mrb[7].mxu1 }
 0x38e   :  { %v969_v25 = vrot.slane %v750_v56, 2  ;;  %v4561_v15 = vpop.f32.mrb[16].mxu0 }
 0x38f   :  { %v3581_v41 = vpop.f32.mrb[17].mxu0  ;;  %v4565_v28 = vsel %vm791_vm14, %v783_v33, %v784_v13 }
 0x390   :  { %5493 = vst [vmem:[#allocation16_spill] sm:$0xff] %v4565_v28  ;;  %v4569_v34 = vsel %vm976_vm15, %v968_v31, %v969_v25  ;;  %v4571_v37 = vpop.f32.mrb[18].mxu0 }
 0x391   :  { %5494 = vst [vmem:[#allocation17_spill] sm:$0xff] %v4569_v34  ;;  %v3582_v42 = vpop.f32.mrb[19].mxu0  ;;  %v1397_v43 = vsel %vm1381_vm13, %v4571_v37, -inf }
 0x392   :  { %1398 = vmax.xlane.f32.xlu1 %v1397_v43 }
 0x393   :  { %v4575_v44 = vpop.f32.mrb[8].mxu1 }
 0x394   :  { %v785_v14 = vrot.slane %v4575_v44, 6  ;;  %v756_v8 = vpop.f32.mrb[9].mxu1 }
 0x395   :  { %v970_v45 = vrot.slane %v756_v8, 2  ;;  %v4578_v21 = vpop.f32.mrb[10].mxu1 }
 0x396   :  { %v4582_v10 = vsel %vm791_vm14, %v784_v13, %v785_v14  ;;  %v786_v47 = vrot.slane %v4578_v21, 6  ;;  %v760_v7 = vpop.f32.mrb[11].mxu1 }
 0x397   :  { %5495 = vst [vmem:[#allocation18_spill] sm:$0xff] %v4582_v10  ;;  %v4587_v17 = vsel %vm976_vm15, %v969_v25, %v970_v45  ;;  %v971_v5 = vrot.slane %v760_v7, 2 }
 0x398   :  { %5496 = vst [vmem:[#allocation19_spill] sm:$0xff] %v4587_v17  ;;  %v4591_v24 = vsel %vm791_vm14, %v785_v14, %v786_v47 }
 0x399   :  { %5497 = vst [vmem:[#allocation20_spill] sm:$0xff] %v4591_v24  ;;  %v4595_v57 = vsel %vm976_vm15, %v970_v45, %v971_v5 }
 0x39a   :  { %5498 = vst [vmem:[#allocation21_spill] sm:$0xff] %v4595_v57 }
 0x39b   :  { %v4597_v4 = vpop.f32.mrb[12].mxu1 }
 0x39c   :  { %v787_v18 = vrot.slane %v4597_v4, 6  ;;  %v766_v1 = vpop.f32.mrb[13].mxu1 }
 0x39d   :  { %v972_v40 = vrot.slane %v766_v1, 2  ;;  %v4600_v11 = vpop.f32.mrb[14].mxu1 }
 0x39e   :  { %v4604_v59 = vsel %vm791_vm14, %v786_v47, %v787_v18  ;;  %v788_v2 = vrot.slane %v4600_v11, 6  ;;  %v770_v13 = vpop.f32.mrb[15].mxu1 }
 0x39f   :  { %v4609_v56 = vsel %vm976_vm15, %v971_v5, %v972_v40  ;;  %v973_v25 = vrot.slane %v770_v13, 2 }
 0x3a0   :  { %5499 = vst [vmem:[#allocation22_spill] sm:$0xff] %v4609_v56  ;;  %v4613_v41 = vsel %vm791_vm14, %v787_v18, %v788_v2 }
 0x3a1   :  { %5500 = vst [vmem:[#allocation23_spill] sm:$0xff] %v4613_v41  ;;  %v4617_v42 = vsel %vm976_vm15, %v972_v40, %v973_v25 }
 0x3a2   :  { %5501 = vst [vmem:[#allocation24_spill] sm:$0xff] %v4617_v42 }
 0x3a3   :  { %v4619_v43 = vpop.f32.mrb[16].mxu1 }
 0x3a4   :  { %v789_v14 = vrot.slane %v4619_v43, 6  ;;  %v776_v8 = vpop.f32.mrb[17].mxu1 }
 0x3a5   :  { %v974_v45 = vrot.slane %v776_v8, 2  ;;  %v4622_v47 = vpop.f32.mrb[18].mxu1 }
 0x3a6   :  { %v4626_v7 = vsel %vm791_vm14, %v788_v2, %v789_v14  ;;  %v790_v5 = vrot.slane %v4622_v47, 6  ;;  %v780_v18 = vpop.f32.mrb[19].mxu1 }
 0x3a7   :  { %5502 = vst [vmem:[#allocation25_spill] sm:$0xff] %v4626_v7  ;;  %v4631_v1 = vsel %vm976_vm15, %v973_v25, %v974_v45  ;;  %v975_v40 = vrot.slane %v780_v18, 2 }
 0x3a8   :  { %5503 = vst [vmem:[#allocation26_spill] sm:$0xff] %v4631_v1  ;;  %v4635_v13 = vsel %vm791_vm14, %v790_v5, %v783_v33  ;;  %v4639_v8 = vsel %vm791_vm14, %v789_v14, %v790_v5 }
 0x3a9   :  { %5504 = vst [vmem:[#allocation27_spill] sm:$0xff] %v4635_v13  ;;  %5505 = vst [vmem:[#allocation28_spill] sm:$0xff] %v4639_v8  ;;  %v4643_v2 = vsel %vm976_vm15, %v974_v45, %v975_v40  ;;  %v4647_v36 = vsel %vm976_vm15, %v975_v40, %v968_v31  ;;  %v1394_v45 = vsel %vm1381_vm13, %v4561_v15, -inf }
 0x3aa   :  { %5506 = vst [vmem:[#allocation29_spill] sm:$0xff] %v4643_v2  ;;  %5507 = vst [vmem:[#allocation30_spill] sm:$0xff] %v4647_v36 }
 0x3ab   :  { %v1274_v20 = vpop.f32.mrb[20].mxu1 }
 0x3ac   :  { %v3575_v25 = vpop.f32.mrb[21].mxu1  ;;  %v1388_v18 = vsel %vm1381_vm13, %v1274_v20, -inf }
 0x3ad   :  { %v1277_v0 = vpop.f32.mrb[22].mxu1  ;;  %1389 = vmax.xlane.f32.xlu0 %v1388_v18 }
 0x3ae   :  { %v3576_v33 = vpop.f32.mrb[23].mxu1  ;;  %v1391_v38 = vsel %vm1381_vm13, %v1277_v0, -inf }
 0x3b1   :  { %1392 = vmax.xlane.f32.xlu0 %v1391_v38 }
 0x3b3   :  { %v1374_v14 = vpop.f32.mrb[24].mxu1 }
 0x3b4   :  { %v3587_v5 = vpop.f32.mrb[25].mxu1  ;;  %v1400_v25 = vsel %vm1381_vm13, %v1374_v14, -inf }
 0x3b5   :  { %v4653_v48 = vpop.f32.mrb[26].mxu1  ;;  %1395 = vmax.xlane.f32.xlu0 %v1394_v45 }
 0x3b6   :  { %v3588_v31 = vpop.f32.mrb[27].mxu1  ;;  %v1403_v40 = vsel %vm1381_vm13, %v4653_v48, -inf }
 0x3b7   :  { %1404 = vmax.xlane.f32.xlu1 %v1403_v40 }
 0x3b9   :  { %1401 = vmax.xlane.f32.xlu0 %v1400_v25 }
 0x415   :  { %v1384_v18 = vpop.xlane.xlu0 %1383 }
 0x416   :  { %v1406_v33 = vsub.f32 %v4545_v51, %v1384_v18 }
 0x417   :  { %v1387_v38 = vpop.xlane.xlu1 %1386 }
 0x418   :  { %v1414_v52 = vmul.f32 1.442695, %v1406_v33  ;;  %v1407_v5 = vsub.f32 %v4549_v27, %v1387_v38 }
 0x41a   :  { %3895 = vpow2.f32 %v1414_v52  ;;  %v1416_v54 = vmul.f32 1.442695, %v1407_v5 }
 0x41c   :  { %3897 = vpow2.f32 %v1416_v54 }
 0x41f   :  { %v1399_v22 = vpop.xlane.xlu1 %1398 }
 0x420   :  { %v1411_v45 = vsub.f32 %v4571_v37, %v1399_v22 }
 0x422   :  { %v1424_v31 = vmul.f32 1.442695, %v1411_v45 }
 0x424   :  { %v4661_v49 = vpop.eup %3895  ;;  %3899 = vpow2.f32 %v1424_v31 }
 0x425   :  { %v1430_v40 = vsel %vm1381_vm13, %v4661_v49, 0.0 }
 0x426   :  { %v4665_v25 = vpop.eup %3897  ;;  %1431 = vadd.xlane.f32.xlu0 %v1430_v40 }
 0x427   :  { %v1433_v51 = vsel %vm1381_vm13, %v4665_v25, 0.0 }
 0x428   :  { %1434 = vadd.xlane.f32.xlu1 %v1433_v51 }
 0x42e   :  { %v4669_v52 = vpop.eup %3899 }
 0x42f   :  { %v1445_v54 = vsel %vm1381_vm13, %v4669_v52, 0.0 }
 0x430   :  { %1446 = vadd.xlane.f32.xlu1 %v1445_v54 }
 0x43a   :  { %v1390_v22 = vpop.xlane.xlu0 %1389 }
 0x43b   :  { %v1408_v37 = vsub.f32 %v1274_v20, %v1390_v22 }
 0x43d   :  { %v1418_v38 = vmul.f32 1.442695, %v1408_v37 }
 0x43e   :  { %v1393_v27 = vpop.xlane.xlu0 %1392 }
 0x43f   :  { %v1409_v40 = vsub.f32 %v1277_v0, %v1393_v27 }
 0x441   :  { %1521 = vrot.lane.b32.xlu1 %v4261_v30, %s4040_s7  ;;  %v1420_v51 = vmul.f32 1.442695, %v1409_v40 }
 0x442   :  { %v1396_v18 = vpop.xlane.xlu0 %1395 }
 0x443   :  { %v1410_v33 = vsub.f32 %v4561_v15, %v1396_v18 }
 0x444   :  { %v1405_v27 = vpop.xlane.xlu1 %1404 }
 0x445   :  { %v1422_v5 = vmul.f32 1.442695, %v1410_v33  ;;  %1568 = vrot.lane.b32.xlu1 %v4300_v50, %s4040_s7 }
 0x446   :  { %v1402_v37 = vpop.xlane.xlu0 %1401 }
 0x447   :  { %3901 = vpow2.f32 %v1422_v5  ;;  %v1412_v18 = vsub.f32 %v1374_v14, %v1402_v37  ;;  %v1413_v5 = vsub.f32 %v4653_v48, %v1405_v27 }
 0x448   :  { %3903 = vpow2.f32 %v1418_v38 }
 0x449   :  { %1615 = vrot.lane.b32.xlu1 %v4294_v46, %s4040_s7  ;;  %3905 = vpow2.f32 %v1420_v51  ;;  %v1426_v33 = vmul.f32 1.442695, %v1412_v18 }
 0x44b   :  { %3907 = vpow2.f32 %v1426_v33 }
 0x451   :  { %v4680_v45 = vpop.eup %3901 }
 0x452   :  { %v1442_v20 = vsel %vm1381_vm13, %v4680_v45, 0.0  ;;  %v4684_v31 = vpop.eup %3903 }
 0x453   :  { %1443 = vadd.xlane.f32.xlu0 %v1442_v20  ;;  %v1436_v15 = vsel %vm1381_vm13, %v4684_v31, 0.0  ;;  %v4688_v54 = vpop.eup %3905  ;;  %v1428_v20 = vmul.f32 1.442695, %v1413_v5 }
 0x454   :  { %v1439_v22 = vsel %vm1381_vm13, %v4688_v54, 0.0 }
 0x455   :  { %v4695_v0 = vpop.eup %3907  ;;  %3909 = vpow2.f32 %v1428_v20 }
 0x456   :  { %v1448_v38 = vsel %vm1381_vm13, %v4695_v0, 0.0 }
 0x457   :  { %1437 = vadd.xlane.f32.xlu0 %v1436_v15 }
 0x45f   :  { %v4700_v15 = vpop.eup %3909 }
 0x460   :  { %v1451_v14 = vsel %vm1381_vm13, %v4700_v15, 0.0 }
 0x46d   :  { %1474 = vrot.lane.b32.xlu0 %v4272_v32, %s4040_s7  ;;  %1440 = vadd.xlane.f32.xlu1 %v1439_v22  ;;  %v5508_v22 = vmov 0.0  }
 0x47e   :  { %1715 = vrot.lane.b32.xlu1 %v4261_v30, %s4044_s4 }
 0x48c   :  { %1449 = vadd.xlane.f32.xlu0 %v1448_v38 }
 0x4a2   :  { %1664 = vrot.lane.b32.xlu0 %v4272_v32, %s4044_s4  ;;  %1452 = vadd.xlane.f32.xlu1 %v1451_v14 }
 0x4a6   :  { %1662 = vrot.lane.b32.xlu0 %v4272_v32, %s4045_s21 }
 0x4aa   :  { %1713 = vrot.lane.b32.xlu0 %v4261_v30, %s4045_s21 }
 0x4ae   :  { %1764 = vrot.lane.b32.xlu0 %v4300_v50, %s4045_s21 }
 0x4b3   :  { %1766 = vrot.lane.b32.xlu1 %v4300_v50, %s4044_s4  ;;  %v1432_v37 = vpop.xlane.xlu0 %1431 }
 0x4b5   :  { %v1435_v48 = vpop.xlane.xlu1 %1434 }
 0x4b6   :  { %3911 = vrcp.f32 %v1435_v48 }
 0x4b7   :  { %1817 = vrot.lane.b32.xlu1 %v4294_v46, %s4044_s4  ;;  %3913 = vrcp.f32 %v1432_v37 }
 0x4bb   :  { %1815 = vrot.lane.b32.xlu1 %v4294_v46, %s4045_s21 }
 0x4bd   :  { %v1447_v40 = vpop.xlane.xlu1 %1446 }
 0x4c0   :  { %v3912_v33 = vpop.eup %3911 }
 0x4c1   :  { %v1522_v51 = vpop.permute.xlu1 %1521  ;;  %v3914_v38 = vpop.eup %3913  ;;  %v1457_v5 = vmul.f32 %v3912_v33, %v4665_v25 }
 0x4c2   :  { %3596 = vmatpush3.bf16.msra.mxu1 %v1522_v51  ;;  %v1455_v20 = vmul.f32 %v3914_v38, %v4661_v49 }
 0x4c3   :  { %3607 = vmatprep.subr.bf16.mxu1 %v5508_v22 }
 0x4c4   :  { %v1470_v36 = vpack.c.bf16 %v1457_v5, %v1455_v20 }
 0x4c5   :  { %v1569_v35 = vpop.permute.xlu1 %1568 }
 0x4c9   :  { %v1616_v37 = vpop.permute.xlu1 %1615 }
 0x4e0   :  { %v1444_v18 = vpop.xlane.xlu0 %1443 }
 0x4e1   :  { %3915 = vrcp.f32 %v1444_v18 }
 0x4e2   :  { %3917 = vrcp.f32 %v1447_v40 }
 0x4e4   :  { %v1438_v27 = vpop.xlane.xlu0 %1437 }
 0x4e5   :  { %3919 = vrcp.f32 %v1438_v27 }
 0x4e8   :  { %v1475_v14 = vpop.permute.xlu0 %1474 }
 0x4e9   :  { %3590 = vmatpush3.bf16.msra.mxu0 %v1475_v14 }
 0x4ea   :  { %3601 = vmatprep.subr.bf16.mxu0 %v5508_v22 }
 0x4eb   :  { %v3916_v51 = vpop.eup %3915 }
 0x4ec   :  { %3592 = vmatmul.mubr.msk.bf16.vlgmr.msra.gmra.mrb[20].mxu0 %vm1381_vm13, %v1470_v36  ;;  %v3918_v48 = vpop.eup %3917  ;;  %v1463_v40 = vmul.f32 %v3916_v51, %v4680_v45 }
 0x4ed   :  { %3602 = vmatpush3.bf16.msra.mxu0 %v1569_v35  ;;  %3603 = vmatprep.mubr.msk.bf16.mxu0 %vm4042_vm2, %v5508_v22  ;;  %v1465_v49 = vmul.f32 %v3918_v48, %v4669_v52 }
 0x4ee   :  { %3613 = vmatprep.subr.bf16.mxu0 %v5508_v22 }
 0x4ef   :  { %v1472_v25 = vpack.c.bf16 %v1465_v49, %v1463_v40  ;;  %v3920_v35 = vpop.eup %3919 }
 0x4f0   :  { %v1459_v33 = vmul.f32 %v3920_v35, %v4684_v31 }
 0x4f4   :  { %3604 = vmatmul.mubr.msk.bf16.vlgmr.msra.gmra.mrb[24].mxu0 %vm1381_vm13, %v1472_v25 }
 0x4f5   :  { %3615 = vmatprep.mubr.msk.bf16.mxu0 %vm4042_vm2, %v5508_v22 }
 0x4fa   :  { %v1441_v36 = vpop.xlane.xlu1 %1440 }
 0x4fb   :  { %3921 = vrcp.f32 %v1441_v36 }
 0x4fe   :  { %v1716_v31 = vpop.permute.xlu1 %1715 }
 0x505   :  { %v3922_v18 = vpop.eup %3921 }
 0x506   :  { %v1461_v45 = vmul.f32 %v3922_v18, %v4688_v54  ;;  %v1721_v18 = vsel %vm1183_vm12, %v1716_v31, 0 }
 0x508   :  { %v1471_v38 = vpack.c.bf16 %v1461_v45, %v1459_v33 }
 0x50a   :  { %3598 = vmatmul.mubr.msk.bf16.vlgmr.msra.gmra.mrb[28].mxu1 %vm1381_vm13, %v1471_v38 }
 0x50b   :  { %3608 = vmatpush3.bf16.msra.mxu1 %v1616_v37  ;;  %3609 = vmatprep.mubr.msk.bf16.mxu1 %vm4042_vm2, %v5508_v22 }
 0x50c   :  { %3619 = vmatprep.subr.bf16.mxu1 %v5508_v22 }
 0x519   :  { %v1450_v52 = vpop.xlane.xlu0 %1449 }
 0x51a   :  { %3923 = vrcp.f32 %v1450_v52 }
 0x51d   :  { %v1665_v5 = vpop.permute.xlu0 %1664 }
 0x51e   :  { %v1670_v27 = vsel %vm1183_vm12, %v1665_v5, 0 }
 0x51f   :  { %3614 = vmatpush3.bf16.xpose.msra.mxu0 %v1670_v27 }
 0x520   :  { %3625 = vmatprep.subr.bf16.mxu0 %v5508_v22 }
 0x521   :  { %v1663_v20 = vpop.permute.xlu0 %1662 }
 0x524   :  { %v3924_v40 = vpop.eup %3923 }
 0x525   :  { %v1714_v48 = vpop.permute.xlu0 %1713  ;;  %v1467_v25 = vmul.f32 %v3924_v40, %v4695_v0 }
 0x526   :  { %3616 = vmatmul.mubr.msk.bf16.vlgmr.msra.gmra.mrb[28].mxu0 %vm1183_vm12, %v1663_v20 }
 0x527   :  { %3627 = vmatprep.mubr.msk.bf16.mxu0 %vm4042_vm2, %v5508_v22 }
 0x529   :  { %v1765_v37 = vpop.permute.xlu0 %1764 }
 0x52f   :  { %v1453_v54 = vpop.xlane.xlu1 %1452 }
 0x530   :  { %3925 = vrcp.f32 %v1453_v54 }
 0x533   :  { %v1767_v14 = vpop.permute.xlu1 %1766 }
 0x534   :  { %v1772_v51 = vsel %vm1183_vm12, %v1767_v14, 0 }
 0x535   :  { %3626 = vmatpush3.bf16.xpose.msra.mxu0 %v1772_v51 }
 0x536   :  { %3637 = vmatprep.subr.bf16.mxu0 %v5508_v22 }
 0x537   :  { %v1818_v0 = vpop.permute.xlu1 %1817 }
 0x538   :  { %v1823_v33 = vsel %vm1183_vm12, %v1818_v0, 0 }
 0x53a   :  { %v3926_v49 = vpop.eup %3925 }
 0x53b   :  { %v1469_v36 = vmul.f32 %v3926_v49, %v4700_v15  ;;  %v1816_v15 = vpop.permute.xlu1 %1815 }
 0x53c   :  { %3628 = vmatmul.mubr.msk.bf16.vlgmr.msra.gmra.mrb[32].mxu0 %vm1183_vm12, %v1765_v37 }
 0x53d   :  { %v1473_v35 = vpack.c.bf16 %v1469_v36, %v1467_v25  ;;  %3639 = vmatprep.mubr.msk.bf16.mxu0 %vm4042_vm2, %v5508_v22 }
 0x53f   :  { %3610 = vmatmul.mubr.msk.bf16.vlgmr.msra.gmra.mrb[32].mxu1 %vm1381_vm13, %v1473_v35 }
 0x540   :  { %3620 = vmatpush3.bf16.xpose.msra.mxu1 %v1721_v18  ;;  %3621 = vmatprep.mubr.msk.bf16.mxu1 %vm4042_vm2, %v5508_v22 }
 0x541   :  { %3631 = vmatprep.subr.bf16.mxu1 %v5508_v22 }
 0x547   :  { %3622 = vmatmul.mubr.msk.bf16.vlgmr.msra.gmra.mrb[36].mxu1 %vm1183_vm12, %v1714_v48 }
 0x548   :  { %3632 = vmatpush3.bf16.xpose.msra.mxu1 %v1823_v33  ;;  %3633 = vmatprep.mubr.msk.bf16.mxu1 %vm4042_vm2, %v5508_v22 }
 0x549   :  { %3643 = vmatprep.subr.bf16.mxu1 %v5508_v22 }
 0x54f   :  { %3634 = vmatmul.mubr.msk.bf16.vlgmr.msra.gmra.mrb[40].mxu1 %vm1183_vm12, %v1816_v15 }
 0x550   :  { %3645 = vmatprep.mubr.msk.bf16.mxu1 %vm4042_vm2, %v5508_v22 }
 0x5bf   :  { %v4755_v45 = vpop.f32.mrb[20].mxu0 }
 0x5c0   :  { %v3593_v38 = vpop.f32.mrb[21].mxu0 }
 0x5c1   :  { %v4757_v52 = vpop.f32.mrb[22].mxu0 }
 0x5c2   :  { %v3594_v5 = vpop.f32.mrb[23].mxu0 }
 0x5c7   :  { %v4759_v27 = vpop.f32.mrb[24].mxu0 }
 0x5c8   :  { %v3605_v20 = vpop.f32.mrb[25].mxu0 }
 0x5c9   :  { %v4761_v31 = vpop.f32.mrb[26].mxu0 }
 0x5ca   :  { %v3606_v54 = vpop.f32.mrb[27].mxu0 }
 0x5dd   :  { %v4763_v14 = vpop.f32.mrb[28].mxu1 }
 0x5de   :  { %v3599_v51 = vpop.f32.mrb[29].mxu1 }
 0x5df   :  { %v4765_v48 = vpop.f32.mrb[30].mxu1 }
 0x5e0   :  { %v3600_v40 = vpop.f32.mrb[31].mxu1 }
 0x5f9   :  { %v1706_v49 = vpop.f32.mrb[28].mxu0 }
 0x5fa   :  { %v3617_v25 = vpop.f32.mrb[29].mxu0  ;;  %v1866_v37 = vsel %vm1381_vm13, %v1706_v49, -inf }
 0x5fb   :  { %1867 = vmax.xlane.f32.xlu0 %v1866_v37  ;;  %v1709_v36 = vpop.f32.mrb[30].mxu0 }
 0x5fc   :  { %v3618_v35 = vpop.f32.mrb[31].mxu0  ;;  %v1869_v18 = vsel %vm1381_vm13, %v1709_v36, -inf }
 0x5fd   :  { %1870 = vmax.xlane.f32.xlu1 %v1869_v18 }
 0x60f   :  { %v1808_v0 = vpop.f32.mrb[32].mxu0 }
 0x610   :  { %v3629_v33 = vpop.f32.mrb[33].mxu0 }
 0x611   :  { %v1811_v15 = vpop.f32.mrb[34].mxu0 }
 0x612   :  { %v4769_v38 = vpop.f32.mrb[32].mxu1  ;;  %v3630_v5 = vpop.f32.mrb[35].mxu0  ;;  %v1881_v20 = vsel %vm1381_vm13, %v1811_v15, -inf }
 0x613   :  { %v3611_v54 = vpop.f32.mrb[33].mxu1  ;;  %1882 = vmax.xlane.f32.xlu1 %v1881_v20  ;;  %v1878_v5 = vsel %vm1381_vm13, %v1808_v0, -inf }
 0x614   :  { %v4772_v51 = vpop.f32.mrb[34].mxu1 }
 0x615   :  { %v3612_v40 = vpop.f32.mrb[35].mxu1 }
 0x61a   :  { %v1757_v25 = vpop.f32.mrb[36].mxu1 }
 0x61b   :  { %v3623_v37 = vpop.f32.mrb[37].mxu1  ;;  %v1872_v35 = vsel %vm1381_vm13, %v1757_v25, -inf }
 0x61c   :  { %1873 = vmax.xlane.f32.xlu0 %v1872_v35  ;;  %v1760_v1 = vpop.f32.mrb[38].mxu1 }
 0x61d   :  { %v3624_v18 = vpop.f32.mrb[39].mxu1  ;;  %v1875_v33 = vsel %vm1381_vm13, %v1760_v1, -inf }
 0x620   :  { %1876 = vmax.xlane.f32.xlu0 %v1875_v33 }
 0x622   :  { %v1859_v19 = vpop.f32.mrb[40].mxu1 }
 0x623   :  { %v3635_v62 = vpop.f32.mrb[41].mxu1  ;;  %v1884_v40 = vsel %vm1381_vm13, %v1859_v19, -inf }
 0x624   :  { %v4777_v56 = vpop.f32.mrb[42].mxu1  ;;  %1879 = vmax.xlane.f32.xlu0 %v1878_v5 }
 0x625   :  { %v3636_v20 = vpop.f32.mrb[43].mxu1  ;;  %v1887_v54 = vsel %vm1381_vm13, %v4777_v56, -inf }
 0x626   :  { %1888 = vmax.xlane.f32.xlu1 %v1887_v54 }
 0x628   :  { %1885 = vmax.xlane.f32.xlu0 %v1884_v40 }
 0x688   :  { %v1868_v37 = vpop.xlane.xlu0 %1867 }
 0x689   :  { %v1890_v35 = vsub.f32 %v1706_v49, %v1868_v37 }
 0x68a   :  { %v1871_v18 = vpop.xlane.xlu1 %1870 }
 0x68b   :  { %v1898_v26 = vmul.f32 1.442695, %v1890_v35  ;;  %v1891_v33 = vsub.f32 %v1709_v36, %v1871_v18 }
 0x68d   :  { %3927 = vpow2.f32 %v1898_v26  ;;  %v1900_v62 = vmul.f32 1.442695, %v1891_v33 }
 0x68f   :  { %3929 = vpow2.f32 %v1900_v62 }
 0x697   :  { %v4782_v12 = vpop.eup %3927 }
 0x698   :  { %v1914_v5 = vsel %vm1381_vm13, %v4782_v12, 0.0 }
 0x699   :  { %v4786_v20 = vpop.eup %3929  ;;  %1915 = vadd.xlane.f32.xlu0 %v1914_v5 }
 0x69a   :  { %v1917_v54 = vsel %vm1381_vm13, %v4786_v20, 0.0 }
 0x69b   :  { %1918 = vadd.xlane.f32.xlu1 %v1917_v54 }
 0x6a0   :  { %v1883_v40 = vpop.xlane.xlu1 %1882 }
 0x6a1   :  { %v1895_v49 = vsub.f32 %v1811_v15, %v1883_v40 }
 0x6a3   :  { %v1908_v37 = vmul.f32 1.442695, %v1895_v49 }
 0x6a5   :  { %3931 = vpow2.f32 %v1908_v37 }
 0x6a9   :  { %v1874_v36 = vpop.xlane.xlu0 %1873 }
 0x6aa   :  { %v1892_v18 = vsub.f32 %v1757_v25, %v1874_v36 }
 0x6ac   :  { %v1902_v5 = vmul.f32 1.442695, %v1892_v18 }
 0x6ad   :  { %v1877_v26 = vpop.xlane.xlu0 %1876 }
 0x6af   :  { %v4790_v35 = vpop.eup %3931 }
 0x6b0   :  { %v1929_v33 = vsel %vm1381_vm13, %v4790_v35, 0.0 }
 0x6b1   :  { %1930 = vadd.xlane.f32.xlu1 %v1929_v33  ;;  %v1880_v62 = vpop.xlane.xlu0 %1879 }
 0x6b2   :  { %v1894_v24 = vsub.f32 %v1808_v0, %v1880_v62 }
 0x6b4   :  { %v1906_v17 = vmul.f32 1.442695, %v1894_v24 }
 0x6b5   :  { %v1886_v0 = vpop.xlane.xlu0 %1885 }
 0x6b6   :  { %3933 = vpow2.f32 %v1906_v17  ;;  %v1893_v17 = vsub.f32 %v1760_v1, %v1877_v26  ;;  %v1896_v49 = vsub.f32 %v1859_v19, %v1886_v0  ;;  %v1889_v1 = vpop.xlane.xlu1 %1888 }
 0x6b7   :  { %3935 = vpow2.f32 %v1902_v5  ;;  %v1897_v19 = vsub.f32 %v4777_v56, %v1889_v1 }
 0x6b8   :  { %v1904_v24 = vmul.f32 1.442695, %v1893_v17  ;;  %v1910_v37 = vmul.f32 1.442695, %v1896_v49 }
 0x6b9   :  { %v1912_v26 = vmul.f32 1.442695, %v1897_v19 }
 0x6ba   :  { %3937 = vpow2.f32 %v1904_v24 }
 0x6bb   :  { %3939 = vpow2.f32 %v1910_v37 }
 0x6bc   :  { %3941 = vpow2.f32 %v1912_v26 }
 0x6c0   :  { %v4794_v54 = vpop.eup %3933 }
 0x6c1   :  { %v1926_v15 = vsel %vm1381_vm13, %v4794_v54, 0.0  ;;  %v4798_v40 = vpop.eup %3935 }
 0x6c2   :  { %2005 = vrot.lane.b32.xlu1 %v4261_v30, %s4046_s22  ;;  %1927 = vadd.xlane.f32.xlu0 %v1926_v15  ;;  %v1920_v25 = vsel %vm1381_vm13, %v4798_v40, 0.0 }
 0x6c4   :  { %v4806_v36 = vpop.eup %3937 }
 0x6c5   :  { %v1923_v18 = vsel %vm1381_vm13, %v4806_v36, 0.0  ;;  %v4810_v33 = vpop.eup %3939 }
 0x6c6   :  { %2052 = vrot.lane.b32.xlu1 %v4300_v50, %s4046_s22  ;;  %1921 = vadd.xlane.f32.xlu0 %v1920_v25  ;;  %v1932_v62 = vsel %vm1381_vm13, %v4810_v33, 0.0  ;;  %v4820_v5 = vpop.eup %3941 }
 0x6c7   :  { %v1935_v15 = vsel %vm1381_vm13, %v4820_v5, 0.0 }
 0x6ca   :  { %2099 = vrot.lane.b32.xlu1 %v4294_v46, %s4046_s22 }
 0x6dc   :  { %1958 = vrot.lane.b32.xlu0 %v4272_v32, %s4046_s22 }
 0x6ee   :  { %1924 = vadd.xlane.f32.xlu1 %v1923_v18 }
 0x6fb   :  { %1933 = vadd.xlane.f32.xlu0 %v1932_v62 }
 0x6ff   :  { %2199 = vrot.lane.b32.xlu1 %v4261_v30, %s4047_s23 }
 0x711   :  { %2148 = vrot.lane.b32.xlu0 %v4272_v32, %s4047_s23 }
 0x715   :  { %2146 = vrot.lane.b32.xlu0 %v4272_v32, %s4048_s24 }
 0x719   :  { %2197 = vrot.lane.b32.xlu0 %v4261_v30, %s4048_s24 }
 0x71d   :  { %2248 = vrot.lane.b32.xlu0 %v4300_v50, %s4048_s24 }
 0x723   :  { %1936 = vadd.xlane.f32.xlu1 %v1935_v15 }
 0x726   :  { %v1916_v24 = vpop.xlane.xlu0 %1915 }
 0x728   :  { %v1919_v56 = vpop.xlane.xlu1 %1918 }
 0x729   :  { %3943 = vrcp.f32 %v1919_v56 }
 0x72a   :  { %3945 = vrcp.f32 %v1916_v24 }
 0x733   :  { %v3944_v49 = vpop.eup %3943 }
 0x734   :  { %2250 = vrot.lane.b32.xlu1 %v4300_v50, %s4047_s23  ;;  %v3946_v18 = vpop.eup %3945  ;;  %v1941_v62 = vmul.f32 %v3944_v49, %v4786_v20 }
 0x735   :  { %v1939_v1 = vmul.f32 %v3946_v18, %v4782_v12 }
 0x737   :  { %v1954_v26 = vpack.c.bf16 %v1941_v62, %v1939_v1 }
 0x738   :  { %2301 = vrot.lane.b32.xlu1 %v4294_v46, %s4047_s23 }
 0x73c   :  { %2299 = vrot.lane.b32.xlu1 %v4294_v46, %s4048_s24 }
 0x73e   :  { %v1931_v25 = vpop.xlane.xlu1 %1930 }
 0x742   :  { %v2006_v17 = vpop.permute.xlu1 %2005 }
 0x743   :  { %3644 = vmatpush3.bf16.msra.mxu1 %v2006_v17 }
 0x744   :  { %3655 = vmatprep.subr.bf16.mxu1 %v5508_v22 }
 0x746   :  { %v2053_v17 = vpop.permute.xlu1 %2052 }
 0x74a   :  { %v2100_v24 = vpop.permute.xlu1 %2099 }
 0x74f   :  { %v1928_v0 = vpop.xlane.xlu0 %1927 }
 0x750   :  { %3947 = vrcp.f32 %v1928_v0 }
 0x751   :  { %3949 = vrcp.f32 %v1931_v25 }
 0x753   :  { %v1922_v37 = vpop.xlane.xlu0 %1921 }
 0x754   :  { %3951 = vrcp.f32 %v1922_v37 }
 0x757   :  { %v1959_v19 = vpop.permute.xlu0 %1958 }
 0x758   :  { %3638 = vmatpush3.bf16.msra.mxu0 %v1959_v19 }
 0x759   :  { %3649 = vmatprep.subr.bf16.mxu0 %v5508_v22 }
 0x75a   :  { %v3948_v15 = vpop.eup %3947 }
 0x75b   :  { %3640 = vmatmul.mubr.msk.bf16.vlgmr.msra.gmra.mrb[36].mxu0 %vm1381_vm13, %v1954_v26  ;;  %v3950_v56 = vpop.eup %3949  ;;  %v1947_v25 = vmul.f32 %v3948_v15, %v4794_v54 }
 0x75c   :  { %3650 = vmatpush3.bf16.msra.mxu0 %v2053_v17  ;;  %3651 = vmatprep.mubr.msk.bf16.mxu0 %vm4042_vm2, %v5508_v22  ;;  %v1949_v12 = vmul.f32 %v3950_v56, %v4790_v35 }
 0x75d   :  { %3661 = vmatprep.subr.bf16.mxu0 %v5508_v22 }
 0x75e   :  { %v1956_v20 = vpack.c.bf16 %v1949_v12, %v1947_v25  ;;  %v3952_v49 = vpop.eup %3951 }
 0x75f   :  { %v1943_v62 = vmul.f32 %v3952_v49, %v4798_v40 }
 0x763   :  { %3652 = vmatmul.mubr.msk.bf16.vlgmr.msra.gmra.mrb[40].mxu0 %vm1381_vm13, %v1956_v20 }
 0x764   :  { %3663 = vmatprep.mubr.msk.bf16.mxu0 %vm4042_vm2, %v5508_v22 }
 0x77b   :  { %v1925_v0 = vpop.xlane.xlu1 %1924 }
 0x77c   :  { %3953 = vrcp.f32 %v1925_v0 }
 0x77f   :  { %v2200_v40 = vpop.permute.xlu1 %2199 }
 0x786   :  { %v3954_v18 = vpop.eup %3953 }
 0x787   :  { %v1945_v54 = vmul.f32 %v3954_v18, %v4806_v36  ;;  %v2205_v18 = vsel %vm1183_vm12, %v2200_v40, 0 }
 0x788   :  { %v1934_v1 = vpop.xlane.xlu0 %1933 }
 0x789   :  { %v1955_v19 = vpack.c.bf16 %v1945_v54, %v1943_v62  ;;  %3955 = vrcp.f32 %v1934_v1 }
 0x78b   :  { %3646 = vmatmul.mubr.msk.bf16.vlgmr.msra.gmra.mrb[44].mxu1 %vm1381_vm13, %v1955_v19 }
 0x78c   :  { %3656 = vmatpush3.bf16.msra.mxu1 %v2100_v24  ;;  %v2149_v35 = vpop.permute.xlu0 %2148  ;;  %3657 = vmatprep.mubr.msk.bf16.mxu1 %vm4042_vm2, %v5508_v22 }
 0x78d   :  { %v2154_v26 = vsel %vm1183_vm12, %v2149_v35, 0  ;;  %3667 = vmatprep.subr.bf16.mxu1 %v5508_v22 }
 0x78e   :  { %3662 = vmatpush3.bf16.xpose.msra.mxu0 %v2154_v26 }
 0x78f   :  { %3673 = vmatprep.subr.bf16.mxu0 %v5508_v22 }
 0x790   :  { %v2147_v37 = vpop.permute.xlu0 %2146 }
 0x793   :  { %v3956_v25 = vpop.eup %3955 }
 0x794   :  { %v2198_v56 = vpop.permute.xlu0 %2197  ;;  %v1951_v20 = vmul.f32 %v3956_v25, %v4810_v33 }
 0x795   :  { %3664 = vmatmul.mubr.msk.bf16.vlgmr.msra.gmra.mrb[44].mxu0 %vm1183_vm12, %v2147_v37 }
 0x796   :  { %3675 = vmatprep.mubr.msk.bf16.mxu0 %vm4042_vm2, %v5508_v22 }
 0x798   :  { %v2249_v24 = vpop.permute.xlu0 %2248 }
 0x7b0   :  { %v1937_v36 = vpop.xlane.xlu1 %1936 }
 0x7b1   :  { %3957 = vrcp.f32 %v1937_v36 }
 0x7b4   :  { %v2251_v15 = vpop.permute.xlu1 %2250 }
 0x7b5   :  { %v2256_v17 = vsel %vm1183_vm12, %v2251_v15, 0 }
 0x7b6   :  { %3674 = vmatpush3.bf16.xpose.msra.mxu0 %v2256_v17 }
 0x7b7   :  { %3685 = vmatprep.subr.bf16.mxu0 %v5508_v22 }
 0x7b8   :  { %v2302_v33 = vpop.permute.xlu1 %2301 }
 0x7b9   :  { %v2307_v62 = vsel %vm1183_vm12, %v2302_v33, 0 }
 0x7bb   :  { %v3958_v12 = vpop.eup %3957 }
 0x7bc   :  { %v1953_v0 = vmul.f32 %v3958_v12, %v4820_v5  ;;  %v2300_v5 = vpop.permute.xlu1 %2299 }
 0x7bd   :  { %3676 = vmatmul.mubr.msk.bf16.vlgmr.msra.gmra.mrb[48].mxu0 %vm1183_vm12, %v2249_v24 }
 0x7be   :  { %v1957_v49 = vpack.c.bf16 %v1953_v0, %v1951_v20  ;;  %3687 = vmatprep.mubr.msk.bf16.mxu0 %vm4042_vm2, %v5508_v22 }
 0x7c0   :  { %3658 = vmatmul.mubr.msk.bf16.vlgmr.msra.gmra.mrb[48].mxu1 %vm1381_vm13, %v1957_v49 }
 0x7c1   :  { %3668 = vmatpush3.bf16.xpose.msra.mxu1 %v2205_v18  ;;  %3669 = vmatprep.mubr.msk.bf16.mxu1 %vm4042_vm2, %v5508_v22 }
 0x7c2   :  { %3679 = vmatprep.subr.bf16.mxu1 %v5508_v22 }
 0x7c8   :  { %3670 = vmatmul.mubr.msk.bf16.vlgmr.msra.gmra.mrb[52].mxu1 %vm1183_vm12, %v2198_v56 }
 0x7c9   :  { %3680 = vmatpush3.bf16.xpose.msra.mxu1 %v2307_v62  ;;  %3681 = vmatprep.mubr.msk.bf16.mxu1 %vm4042_vm2, %v5508_v22 }
 0x7ca   :  { %3691 = vmatprep.subr.bf16.mxu1 %v5508_v22 }
 0x7d0   :  { %3682 = vmatmul.mubr.msk.bf16.vlgmr.msra.gmra.mrb[56].mxu1 %vm1183_vm12, %v2300_v5 }
 0x7d1   :  { %3693 = vmatprep.mubr.msk.bf16.mxu1 %vm4042_vm2, %v5508_v22 }
 0x82e   :  { %v4871_v54 = vpop.f32.mrb[36].mxu0 }
 0x82f   :  { %v3641_v1 = vpop.f32.mrb[37].mxu0 }
 0x830   :  { %v4873_v19 = vpop.f32.mrb[38].mxu0 }
 0x831   :  { %v3642_v26 = vpop.f32.mrb[39].mxu0 }
 0x836   :  { %v4877_v37 = vpop.f32.mrb[40].mxu0 }
 0x837   :  { %v3653_v40 = vpop.f32.mrb[41].mxu0 }
 0x838   :  { %v4879_v36 = vpop.f32.mrb[42].mxu0 }
 0x839   :  { %v3654_v17 = vpop.f32.mrb[43].mxu0 }
 0x85e   :  { %v4883_v56 = vpop.f32.mrb[44].mxu1 }
 0x85f   :  { %v3647_v25 = vpop.f32.mrb[45].mxu1 }
 0x860   :  { %v4885_v12 = vpop.f32.mrb[46].mxu1 }
 0x861   :  { %v3648_v24 = vpop.f32.mrb[47].mxu1 }
 0x868   :  { %v2190_v0 = vpop.f32.mrb[44].mxu0 }
 0x869   :  { %v3665_v49 = vpop.f32.mrb[45].mxu0  ;;  %v2350_v18 = vsel %vm1381_vm13, %v2190_v0, -inf }
 0x86a   :  { %2351 = vmax.xlane.f32.xlu0 %v2350_v18  ;;  %v2193_v33 = vpop.f32.mrb[46].mxu0 }
 0x86b   :  { %v3666_v62 = vpop.f32.mrb[47].mxu0  ;;  %v2353_v5 = vsel %vm1381_vm13, %v2193_v33, -inf }
 0x86c   :  { %2354 = vmax.xlane.f32.xlu1 %v2353_v5 }
 0x890   :  { %v2292_v1 = vpop.f32.mrb[48].mxu0 }
 0x891   :  { %v3677_v26 = vpop.f32.mrb[49].mxu0 }
 0x892   :  { %v2295_v40 = vpop.f32.mrb[50].mxu0 }
 0x893   :  { %v4891_v17 = vpop.f32.mrb[48].mxu1  ;;  %v3678_v25 = vpop.f32.mrb[51].mxu0  ;;  %v2365_v15 = vsel %vm1381_vm13, %v2295_v40, -inf }
 0x894   :  { %v3659_v20 = vpop.f32.mrb[49].mxu1  ;;  %2366 = vmax.xlane.f32.xlu1 %v2365_v15  ;;  %v2362_v15 = vsel %vm1381_vm13, %v2292_v1, -inf }
 0x895   :  { %v4894_v24 = vpop.f32.mrb[50].mxu1 }
 0x896   :  { %v3660_v18 = vpop.f32.mrb[51].mxu1 }
 0x89b   :  { %v2241_v62 = vpop.f32.mrb[52].mxu1 }
 0x89c   :  { %v3671_v35 = vpop.f32.mrb[53].mxu1  ;;  %v2356_v5 = vsel %vm1381_vm13, %v2241_v62, -inf }
 0x89d   :  { %2357 = vmax.xlane.f32.xlu0 %v2356_v5  ;;  %v2244_v26 = vpop.f32.mrb[54].mxu1 }
 0x89e   :  { %v3672_v2 = vpop.f32.mrb[55].mxu1  ;;  %v2359_v58 = vsel %vm1381_vm13, %v2244_v26, -inf }
 0x8a1   :  { %2360 = vmax.xlane.f32.xlu0 %v2359_v58 }
 0x8a3   :  { %v2343_v25 = vpop.f32.mrb[56].mxu1 }
 0x8a4   :  { %v3683_v55 = vpop.f32.mrb[57].mxu1  ;;  %v2368_v35 = vsel %vm1381_vm13, %v2343_v25, -inf }
 0x8a5   :  { %v4901_v20 = vpop.f32.mrb[58].mxu1  ;;  %2363 = vmax.xlane.f32.xlu0 %v2362_v15 }
 0x8a6   :  { %v3684_v28 = vpop.f32.mrb[59].mxu1  ;;  %v2371_v18 = vsel %vm1381_vm13, %v4901_v20, -inf }
 0x8a7   :  { %2372 = vmax.xlane.f32.xlu1 %v2371_v18 }
 0x8a9   :  { %2369 = vmax.xlane.f32.xlu0 %v2368_v35 }
 0x8f7   :  { %v2352_v5 = vpop.xlane.xlu0 %2351 }
 0x8f8   :  { %v2374_v2 = vsub.f32 %v2190_v0, %v2352_v5 }
 0x8f9   :  { %v2355_v49 = vpop.xlane.xlu1 %2354 }
 0x8fa   :  { %v2382_v42 = vmul.f32 1.442695, %v2374_v2  ;;  %v2375_v58 = vsub.f32 %v2193_v33, %v2355_v49 }
 0x8fc   :  { %3959 = vpow2.f32 %v2382_v42  ;;  %v2384_v55 = vmul.f32 1.442695, %v2375_v58 }
 0x8fe   :  { %3961 = vpow2.f32 %v2384_v55 }
 0x906   :  { %v4906_v29 = vpop.eup %3959 }
 0x907   :  { %v2398_v28 = vsel %vm1381_vm13, %v4906_v29, 0.0 }
 0x908   :  { %v4910_v15 = vpop.eup %3961  ;;  %2399 = vadd.xlane.f32.xlu0 %v2398_v28 }
 0x909   :  { %v2401_v18 = vsel %vm1381_vm13, %v4910_v15, 0.0 }
 0x90a   :  { %2402 = vadd.xlane.f32.xlu1 %v2401_v18 }
 0x921   :  { %v2367_v35 = vpop.xlane.xlu1 %2366 }
 0x922   :  { %v2379_v0 = vsub.f32 %v2295_v40, %v2367_v35 }
 0x924   :  { %v2392_v5 = vmul.f32 1.442695, %v2379_v0 }
 0x926   :  { %3963 = vpow2.f32 %v2392_v5 }
 0x92a   :  { %v2358_v33 = vpop.xlane.xlu0 %2357 }
 0x92b   :  { %v2376_v2 = vsub.f32 %v2241_v62, %v2358_v33 }
 0x92d   :  { %v2386_v28 = vmul.f32 1.442695, %v2376_v2 }
 0x92e   :  { %v2361_v42 = vpop.xlane.xlu0 %2360 }
 0x930   :  { %v4914_v49 = vpop.eup %3963 }
 0x931   :  { %v2413_v58 = vsel %vm1381_vm13, %v4914_v49, 0.0 }
 0x932   :  { %2414 = vadd.xlane.f32.xlu1 %v2413_v58  ;;  %v2364_v55 = vpop.xlane.xlu0 %2363 }
 0x933   :  { %v2378_v57 = vsub.f32 %v2292_v1, %v2364_v55 }
 0x935   :  { %v2390_v34 = vmul.f32 1.442695, %v2378_v57 }
 0x936   :  { %v2370_v1 = vpop.xlane.xlu0 %2369 }
 0x937   :  { %3965 = vpow2.f32 %v2390_v34  ;;  %v2377_v34 = vsub.f32 %v2244_v26, %v2361_v42  ;;  %v2380_v0 = vsub.f32 %v2343_v25, %v2370_v1  ;;  %v2373_v26 = vpop.xlane.xlu1 %2372 }
 0x938   :  { %3967 = vpow2.f32 %v2386_v28  ;;  %v2381_v25 = vsub.f32 %v4901_v20, %v2373_v26 }
 0x939   :  { %v2388_v57 = vmul.f32 1.442695, %v2377_v34  ;;  %v2394_v5 = vmul.f32 1.442695, %v2380_v0 }
 0x93a   :  { %v2396_v42 = vmul.f32 1.442695, %v2381_v25 }
 0x93b   :  { %3969 = vpow2.f32 %v2388_v57 }
 0x93c   :  { %3971 = vpow2.f32 %v2394_v5 }
 0x93d   :  { %3973 = vpow2.f32 %v2396_v42 }
 0x941   :  { %v4918_v18 = vpop.eup %3965 }
 0x942   :  { %v2410_v40 = vsel %vm1381_vm13, %v4918_v18, 0.0  ;;  %v4922_v35 = vpop.eup %3967 }
 0x943   :  { %2489 = vrot.lane.b32.xlu1 %v4261_v30, %s4049_s3  ;;  %2411 = vadd.xlane.f32.xlu0 %v2410_v40  ;;  %v2404_v62 = vsel %vm1381_vm13, %v4922_v35, 0.0 }
 0x945   :  { %v4930_v33 = vpop.eup %3969 }
 0x946   :  { %v2407_v2 = vsel %vm1381_vm13, %v4930_v33, 0.0  ;;  %v4934_v58 = vpop.eup %3971 }
 0x947   :  { %2536 = vrot.lane.b32.xlu1 %v4300_v50, %s4049_s3  ;;  %2405 = vadd.xlane.f32.xlu0 %v2404_v62  ;;  %v2416_v55 = vsel %vm1381_vm13, %v4934_v58, 0.0  ;;  %v4944_v28 = vpop.eup %3973 }
 0x948   :  { %v2419_v40 = vsel %vm1381_vm13, %v4944_v28, 0.0 }
 0x94b   :  { %2583 = vrot.lane.b32.xlu1 %v4294_v46, %s4049_s3 }
 0x95d   :  { %2442 = vrot.lane.b32.xlu0 %v4272_v32, %s4049_s3 }
 0x96f   :  { %2408 = vadd.xlane.f32.xlu1 %v2407_v2 }
 0x97c   :  { %2417 = vadd.xlane.f32.xlu0 %v2416_v55 }
 0x980   :  { %2683 = vrot.lane.b32.xlu1 %v4261_v30, %s4050_s25 }
 0x992   :  { %2632 = vrot.lane.b32.xlu0 %v4272_v32, %s4050_s25 }
 0x995   :  { %v2400_v57 = vpop.xlane.xlu0 %2399 }
 0x996   :  { %2630 = vrot.lane.b32.xlu0 %v4272_v32, %s4051_s26 }
 0x997   :  { %v2403_v20 = vpop.xlane.xlu1 %2402 }
 0x998   :  { %3975 = vrcp.f32 %v2403_v20 }
 0x999   :  { %3977 = vrcp.f32 %v2400_v57 }
 0x99a   :  { %2681 = vrot.lane.b32.xlu0 %v4261_v30, %s4051_s26 }
 0x99e   :  { %2732 = vrot.lane.b32.xlu0 %v4300_v50, %s4051_s26 }
 0x9a2   :  { %v3976_v0 = vpop.eup %3975 }
 0x9a3   :  { %v3978_v2 = vpop.eup %3977  ;;  %v2425_v55 = vmul.f32 %v3976_v0, %v4910_v15 }
 0x9a4   :  { %2420 = vadd.xlane.f32.xlu1 %v2419_v40  ;;  %v2423_v26 = vmul.f32 %v3978_v2, %v4906_v29 }
 0x9a6   :  { %v2438_v42 = vpack.c.bf16 %v2425_v55, %v2423_v26 }
 0x9b5   :  { %2734 = vrot.lane.b32.xlu1 %v4300_v50, %s4050_s25 }
 0x9b9   :  { %2785 = vrot.lane.b32.xlu1 %v4294_v46, %s4050_s25 }
 0x9bd   :  { %2783 = vrot.lane.b32.xlu1 %v4294_v46, %s4051_s26 }
 0x9bf   :  { %v2415_v62 = vpop.xlane.xlu1 %2414 }
 0x9c3   :  { %v2490_v34 = vpop.permute.xlu1 %2489 }
 0x9c4   :  { %3692 = vmatpush3.bf16.msra.mxu1 %v2490_v34 }
 0x9c5   :  { %3703 = vmatprep.subr.bf16.mxu1 %v5508_v22 }
 0x9c7   :  { %v2537_v34 = vpop.permute.xlu1 %2536 }
 0x9cb   :  { %v2584_v57 = vpop.permute.xlu1 %2583 }
 0x9d0   :  { %v2412_v1 = vpop.xlane.xlu0 %2411 }
 0x9d1   :  { %3979 = vrcp.f32 %v2412_v1 }
 0x9d2   :  { %3981 = vrcp.f32 %v2415_v62 }
 0x9d4   :  { %v2406_v5 = vpop.xlane.xlu0 %2405 }
 0x9d5   :  { %3983 = vrcp.f32 %v2406_v5 }
 0x9d8   :  { %v2443_v25 = vpop.permute.xlu0 %2442 }
 0x9d9   :  { %3686 = vmatpush3.bf16.msra.mxu0 %v2443_v25 }
 0x9da   :  { %3697 = vmatprep.subr.bf16.mxu0 %v5508_v22 }
 0x9db   :  { %v3980_v40 = vpop.eup %3979 }
 0x9dc   :  { %3688 = vmatmul.mubr.msk.bf16.vlgmr.msra.gmra.mrb[52].mxu0 %vm1381_vm13, %v2438_v42  ;;  %v3982_v20 = vpop.eup %3981  ;;  %v2431_v62 = vmul.f32 %v3980_v40, %v4918_v18 }
 0x9dd   :  { %3698 = vmatpush3.bf16.msra.mxu0 %v2537_v34  ;;  %3699 = vmatprep.mubr.msk.bf16.mxu0 %vm4042_vm2, %v5508_v22  ;;  %v2433_v29 = vmul.f32 %v3982_v20, %v4914_v49 }
 0x9de   :  { %3709 = vmatprep.subr.bf16.mxu0 %v5508_v22 }
 0x9df   :  { %v2440_v15 = vpack.c.bf16 %v2433_v29, %v2431_v62  ;;  %v3984_v0 = vpop.eup %3983 }
 0x9e0   :  { %v2427_v55 = vmul.f32 %v3984_v0, %v4922_v35 }
 0x9e4   :  { %3700 = vmatmul.mubr.msk.bf16.vlgmr.msra.gmra.mrb[56].mxu0 %vm1381_vm13, %v2440_v15 }
 0x9e5   :  { %3711 = vmatprep.mubr.msk.bf16.mxu0 %vm4042_vm2, %v5508_v22 }
 0x9fc   :  { %v2409_v1 = vpop.xlane.xlu1 %2408 }
 0x9fd   :  { %3985 = vrcp.f32 %v2409_v1 }
 0xa00   :  { %v2684_v35 = vpop.permute.xlu1 %2683 }
 0xa07   :  { %v3986_v2 = vpop.eup %3985 }
 0xa08   :  { %v2429_v18 = vmul.f32 %v3986_v2, %v4930_v33  ;;  %v2689_v2 = vsel %vm1183_vm12, %v2684_v35, 0 }
 0xa09   :  { %v2418_v26 = vpop.xlane.xlu0 %2417 }
 0xa0a   :  { %v2439_v25 = vpack.c.bf16 %v2429_v18, %v2427_v55  ;;  %3987 = vrcp.f32 %v2418_v26 }
 0xa0c   :  { %3694 = vmatmul.mubr.msk.bf16.vlgmr.msra.gmra.mrb[60].mxu1 %vm1381_vm13, %v2439_v25 }
 0xa0d   :  { %3704 = vmatpush3.bf16.msra.mxu1 %v2584_v57  ;;  %v2633_v49 = vpop.permute.xlu0 %2632  ;;  %3705 = vmatprep.mubr.msk.bf16.mxu1 %vm4042_vm2, %v5508_v22 }
 0xa0e   :  { %v2638_v42 = vsel %vm1183_vm12, %v2633_v49, 0  ;;  %3715 = vmatprep.subr.bf16.mxu1 %v5508_v22 }
 0xa0f   :  { %3710 = vmatpush3.bf16.xpose.msra.mxu0 %v2638_v42 }
 0xa10   :  { %3721 = vmatprep.subr.bf16.mxu0 %v5508_v22 }
 0xa11   :  { %v2631_v5 = vpop.permute.xlu0 %2630 }
 0xa14   :  { %v3988_v62 = vpop.eup %3987 }
 0xa15   :  { %v2682_v20 = vpop.permute.xlu0 %2681  ;;  %v2435_v15 = vmul.f32 %v3988_v62, %v4934_v58 }
 0xa16   :  { %3712 = vmatmul.mubr.msk.bf16.vlgmr.msra.gmra.mrb[60].mxu0 %vm1183_vm12, %v2631_v5 }
 0xa17   :  { %3723 = vmatprep.mubr.msk.bf16.mxu0 %vm4042_vm2, %v5508_v22 }
 0xa19   :  { %v2733_v57 = vpop.permute.xlu0 %2732 }
 0xa31   :  { %v2421_v33 = vpop.xlane.xlu1 %2420 }
 0xa32   :  { %3989 = vrcp.f32 %v2421_v33 }
 0xa35   :  { %v2735_v40 = vpop.permute.xlu1 %2734 }
 0xa36   :  { %v2740_v34 = vsel %vm1183_vm12, %v2735_v40, 0 }
 0xa37   :  { %3722 = vmatpush3.bf16.xpose.msra.mxu0 %v2740_v34 }
 0xa38   :  { %3733 = vmatprep.subr.bf16.mxu0 %v5508_v22 }
 0xa39   :  { %v2786_v58 = vpop.permute.xlu1 %2785 }
 0xa3a   :  { %v2791_v55 = vsel %vm1183_vm12, %v2786_v58, 0 }
 0xa3c   :  { %v3990_v29 = vpop.eup %3989 }
 0xa3d   :  { %v2437_v1 = vmul.f32 %v3990_v29, %v4944_v28  ;;  %v2784_v28 = vpop.permute.xlu1 %2783 }
 0xa3e   :  { %3724 = vmatmul.mubr.msk.bf16.vlgmr.msra.gmra.mrb[64].mxu0 %vm1183_vm12, %v2733_v57 }
 0xa3f   :  { %v2441_v0 = vpack.c.bf16 %v2437_v1, %v2435_v15  ;;  %3735 = vmatprep.mubr.msk.bf16.mxu0 %vm4042_vm2, %v5508_v22 }
 0xa41   :  { %3706 = vmatmul.mubr.msk.bf16.vlgmr.msra.gmra.mrb[64].mxu1 %vm1381_vm13, %v2441_v0 }
 0xa42   :  { %3716 = vmatpush3.bf16.xpose.msra.mxu1 %v2689_v2  ;;  %3717 = vmatprep.mubr.msk.bf16.mxu1 %vm4042_vm2, %v5508_v22 }
 0xa43   :  { %3727 = vmatprep.subr.bf16.mxu1 %v5508_v22 }
 0xa49   :  { %3718 = vmatmul.mubr.msk.bf16.vlgmr.msra.gmra.mrb[68].mxu1 %vm1183_vm12, %v2682_v20 }
 0xa4a   :  { %3728 = vmatpush3.bf16.xpose.msra.mxu1 %v2791_v55  ;;  %3729 = vmatprep.mubr.msk.bf16.mxu1 %vm4042_vm2, %v5508_v22 }
 0xa4b   :  { %3739 = vmatprep.subr.bf16.mxu1 %v5508_v22 }
 0xa51   :  { %3730 = vmatmul.mubr.msk.bf16.vlgmr.msra.gmra.mrb[72].mxu1 %vm1183_vm12, %v2784_v28 }
 0xa52   :  { %3741 = vmatprep.mubr.msk.bf16.mxu1 %vm4042_vm2, %v5508_v22 }
 0xaaf   :  { %v4995_v18 = vpop.f32.mrb[52].mxu0 }
 0xab0   :  { %v3689_v26 = vpop.f32.mrb[53].mxu0 }
 0xab1   :  { %v4997_v25 = vpop.f32.mrb[54].mxu0 }
 0xab2   :  { %v3690_v42 = vpop.f32.mrb[55].mxu0 }
 0xab7   :  { %v5001_v5 = vpop.f32.mrb[56].mxu0 }
 0xab8   :  { %v3701_v35 = vpop.f32.mrb[57].mxu0 }
 0xab9   :  { %v5003_v33 = vpop.f32.mrb[58].mxu0 }
 0xaba   :  { %v3702_v34 = vpop.f32.mrb[59].mxu0 }
 0xadf   :  { %v5007_v20 = vpop.f32.mrb[60].mxu1 }
 0xae0   :  { %v3695_v62 = vpop.f32.mrb[61].mxu1 }
 0xae1   :  { %v5009_v29 = vpop.f32.mrb[62].mxu1 }
 0xae2   :  { %v3696_v57 = vpop.f32.mrb[63].mxu1 }
 0xae9   :  { %v2674_v1 = vpop.f32.mrb[60].mxu0 }
 0xaea   :  { %v3713_v0 = vpop.f32.mrb[61].mxu0  ;;  %v2834_v2 = vsel %vm1381_vm13, %v2674_v1, -inf }
 0xaeb   :  { %2835 = vmax.xlane.f32.xlu0 %v2834_v2  ;;  %v2677_v58 = vpop.f32.mrb[62].mxu0 }
 0xaec   :  { %v3714_v55 = vpop.f32.mrb[63].mxu0  ;;  %v2837_v28 = vsel %vm1381_vm13, %v2677_v58, -inf }
 0xaed   :  { %2838 = vmax.xlane.f32.xlu1 %v2837_v28 }
 0xb11   :  { %v2776_v26 = vpop.f32.mrb[64].mxu0 }
 0xb12   :  { %v3725_v42 = vpop.f32.mrb[65].mxu0 }
 0xb13   :  { %v2779_v35 = vpop.f32.mrb[66].mxu0 }
 0xb14   :  { %v5015_v34 = vpop.f32.mrb[64].mxu1  ;;  %v3726_v62 = vpop.f32.mrb[67].mxu0  ;;  %v2849_v40 = vsel %vm1381_vm13, %v2779_v35, -inf }
 0xb15   :  { %v3707_v15 = vpop.f32.mrb[65].mxu1  ;;  %2850 = vmax.xlane.f32.xlu1 %v2849_v40  ;;  %v2846_v40 = vsel %vm1381_vm13, %v2776_v26, -inf }
 0xb16   :  { %v5018_v57 = vpop.f32.mrb[66].mxu1 }
 0xb17   :  { %v3708_v2 = vpop.f32.mrb[67].mxu1 }
 0xb1c   :  { %v2725_v55 = vpop.f32.mrb[68].mxu1 }
 0xb1d   :  { %v3719_v49 = vpop.f32.mrb[69].mxu1  ;;  %v2840_v28 = vsel %vm1381_vm13, %v2725_v55, -inf }
 0xb1e   :  { %2841 = vmax.xlane.f32.xlu0 %v2840_v28  ;;  %v2728_v42 = vpop.f32.mrb[70].mxu1 }
 0xb1f   :  { %v3720_v8 = vpop.f32.mrb[71].mxu1  ;;  %v2843_v60 = vsel %vm1381_vm13, %v2728_v42, -inf }
 0xb22   :  { %2844 = vmax.xlane.f32.xlu0 %v2843_v60 }
 0xb24   :  { %v2827_v62 = vpop.f32.mrb[72].mxu1 }
 0xb25   :  { %v3731_v13 = vpop.f32.mrb[73].mxu1  ;;  %v2852_v49 = vsel %vm1381_vm13, %v2827_v62, -inf }
 0xb26   :  { %v5025_v15 = vpop.f32.mrb[74].mxu1  ;;  %2847 = vmax.xlane.f32.xlu0 %v2846_v40 }
 0xb27   :  { %v3732_v10 = vpop.f32.mrb[75].mxu1  ;;  %v2855_v2 = vsel %vm1381_vm13, %v5025_v15, -inf }
 0xb28   :  { %2856 = vmax.xlane.f32.xlu1 %v2855_v2 }
 0xb2a   :  { %2853 = vmax.xlane.f32.xlu0 %v2852_v49 }
 0xb78   :  { %v2836_v28 = vpop.xlane.xlu0 %2835 }
 0xb79   :  { %v2858_v8 = vsub.f32 %v2674_v1, %v2836_v28 }
 0xb7a   :  { %v2839_v0 = vpop.xlane.xlu1 %2838 }
 0xb7b   :  { %v2866_v16 = vmul.f32 1.442695, %v2858_v8  ;;  %v2859_v60 = vsub.f32 %v2677_v58, %v2839_v0 }
 0xb7d   :  { %3991 = vpow2.f32 %v2866_v16  ;;  %v2868_v13 = vmul.f32 1.442695, %v2859_v60 }
 0xb7f   :  { %3993 = vpow2.f32 %v2868_v13 }
 0xb87   :  { %v5030_v41 = vpop.eup %3991 }
 0xb88   :  { %v2882_v10 = vsel %vm1381_vm13, %v5030_v41, 0.0 }
 0xb89   :  { %v5034_v40 = vpop.eup %3993  ;;  %2883 = vadd.xlane.f32.xlu0 %v2882_v10 }
 0xb8a   :  { %v2885_v2 = vsel %vm1381_vm13, %v5034_v40, 0.0 }
 0xb8b   :  { %2886 = vadd.xlane.f32.xlu1 %v2885_v2 }
 0xba2   :  { %v2851_v49 = vpop.xlane.xlu1 %2850 }
 0xba3   :  { %v2863_v1 = vsub.f32 %v2779_v35, %v2851_v49 }
 0xba5   :  { %v2876_v28 = vmul.f32 1.442695, %v2863_v1 }
 0xba7   :  { %3995 = vpow2.f32 %v2876_v28 }
 0xbab   :  { %v2842_v58 = vpop.xlane.xlu0 %2841 }
 0xbac   :  { %v2860_v60 = vsub.f32 %v2725_v55, %v2842_v58  ;;  %v5509_v58 = vpack.i.bf16 %v4873_v19, %v4871_v54  ;;  %v5512_v54 = vpack.i.bf16 %v4885_v12, %v4883_v56  ;;  %v5513_v19 = vpack.i.bf16 %v5009_v29, %v5007_v20 }
 0xbae   :  { %v2870_v53 = vmul.f32 1.442695, %v2860_v60 }
 0xbaf   :  { %v2845_v16 = vpop.xlane.xlu0 %2844 }
 0xbb0   :  { %v2861_v0 = vsub.f32 %v2728_v42, %v2845_v16 }
 0xbb1   :  { %v5038_v8 = vpop.eup %3995 }
 0xbb2   :  { %v2872_v13 = vmul.f32 1.442695, %v2861_v0  ;;  %v2897_v39 = vsel %vm1381_vm13, %v5038_v8, 0.0  ;;  %v5510_v0 = vpack.i.bf16 %v4997_v25, %v4995_v18  ;;  %v5514_v18 = vpack.i.bf16 %v4894_v24, %v4891_v17 }
 0xbb3   :  { %2898 = vadd.xlane.f32.xlu1 %v2897_v39  ;;  %v2848_v10 = vpop.xlane.xlu0 %2847 }
 0xbb4   :  { %3997 = vpow2.f32 %v2872_v13  ;;  %v2862_v7 = vsub.f32 %v2776_v26, %v2848_v10 }
 0xbb6   :  { %v2874_v2 = vmul.f32 1.442695, %v2862_v7 }
 0xbb7   :  { %v2854_v6 = vpop.xlane.xlu0 %2853 }
 0xbb8   :  { %3999 = vpow2.f32 %v2874_v2  ;;  %v2864_v35 = vsub.f32 %v2827_v62, %v2854_v6  ;;  %v2857_v6 = vpop.xlane.xlu1 %2856 }
 0xbb9   :  { %4001 = vpow2.f32 %v2870_v53  ;;  %v2865_v62 = vsub.f32 %v5025_v15, %v2857_v6 }
 0xbba   :  { %v2878_v49 = vmul.f32 1.442695, %v2864_v35 }
 0xbbb   :  { %v2880_v16 = vmul.f32 1.442695, %v2865_v62 }
 0xbbc   :  { %4003 = vpow2.f32 %v2878_v49 }
 0xbbd   :  { %4005 = vpow2.f32 %v2880_v16 }
 0xbbe   :  { %v3998_v1 = vpop.eup %3997 }
 0xbbf   :  { %v2891_v42 = vsel %vm1381_vm13, %v3998_v1, 0.0 }
 0xbc0   :  { %2892 = vadd.xlane.f32.xlu1 %v2891_v42 }
 0xbc2   :  { %v5043_v55 = vpop.eup %3999 }
 0xbc3   :  { %v2894_v39 = vsel %vm1381_vm13, %v5043_v55, 0.0  ;;  %v4002_v28 = vpop.eup %4001 }
 0xbc4   :  { %2895 = vadd.xlane.f32.xlu0 %v2894_v39  ;;  %v2888_v26 = vsel %vm1381_vm13, %v4002_v28, 0.0 }
 0xbc6   :  { %v5048_v7 = vpop.eup %4003 }
 0xbc7   :  { %v2900_v53 = vsel %vm1381_vm13, %v5048_v7, 0.0 }
 0xbc8   :  { %2889 = vadd.xlane.f32.xlu0 %v2888_v26 }
 0xbcc   :  { %2901 = vadd.xlane.f32.xlu0 %v2900_v53 }
 0xbd1   :  { %2973 = vrot.lane.b32.xlu1 %v4261_v30, %s4052_s27  ;;  %v5511_v30 = vpack.i.bf16 %v4879_v36, %v4877_v37 }
 0xbd5   :  { %3020 = vrot.lane.b32.xlu1 %v4300_v50, %s4052_s27 }
 0xbe2   :  { %2926 = vrot.lane.b32.xlu0 %v4272_v32, %s4052_s27  ;;  %v4006_v32 = vpop.eup %4005 }
 0xbe3   :  { %v2903_v50 = vsel %vm1381_vm13, %v4006_v32, 0.0 }
 0xbe6   :  { %3792 = vrot.lane.b32.xlu0 %v5509_v58, %s4053_s1 }
 0xbea   :  { %3802 = vrot.lane.b32.xlu0 %v5510_v0, %s4054_s2 }
 0xbee   :  { %3812 = vrot.lane.b32.xlu0 %v5511_v30, %s4053_s1 }
 0xbf9   :  { %2904 = vadd.xlane.f32.xlu1 %v2903_v50  ;;  %v3862_v50 = vld [vmem:[%s5448_s9 + $0x8] sm:$0xff]  }
 0xc0a   :  { %3067 = vrot.lane.b32.xlu1 %v4294_v46, %s4052_s27 }
 0xc0e   :  { %3797 = vrot.lane.b32.xlu1 %v5512_v54, %s4053_s1 }
 0xc12   :  { %3807 = vrot.lane.b32.xlu1 %v5513_v19, %s4054_s2 }
 0xc16   :  { %3817 = vrot.lane.b32.xlu1 %v5514_v18, %s4053_s1  ;;  %v2884_v25 = vpop.xlane.xlu0 %2883 }
 0xc18   :  { %v2887_v37 = vpop.xlane.xlu1 %2886 }
 0xc19   :  { %4007 = vrcp.f32 %v2887_v37 }
 0xc1a   :  { %4009 = vrcp.f32 %v2884_v25 }
 0xc23   :  { %v4008_v12 = vpop.eup %4007 }
 0xc24   :  { %v4010_v17 = vpop.eup %4009  ;;  %v2909_v24 = vmul.f32 %v4008_v12, %v5034_v40 }
 0xc25   :  { %v2907_v29 = vmul.f32 %v4010_v17, %v5030_v41 }
 0xc27   :  { %v2922_v35 = vpack.c.bf16 %v2909_v24, %v2907_v29  ;;  %v5516_v29 = vpack.i.bf16 %v5018_v57, %v5015_v34 }
 0xc40   :  { %v2899_v36 = vpop.xlane.xlu1 %2898 }
 0xc4d   :  { %v2893_v15 = vpop.xlane.xlu1 %2892 }
 0xc4e   :  { %4011 = vrcp.f32 %v2893_v15 }
 0xc51   :  { %v2974_v46 = vpop.permute.xlu1 %2973  ;;  %v2896_v60 = vpop.xlane.xlu0 %2895 }
 0xc52   :  { %3740 = vmatpush3.bf16.msra.mxu1 %v2974_v46  ;;  %4013 = vrcp.f32 %v2896_v60 }
 0xc53   :  { %3751 = vmatprep.subr.bf16.mxu1 %v5508_v22 }
 0xc55   :  { %v2890_v56 = vpop.xlane.xlu0 %2889  ;;  %v3021_v39 = vpop.permute.xlu1 %3020 }
 0xc56   :  { %4015 = vrcp.f32 %v2890_v56  ;;  %v5515_v56 = vpack.i.bf16 %v5003_v33, %v5001_v5 }
 0xc57   :  { %4017 = vrcp.f32 %v2899_v36 }
 0xc58   :  { %v4012_v10 = vpop.eup %4011 }
 0xc59   :  { %v2902_v20 = vpop.xlane.xlu0 %2901  ;;  %v2913_v42 = vmul.f32 %v4012_v10, %v3998_v1 }
 0xc5a   :  { %4019 = vrcp.f32 %v2902_v20 }
 0xc5c   :  { %v4014_v2 = vpop.eup %4013 }
 0xc5d   :  { %v2927_v13 = vpop.permute.xlu0 %2926  ;;  %v2915_v41 = vmul.f32 %v4014_v2, %v5043_v55 }
 0xc5e   :  { %3734 = vmatpush3.bf16.msra.mxu0 %v2927_v13 }
 0xc5f   :  { %3745 = vmatprep.subr.bf16.mxu0 %v5508_v22 }
 0xc60   :  { %v4016_v49 = vpop.eup %4015 }
 0xc61   :  { %v2911_v26 = vmul.f32 %v4016_v49, %v4002_v28  ;;  %3736 = vmatmul.mubr.msk.bf16.vlgmr.msra.gmra.mrb[68].mxu0 %vm1381_vm13, %v2922_v35  ;;  %v4018_v53 = vpop.eup %4017 }
 0xc62   :  { %3746 = vmatpush3.bf16.msra.mxu0 %v3021_v39  ;;  %3747 = vmatprep.mubr.msk.bf16.mxu0 %vm4042_vm2, %v5508_v22  ;;  %v2917_v6 = vmul.f32 %v4018_v53, %v5038_v8  ;;  %v3861_v8 = vld [vmem:[%s5448_s9] sm:$0xff]   ;;  %s4056_s9 = smov 32  }
 0xc63   :  { %v2923_v40 = vpack.c.bf16 %v2913_v42, %v2911_v26  ;;  %3757 = vmatprep.subr.bf16.mxu0 %v3861_v8 }
 0xc64   :  { %v2924_v1 = vpack.c.bf16 %v2917_v6, %v2915_v41  ;;  %v4020_v58 = vpop.eup %4019 }
 0xc65   :  { %3742 = vmatmul.mubr.msk.bf16.vlgmr.msra.gmra.mrb[76].mxu1 %vm1381_vm13, %v2923_v40  ;;  %v2919_v55 = vmul.f32 %v4020_v58, %v5048_v7 }
 0xc66   :  { %3753 = vmatprep.mubr.msk.bf16.mxu1 %vm4042_vm2, %v5508_v22  ;;  %vm3226_vm2 = vcmask 195584  }
 0xc69   :  { %3748 = vmatmul.mubr.msk.bf16.vlgmr.msra.gmra.mrb[72].mxu0 %vm1381_vm13, %v2924_v1 }
 0xc6a   :  { %3758 = vmatpush3.bf16.msra.mxu0 %v3861_v8 }
 0xc6b   :  { %3759 = vmatprep.subr.bf16.mxu0 %v3862_v50 }
 0xc6e   :  { %3760 = vmatpush3.bf16.msra.mxu0 %v3862_v50 }
 0xc86   :  { %v2905_v28 = vpop.xlane.xlu1 %2904 }
 0xc87   :  { %4021 = vrcp.f32 %v2905_v28 }
 0xc8a   :  { %v3068_v62 = vpop.permute.xlu1 %3067 }
 0xc8b   :  { %3752 = vmatpush3.bf16.msra.mxu1 %v3068_v62 }
 0xc91   :  { %v4022_v16 = vpop.eup %4021 }
 0xc92   :  { %v2921_v0 = vmul.f32 %v4022_v16, %v4006_v32 }
 0xc94   :  { %v2925_v30 = vpack.c.bf16 %v2921_v0, %v2919_v55 }
 0xc96   :  { %3754 = vmatmul.mubr.msk.bf16.vlgmr.msra.gmra.mrb[80].mxu1 %vm1381_vm13, %v2925_v30 }
 0xd34   :  { %v2966_v54 = vpop.f32.mrb[68].mxu0 }
 0xd35   :  { %v3737_v19 = vpop.f32.mrb[69].mxu0 }
 0xd36   :  { %v2969_v18 = vpop.f32.mrb[70].mxu0 }
 0xd37   :  { %v3821_v7 = vpack.i.bf16 %v2969_v18, %v2966_v54  ;;  %v3738_v32 = vpop.f32.mrb[71].mxu0 }
 0xd38   :  { %v3013_v37 = vpop.f32.mrb[76].mxu1 }
 0xd39   :  { %v3743_v36 = vpop.f32.mrb[77].mxu1  ;;  %3822 = vrot.lane.b32.xlu0 %v3821_v7, %s4055_s14 }
 0xd3a   :  { %v3016_v25 = vpop.f32.mrb[78].mxu1 }
 0xd3b   :  { %v3831_v15 = vpack.i.bf16 %v3016_v25, %v3013_v37  ;;  %v3744_v46 = vpop.f32.mrb[79].mxu1 }
 0xd3c   :  { %v3060_v60 = vpop.f32.mrb[72].mxu0 }
 0xd3d   :  { %3832 = vrot.lane.b32.xlu1 %v3831_v15, %s4055_s14  ;;  %3827 = vrot.lane.b32.xlu0 %v5515_v56, %s4054_s2  ;;  %v3749_v12 = vpop.f32.mrb[73].mxu0 }
 0xd3e   :  { %v3063_v20 = vpop.f32.mrb[74].mxu0 }
 0xd3f   :  { %v3841_v17 = vpack.i.bf16 %v3063_v20, %v3060_v60  ;;  %v3750_v24 = vpop.f32.mrb[75].mxu0 }
 0xd41   :  { %3837 = vrot.lane.b32.xlu1 %v5516_v29, %s4054_s2  ;;  %3842 = vrot.lane.b32.xlu0 %v3841_v17, %s4055_s14 }
 0xd45   :  { %824 = vrot.lane.b32.xlu0 %v4553_v63, %s4041_s28 }
 0xd49   :  { %828 = vrot.lane.b32.xlu0 %v4575_v44, %s4041_s28 }
 0xd4d   :  { %832 = vrot.lane.b32.xlu0 %v4597_v4, %s4041_s28 }
 0xd51   :  { %836 = vrot.lane.b32.xlu0 %v4619_v43, %s4041_s28 }
 0xd55   :  { %912 = vrot.lane.b32.xlu0 %v4553_v63, %s4056_s9 }
 0xd59   :  { %916 = vrot.lane.b32.xlu0 %v4575_v44, %s4056_s9 }
 0xd5d   :  { %920 = vrot.lane.b32.xlu0 %v4597_v4, %s4056_s9 }
 0xd61   :  { %924 = vrot.lane.b32.xlu0 %v4619_v43, %s4056_s9 }
 0xd65   :  { %880 = vrot.lane.b32.xlu0 %v4553_v63, %s4040_s7  ;;  %v3793_v63 = vpop.permute.xlu0 %3792 }
 0xd66   :  { %v3795_v10 = vunpack.i.h.bf16 %v3793_v63  ;;  %v3794_v2 = vunpack.i.l.bf16 %v3793_v63 }
 0xd69   :  { %v3107_v5 = vpop.f32.mrb[80].mxu1  ;;  %884 = vrot.lane.b32.xlu0 %v4575_v44, %s4040_s7  ;;  %v3798_v44 = vpop.permute.xlu1 %3797 }
 0xd6a   :  { %v3755_v33 = vpop.f32.mrb[81].mxu1  ;;  %v3800_v26 = vunpack.i.h.bf16 %v3798_v44  ;;  %v3799_v53 = vunpack.i.l.bf16 %v3798_v44 }
 0xd6b   :  { %v3110_v34 = vpop.f32.mrb[82].mxu1 }
 0xd6c   :  { %v3846_v57 = vpack.i.bf16 %v3110_v34, %v3107_v5  ;;  %v3756_v13 = vpop.f32.mrb[83].mxu1  ;;  %v3213_v30 = vsel %vm1183_vm12, %v4765_v48, %v3800_v26  ;;  %v3212_v8 = vsel %vm1183_vm12, %v4763_v14, %v3799_v53 }
 0xd6d   :  { %888 = vrot.lane.b32.xlu0 %v4597_v4, %s4040_s7  ;;  %v3803_v4 = vpop.permute.xlu0 %3802 }
 0xd6e   :  { %3847 = vrot.lane.b32.xlu1 %v3846_v57, %s4055_s14  ;;  %v3805_v49 = vunpack.i.h.bf16 %v3803_v4  ;;  %v3804_v42 = vunpack.i.l.bf16 %v3803_v4 }
 0xd71   :  { %892 = vrot.lane.b32.xlu0 %v4619_v43, %s4040_s7  ;;  %v3808_v43 = vpop.permute.xlu1 %3807  ;;  %v3813_v35 = vpop.permute.xlu0 %3812 }
 0xd72   :  { %826 = vrot.lane.b32.xlu1 %v4555_v3, %s4041_s28  ;;  %v3810_v1 = vunpack.i.h.bf16 %v3808_v43  ;;  %v3809_v28 = vunpack.i.l.bf16 %v3808_v43  ;;  %v3815_v58 = vunpack.i.h.bf16 %v3813_v35  ;;  %v3814_v16 = vunpack.i.l.bf16 %v3813_v35 }
 0xd74   :  { %v3220_v19 = vsel %vm1381_vm13, %v3212_v8, %v3809_v28  ;;  %v3221_v18 = vsel %vm1381_vm13, %v3213_v30, %v3810_v1  ;;  %v3215_v48 = vsel %vm1183_vm12, %v4761_v31, %v3815_v58  ;;  %v3214_v14 = vsel %vm1183_vm12, %v4759_v27, %v3814_v16  ;;  %v5521_v8 = vld [vmem:[#allocation4_spill] sm:$0xff] }
 0xd75   :  { %v3818_v39 = vpop.permute.xlu1 %3817  ;;  %v5518_v1 = vand.u32 15, %v4382_v23  ;;  %v5520_v23 = vand.u32 15, %v4233_v61  ;;  %v3412_v61 = vld [vmem:[%s5449_s6] ss:$0 sm:$0xff] }
 0xd76   :  { %830 = vrot.lane.b32.xlu1 %v4578_v21, %s4041_s28  ;;  %v3820_v57 = vunpack.i.h.bf16 %v3818_v39  ;;  %v3819_v13 = vunpack.i.l.bf16 %v3818_v39 }
 0xd77   :  { %vm318_vm4 = vcmp.ge.s32.totalorder %v5518_v1, 2  ;;  %vm312_vm6 = vcmp.ge.s32.totalorder %v5520_v23, 2 }
 0xd7a   :  { %834 = vrot.lane.b32.xlu1 %v4600_v11, %s4041_s28 }
 0xd7e   :  { %838 = vrot.lane.b32.xlu1 %v4622_v47, %s4041_s28 }
 0xd82   :  { %914 = vrot.lane.b32.xlu1 %v4555_v3, %s4056_s9 }
 0xd86   :  { %918 = vrot.lane.b32.xlu1 %v4578_v21, %s4056_s9 }
 0xd8a   :  { %922 = vrot.lane.b32.xlu1 %v4600_v11, %s4056_s9 }
 0xd8e   :  { %926 = vrot.lane.b32.xlu1 %v4622_v47, %s4056_s9 }
 0xd92   :  { %882 = vrot.lane.b32.xlu1 %v4555_v3, %s4040_s7  ;;  %v3211_v3 = vsel %vm1183_vm12, %v4757_v52, %v3795_v10  ;;  %v3217_v10 = vsel %vm1183_vm12, %v4772_v51, %v3820_v57  ;;  %v5517_v51 = vand.u32 15, %v4355_v9 }
 0xd93   :  { %v3219_v6 = vsel %vm1381_vm13, %v3211_v3, %v3805_v49 }
 0xd94   :  { %vm316_vm3 = vcmp.ge.s32.totalorder %v5517_v51, 2 }
 0xd96   :  { %886 = vrot.lane.b32.xlu1 %v4578_v21, %s4040_s7  ;;  %v3210_v21 = vsel %vm1183_vm12, %v4755_v45, %v3794_v2  ;;  %v3216_v2 = vsel %vm1183_vm12, %v4769_v38, %v3819_v13  ;;  %v5528_v13 = vld [vmem:[#allocation27_spill] sm:$0xff] }
 0xd97   :  { %v3218_v40 = vsel %vm1381_vm13, %v3210_v21, %v3804_v42 }
 0xd9a   :  { %890 = vrot.lane.b32.xlu1 %v4600_v11, %s4040_s7 }
 0xd9e   :  { %894 = vrot.lane.b32.xlu1 %v4622_v47, %s4040_s7 }
 0xdab   :  { %v3823_v11 = vpop.permute.xlu0 %3822 }
 0xdac   :  { %v3825_v47 = vunpack.i.h.bf16 %v3823_v11  ;;  %v3824_v41 = vunpack.i.l.bf16 %v3823_v11 }
 0xdae   :  { %v3227_v62 = vsel %vm3226_vm2, %v3218_v40, %v3824_v41  ;;  %v3228_v52 = vsel %vm3226_vm2, %v3219_v6, %v3825_v47  ;;  %v324_v47 = vsel %vm316_vm3, 1.0, %v5508_v22 }
 0xdaf   :  { %v3235_v45 = vpack.c.bf16 %v3228_v52, %v3227_v62  ;;  %v3833_v55 = vpop.permute.xlu1 %3832  ;;  %v3828_v0 = vpop.permute.xlu0 %3827  ;;  %v804_v62 = vmul.f32 %v4604_v59, %v324_v47  ;;  %v5519_v52 = vld [vmem:[#allocation12_spill] sm:$0xff] }
 0xdb0   :  { %v3835_v50 = vunpack.i.h.bf16 %v3833_v55  ;;  %v3834_v54 = vunpack.i.l.bf16 %v3833_v55  ;;  %v3830_v7 = vunpack.i.h.bf16 %v3828_v0  ;;  %v3829_v32 = vunpack.i.l.bf16 %v3828_v0 }
 0xdb1   :  { %3761 = vmatprep.mubr.msk.bf16.mxu0 %vm51_vm0, %v3235_v45  ;;  %v326_v45 = vsel %vm318_vm4, 1.0, %v5508_v22 }
 0xdb2   :  { %v3230_v37 = vsel %vm3226_vm2, %v3221_v18, %v3835_v50  ;;  %v3229_v36 = vsel %vm3226_vm2, %v3220_v19, %v3834_v54  ;;  %v3222_v56 = vsel %vm1381_vm13, %v3214_v14, %v3829_v32  ;;  %v3223_v12 = vsel %vm1381_vm13, %v3215_v48, %v3830_v7  ;;  %v5523_v32 = vld [vmem:[#allocation25_spill] sm:$0xff]  ;;  %v5525_v48 = vld [vmem:[#allocation23_spill] sm:$0xff] }
 0xdb3   :  { %v3236_v25 = vpack.c.bf16 %v3230_v37, %v3229_v36  ;;  %v3843_v15 = vpop.permute.xlu0 %3842  ;;  %v3838_v34 = vpop.permute.xlu1 %3837  ;;  %v5522_v50 = vand.u32 15, %v5521_v8  ;;  %v806_v37 = vmul.f32 %v5523_v32, %v326_v45  ;;  %v5524_v36 = vld [vmem:[#allocation14_spill] sm:$0xff] }
 0xdb4   :  { %v3845_v46 = vunpack.i.h.bf16 %v3843_v15  ;;  %v3844_v60 = vunpack.i.l.bf16 %v3843_v15  ;;  %v3840_v44 = vunpack.i.h.bf16 %v3838_v34  ;;  %v3839_v4 = vunpack.i.l.bf16 %v3838_v34  ;;  %v5527_v34 = vld [vmem:[#allocation18_spill] sm:$0xff] }
 0xdb5   :  { %3762 = vmatmul.mubr.msk.bf16.vlgmr.msra.gmra.mrb[76].mxu0 %vm51_vm0, %v3236_v25  ;;  %vm314_vm7 = vcmp.ge.s32.totalorder %v5522_v50, 2 }
 0xdb6   :  { %v3231_v20 = vsel %vm3226_vm2, %v3222_v56, %v3844_v60  ;;  %v3232_v17 = vsel %vm3226_vm2, %v3223_v12, %v3845_v46  ;;  %v3225_v42 = vsel %vm1381_vm13, %v3217_v10, %v3840_v44  ;;  %v3224_v3 = vsel %vm1381_vm13, %v3216_v2, %v3839_v4  ;;  %v5529_v4 = vld [vmem:[#allocation7_spill] sm:$0xff]  ;;  %v5530_v2 = vld [vmem:[#allocation28_spill] sm:$0xff] }
 0xdb7   :  { %v3237_v24 = vpack.c.bf16 %v3232_v17, %v3231_v20  ;;  %v5178_v29 = vpop.permute.xlu0 %824  ;;  %v320_v46 = vsel %vm312_vm6, 1.0, %v5508_v22  ;;  %v322_v60 = vsel %vm314_vm7, 1.0, %v5508_v22  ;;  %v5526_v20 = vld [vmem:[#allocation9_spill] sm:$0xff] }
 0xdb8   :  { %v848_v56 = vrot.slane %v5178_v29, 7  ;;  %v802_v57 = vmul.f32 %v5527_v34, %v322_v60  ;;  %v800_v44 = vmul.f32 %v5528_v13, %v320_v46  ;;  %v5536_v46 = vld [vmem:[#allocation16_spill] sm:$0xff] }
 0xdb9   :  { %3765 = vmatprep.mubr.msk.bf16.mxu0 %vm51_vm0, %v3237_v24 }
 0xdbb   :  { %v5180_v31 = vpop.permute.xlu0 %828 }
 0xdbc   :  { %v850_v55 = vrot.slane %v5180_v31, 7 }
 0xdbf   :  { %v833_v27 = vpop.permute.xlu0 %832 }
 0xdc0   :  { %v852_v41 = vrot.slane %v833_v27, 7 }
 0xdc3   :  { %v837_v5 = vpop.permute.xlu0 %836 }
 0xdc4   :  { %v854_v0 = vrot.slane %v837_v5, 7 }
 0xdc7   :  { %v5182_v33 = vpop.permute.xlu0 %912 }
 0xdcb   :  { %v5184_v63 = vpop.permute.xlu0 %916 }
 0xdcf   :  { %v5192_v21 = vpop.permute.xlu0 %920 }
 0xdd3   :  { %v5204_v40 = vpop.permute.xlu0 %924 }
 0xdd4   :  { %v942_v32 = vrot.slane %v5204_v40, 1 }
 0xdd7   :  { %v881_v19 = vpop.permute.xlu0 %880 }
 0xddb   :  { %v885_v29 = vpop.permute.xlu0 %884 }
 0xde0   :  { %v3848_v43 = vpop.permute.xlu1 %3847 }
 0xde1   :  { %v3850_v35 = vunpack.i.h.bf16 %v3848_v43  ;;  %v3849_v49 = vunpack.i.l.bf16 %v3848_v43 }
 0xde3   :  { %v3234_v39 = vsel %vm3226_vm2, %v3225_v42, %v3850_v35  ;;  %v3233_v11 = vsel %vm3226_vm2, %v3224_v3, %v3849_v49 }
 0xde4   :  { %v3238_v26 = vpack.c.bf16 %v3234_v39, %v3233_v11  ;;  %v5196_v53 = vpop.permute.xlu1 %826  ;;  %v936_v39 = vrot.slane %v5182_v33, 1  ;;  %v940_v33 = vrot.slane %v5192_v21, 1 }
 0xde5   :  { %v849_v28 = vrot.slane %v5196_v53, 7  ;;  %v938_v53 = vrot.slane %v5184_v63, 1 }
 0xde6   :  { %3766 = vmatmul.mubr.msk.bf16.gmra.mrb[80].mxu0 %vm51_vm0, %v3238_v26 }
 0xde7   :  { %v861_v59 = vsel %vm461_vm1, %v849_v28, %v850_v55 }
 0xde8   :  { %v5201_v38 = vpop.permute.xlu1 %830  ;;  %v866_v17 = vmul.f32 %v861_v59, %v5526_v20  ;;  %v862_v59 = vsel %vm461_vm1, %v848_v56, %v849_v28  ;;  %v5537_v20 = vld [vmem:[#allocation5_spill] sm:$0xff] }
 0xde9   :  { %v851_v6 = vrot.slane %v5201_v38, 7  ;;  %v873_v60 = vadd.f32 %v862_v59, %v5536_v46 }
 0xdea   :  { %v874_v42 = vadd.f32 %v866_v17, %v802_v57  ;;  %v5538_v17 = vand.u32 15, %v5537_v20  ;;  %v5540_v57 = vld [vmem:[#allocation29_spill] sm:$0xff] }
 0xdeb   :  { %v859_v9 = vsel %vm461_vm1, %v851_v6, %v852_v41  ;;  %v860_v40 = vsel %vm461_vm1, %v850_v55, %v851_v6  ;;  %v5543_v55 = vld [vmem:[#allocation8_spill] sm:$0xff] }
 0xdec   :  { %v868_v58 = vmul.f32 %v859_v9, %v5519_v52  ;;  %v835_v16 = vpop.permute.xlu1 %834  ;;  %v906_v1 = vadd.f32 %v885_v29, %v874_v42  ;;  %v889_v9 = vpop.permute.xlu0 %888  ;;  %v5531_v52 = vld [vmem:[#allocation17_spill] sm:$0xff]  ;;  %vm347_vm9 = vcmp.lt.s32.totalorder %v5538_v17, 14  ;;  %v5545_v42 = vld [vmem:[#allocation10_spill] sm:$0xff] }
 0xded   :  { %v853_v30 = vrot.slane %v835_v16, 7 }
 0xdee   :  { %v876_v54 = vadd.f32 %v868_v58, %v804_v62 }
 0xdef   :  { %v857_v18 = vsel %vm461_vm1, %v853_v30, %v854_v0  ;;  %v858_v7 = vsel %vm461_vm1, %v852_v41, %v853_v30  ;;  %v5532_v30 = vld [vmem:[#allocation21_spill] sm:$0xff] }
 0xdf0   :  { %v870_v25 = vmul.f32 %v857_v18, %v5524_v36  ;;  %v839_v15 = vpop.permute.xlu1 %838  ;;  %v5233_v14 = vadd.f32 %v858_v7, %v5525_v48  ;;  %v908_v63 = vadd.f32 %v889_v9, %v876_v54  ;;  %v5533_v18 = vld [vmem:[#allocation3_spill] sm:$0xff] }
 0xdf1   :  { %v855_v12 = vrot.slane %v839_v15, 7  ;;  %v5534_v7 = vand.u32 15, %v5533_v18  ;;  %v5551_v18 = vld [vmem:[#allocation15_spill] sm:$0xff] }
 0xdf2   :  { %v878_v24 = vadd.f32 %v870_v25, %v806_v37  ;;  %v893_v37 = vpop.permute.xlu0 %892  ;;  %v5535_v25 = vld [vmem:[#allocation24_spill] sm:$0xff] }
 0xdf3   :  { %v863_v27 = vsel %vm461_vm1, %v855_v12, %v848_v56  ;;  %v856_v5 = vsel %vm461_vm1, %v854_v0, %v855_v12  ;;  %vm345_vm8 = vcmp.lt.s32.totalorder %v5534_v7, 14 }
 0xdf4   :  { %v864_v43 = vmul.f32 %v863_v27, %v5529_v4  ;;  %v915_v10 = vpop.permute.xlu1 %914  ;;  %v5247_v35 = vadd.f32 %v856_v5, %v5530_v2  ;;  %v910_v15 = vadd.f32 %v893_v37, %v878_v24  ;;  %v353_v28 = vsel %vm345_vm8, 1.0, %v5508_v22  ;;  %v5539_v27 = vld [vmem:[#allocation6_spill] sm:$0xff] }
 0xdf5   :  { %v937_v49 = vrot.slane %v915_v10, 1  ;;  %v355_v10 = vsel %vm347_vm9, 1.0, %v5508_v22  ;;  %v5544_v2 = vand.u32 15, %v5543_v55 }
 0xdf6   :  { %v872_v3 = vadd.f32 %v864_v43, %v800_v44  ;;  %v5541_v44 = vld [vmem:[#allocation19_spill] sm:$0xff]  ;;  %v5542_v43 = vld [vmem:[#allocation20_spill] sm:$0xff] }
 0xdf7   :  { %v950_v51 = vsel %vm558_vm5, %v936_v39, %v937_v49  ;;  %v949_v21 = vsel %vm558_vm5, %v937_v49, %v938_v53  ;;  %v986_v4 = vmul.f32 %v5541_v44, %v353_v28  ;;  %v875_v31 = vadd.f32 %v860_v40, %v5542_v43 }
 0xdf8   :  { %v904_v11 = vadd.f32 %v881_v19, %v872_v3  ;;  %v919_v26 = vpop.permute.xlu1 %918  ;;  %v953_v5 = vmul.f32 %v949_v21, %v5539_v27  ;;  %vm349_vm1 = vcmp.lt.s32.totalorder %v5544_v2, 14 }
 0xdf9   :  { %v939_v47 = vrot.slane %v919_v26, 1  ;;  %v5546_v26 = vld [vmem:[#allocation22_spill] sm:$0xff] }
 0xdfa   :  { %v960_v41 = vadd.f32 %v950_v51, %v904_v11 }
 0xdfb   :  { %v948_v62 = vsel %vm558_vm5, %v938_v53, %v939_v47  ;;  %v947_v34 = vsel %vm558_vm5, %v939_v47, %v940_v33  ;;  %v988_v53 = vmul.f32 %v5546_v26, %v355_v10  ;;  %v357_v47 = vsel %vm349_vm1, 1.0, %v5508_v22 }
 0xdfc   :  { %v993_v58 = vadd.f32 %v5531_v52, %v960_v41  ;;  %v962_v16 = vadd.f32 %v948_v62, %v906_v1  ;;  %v923_v45 = vpop.permute.xlu1 %922  ;;  %v955_v3 = vmul.f32 %v947_v34, %v5545_v42  ;;  %v5547_v1 = vld [vmem:[#allocation11_spill] sm:$0xff] }
 0xdfd   :  { %v941_v0 = vrot.slane %v923_v45, 1  ;;  %v5548_v9 = vand.u32 15, %v5547_v1 }
 0xdfe   :  { %v995_v23 = vadd.f32 %v5532_v30, %v962_v16  ;;  %v5549_v16 = vld [vmem:[#allocation13_spill] sm:$0xff]  ;;  %v5550_v30 = vld [vmem:[#allocation26_spill] sm:$0xff] }
 0xdff   :  { %v946_v8 = vsel %vm558_vm5, %v940_v33, %v941_v0  ;;  %v945_v11 = vsel %vm558_vm5, %v941_v0, %v942_v32  ;;  %vm351_vm10 = vcmp.lt.s32.totalorder %v5548_v9, 14 }
 0xe00   :  { %v964_v50 = vadd.f32 %v946_v8, %v908_v63  ;;  %v927_v19 = vpop.permute.xlu1 %926  ;;  %v957_v45 = vmul.f32 %v945_v11, %v5549_v16  ;;  %v990_v63 = vmul.f32 %v5550_v30, %v357_v47  ;;  %v359_v8 = vsel %vm351_vm10, 1.0, %v5508_v22 }
 0xe01   :  { %v943_v36 = vrot.slane %v927_v19, 1 }
 0xe02   :  { %v5268_v54 = vadd.f32 %v5535_v25, %v964_v50 }
 0xe03   :  { %v944_v48 = vsel %vm558_vm5, %v942_v32, %v943_v36  ;;  %v951_v33 = vsel %vm558_vm5, %v943_v36, %v936_v39  ;;  %v5552_v32 = vld [vmem:[#allocation30_spill] sm:$0xff]  ;;  %v1010_v39 = vadd.f32 %v3412_v61, %v995_v23  ;;  %v1008_v36 = vadd.f32 %v3412_v61, %v993_v58 }
 0xe04   :  { %v966_v56 = vadd.f32 %v944_v48, %v910_v15  ;;  %v883_v12 = vpop.permute.xlu1 %882  ;;  %v959_v7 = vmul.f32 %v951_v33, %v5551_v18  ;;  %v992_v37 = vmul.f32 %v5552_v32, %v359_v8  ;;  %v5337_v33 = vstv %s3365_s16  ;;  %v3340_v8 = vld [vmem:[%s5440_s0] sm:$0xff] }
 0xe05   :  { %v905_v24 = vadd.f32 %v883_v12, %v873_v60  ;;  %v1018_v22 = vmul.f32 %v1010_v39, %v1010_v39  ;;  %v1016_v48 = vmul.f32 %v1008_v36, %v1008_v36 }
 0xe06   :  { %v5286_v13 = vadd.f32 %v5540_v57, %v966_v56 }
 0xe07   :  { %v961_v38 = vadd.f32 %v953_v5, %v905_v24  ;;  %v1026_v28 = vmul.f32 %v1018_v22, %v1010_v39 }
 0xe08   :  { %v887_v6 = vpop.permute.xlu1 %886  ;;  %v5328_v9 = vadd.f32 %v3412_v61, %v5286_v13 }
 0xe09   :  { %v994_v29 = vadd.f32 %v986_v4, %v961_v38  ;;  %v907_v49 = vadd.f32 %v887_v6, %v875_v31  ;;  %v1034_v40 = vmul.f32 0.044715, %v1026_v28 }
 0xe0b   :  { %v963_v51 = vadd.f32 %v955_v3, %v907_v49  ;;  %v1009_v15 = vadd.f32 %v3412_v61, %v994_v29  ;;  %v1042_v27 = vadd.f32 %v1034_v40, %v1010_v39 }
 0xe0c   :  { %v891_v41 = vpop.permute.xlu1 %890 }
 0xe0d   :  { %v996_v62 = vadd.f32 %v988_v53, %v963_v51  ;;  %v909_v52 = vadd.f32 %v891_v41, %v5233_v14  ;;  %v1017_v60 = vmul.f32 %v1009_v15, %v1009_v15  ;;  %v1050_v23 = vmul.f32 0.7978846, %v1042_v27  ;;  %v5325_v41 = vld [vmem:[%s5451_s10] ss:$0 sm:$0xff] }
 0xe0e   :  { %v5320_v51 = vstv %s5450_s11 }
 0xe0f   :  { %v965_v0 = vadd.f32 %v957_v45, %v909_v52  ;;  %v1011_v25 = vadd.f32 %v3412_v61, %v996_v62  ;;  %v1025_v12 = vmul.f32 %v1017_v60, %v1009_v15  ;;  %4023 = vtanh.f32 %v1050_v23  ;;  %v3342_v45 = vld [vmem:[%s5440_s0 + $0x10] sm:$0xff] }
 0xe10   :  { %v895_v50 = vpop.permute.xlu1 %894  ;;  %v5332_v52 = vadd.f32 %v3412_v61, %v5268_v54 }
 0xe11   :  { %v5306_v19 = vadd.f32 %v990_v63, %v965_v0  ;;  %v911_v59 = vadd.f32 %v895_v50, %v5247_v35  ;;  %v1019_v46 = vmul.f32 %v1011_v25, %v1011_v25  ;;  %v1024_v35 = vmul.f32 %v1016_v48, %v1008_v36 }
 0xe12   :  { %v1033_v24 = vmul.f32 0.044715, %v1025_v12 }
 0xe13   :  { %v967_v14 = vadd.f32 %v959_v7, %v911_v59  ;;  %v1027_v56 = vmul.f32 %v1019_v46, %v1011_v25  ;;  %v1032_v20 = vmul.f32 0.044715, %v1024_v35  ;;  %v5348_v50 = vadd.f32 %v3412_v61, %v5306_v19  ;;  %v3343_v7 = vld [vmem:[%s5440_s0 + $0x18] sm:$0xff]  ;;  %v3341_v19 = vld [vmem:[%s5440_s0 + $0x8] sm:$0xff] }
 0xe14   :  { %v1041_v57 = vadd.f32 %v1033_v24, %v1009_v15 }
 0xe15   :  { %v1000_v21 = vadd.f32 %v992_v37, %v967_v14  ;;  %v1035_v17 = vmul.f32 0.044715, %v1027_v56  ;;  %v1040_v5 = vadd.f32 %v1032_v20, %v1008_v36  ;;  %v1022_v37 = vmul.f32 %v5328_v9, %v5328_v9 }
 0xe16   :  { %v1049_v4 = vmul.f32 0.7978846, %v1041_v57  ;;  %v1021_v35 = vmul.f32 %v5348_v50, %v5348_v50 }
 0xe17   :  { %v1043_v34 = vadd.f32 %v1035_v17, %v1011_v25  ;;  %v1048_v58 = vmul.f32 0.7978846, %v1040_v5  ;;  %v5340_v63 = vadd.f32 %v3412_v61, %v1000_v21  ;;  %v1020_v61 = vmul.f32 %v5332_v52, %v5332_v52 }
 0xe18   :  { %v1030_v20 = vmul.f32 %v1022_v37, %v5328_v9 }
 0xe19   :  { %v1051_v44 = vmul.f32 0.7978846, %v1043_v34  ;;  %4025 = vtanh.f32 %v1048_v58  ;;  %v4024_v38 = vpop.eup %4023  ;;  %v1023_v48 = vmul.f32 %v5340_v63, %v5340_v63  ;;  %v1028_v24 = vmul.f32 %v1020_v61, %v5332_v52 }
 0xe1a   :  { %v1066_v6 = vadd.f32 1.0, %v4024_v38  ;;  %v1029_v34 = vmul.f32 %v1021_v35, %v5348_v50  ;;  %v1038_v57 = vmul.f32 0.044715, %v1030_v20 }
 0xe1b   :  { %4027 = vtanh.f32 %v1051_v44  ;;  %v1031_v5 = vmul.f32 %v1023_v48, %v5340_v63  ;;  %v1036_v23 = vmul.f32 0.044715, %v1028_v24 }
 0xe1c   :  { %4029 = vtanh.f32 %v1049_v4  ;;  %v1074_v49 = vmul.f32 0.5, %v1066_v6  ;;  %v1037_v44 = vmul.f32 0.044715, %v1029_v34  ;;  %v1046_v4 = vadd.f32 %v1038_v57, %v5328_v9 }
 0xe1d   :  { %v1039_v58 = vmul.f32 0.044715, %v1031_v5  ;;  %v1044_v38 = vadd.f32 %v1036_v23, %v5332_v52 }
 0xe1e   :  { %v1082_v26 = vmul.f32 %v1074_v49, %v1010_v39 }
 0xe1f   :  { %v1052_v6 = vmul.f32 0.7978846, %v1044_v38 }
 0xe20   :  { %v3351_v62 = vmul.f32 %v5320_v51, %v1082_v26 }
 0xe22   :  { %v3359_v14 = vadd.f32 %v3351_v62, %v3342_v45 }
 0xe23   :  { %v4026_v43 = vpop.eup %4025 }
 0xe24   :  { %v1064_v55 = vadd.f32 1.0, %v4026_v43  ;;  %v1047_v43 = vadd.f32 %v1039_v58, %v5340_v63 }
 0xe25   :  { %v4028_v31 = vpop.eup %4027 }
 0xe26   :  { %v4030_v10 = vpop.eup %4029  ;;  %v1067_v2 = vadd.f32 1.0, %v4028_v31  ;;  %v1072_v42 = vmul.f32 0.5, %v1064_v55  ;;  %v1045_v31 = vadd.f32 %v1037_v44, %v5348_v50  ;;  %v1055_v55 = vmul.f32 0.7978846, %v1047_v43 }
 0xe27   :  { %v1065_v29 = vadd.f32 1.0, %v4030_v10  ;;  %v1054_v10 = vmul.f32 0.7978846, %v1046_v4 }
 0xe28   :  { %v1075_v3 = vmul.f32 0.5, %v1067_v2  ;;  %v1080_v53 = vmul.f32 %v1072_v42, %v1008_v36  ;;  %v1053_v2 = vmul.f32 0.7978846, %v1045_v31 }
 0xe29   :  { %v1073_v11 = vmul.f32 0.5, %v1065_v29  ;;  %4031 = vtanh.f32 %v1054_v10 }
 0xe2a   :  { %v1083_v47 = vmul.f32 %v1075_v3, %v1011_v25  ;;  %v3349_v30 = vmul.f32 %v5320_v51, %v1080_v53  ;;  %4033 = vtanh.f32 %v1052_v6 }
 0xe2b   :  { %v1081_v1 = vmul.f32 %v1073_v11, %v1009_v15  ;;  %4035 = vtanh.f32 %v1055_v55 }
 0xe2c   :  { %v3352_v54 = vmul.f32 %v5320_v51, %v1083_v47  ;;  %v3357_v25 = vadd.f32 %v3349_v30, %v3340_v8  ;;  %4037 = vtanh.f32 %v1053_v2 }
 0xe2d   :  { %v3350_v32 = vmul.f32 %v5320_v51, %v1081_v1 }
 0xe2e   :  { %v3360_v60 = vadd.f32 %v3352_v54, %v3343_v7 }
 0xe2f   :  { %v3358_v12 = vadd.f32 %v3350_v32, %v3341_v19 }
 0xe33   :  { %v4032_v29 = vpop.eup %4031 }
 0xe34   :  { %v4034_v49 = vpop.eup %4033  ;;  %v1070_v11 = vadd.f32 1.0, %v4032_v29 }
 0xe35   :  { %v4036_v42 = vpop.eup %4035  ;;  %v1068_v26 = vadd.f32 1.0, %v4034_v49 }
 0xe36   :  { %v4038_v3 = vpop.eup %4037  ;;  %v1071_v53 = vadd.f32 1.0, %v4036_v42  ;;  %v1078_v1 = vmul.f32 0.5, %v1070_v11 }
 0xe37   :  { %v1069_v47 = vadd.f32 1.0, %v4038_v3  ;;  %v1076_v62 = vmul.f32 0.5, %v1068_v26 }
 0xe38   :  { %v1086_v30 = vmul.f32 %v1078_v1, %v5328_v9  ;;  %v3344_v9 = vld [vmem:[%s5440_s0 + $0x20] sm:$0xff] }
 0xe39   :  { %v1077_v45 = vmul.f32 0.5, %v1069_v47 }
 0xe3a   :  { %v3355_v54 = vmul.f32 %v5320_v51, %v1086_v30 }
 0xe3b   :  { %v1085_v8 = vmul.f32 %v1077_v45, %v5348_v50 }
 0xe88   :  { %v3763_v16 = vpop.f32.mrb[76].mxu0 }
 0xe89   :  { %v3317_v0 = vadd.f32 %v3763_v16, %v5325_v41  ;;  %v3308_v13 = vpop.f32.mrb[77].mxu0  ;;  %v1079_v16 = vmul.f32 0.5, %v1071_v53 }
 0xe8a   :  { %v3309_v59 = vadd.f32 %v5325_v41, %v3308_v13  ;;  %v3764_v18 = vpop.f32.mrb[78].mxu0 }
 0xe8b   :  { %v3369_v21 = vmul.f32 %v5337_v33, %v3317_v0  ;;  %v3320_v39 = vadd.f32 %v3764_v18, %v5325_v41  ;;  %v3311_v36 = vpop.f32.mrb[79].mxu0  ;;  %v1084_v0 = vmul.f32 %v1076_v62, %v5332_v52  ;;  %v1087_v13 = vmul.f32 %v1079_v16, %v5340_v63  ;;  %v3346_v18 = vld [vmem:[%s5440_s0 + $0x30] sm:$0xff] }
 0xe8c   :  { %v3367_v15 = vmul.f32 %v5337_v33, %v3309_v59  ;;  %v3312_v22 = vadd.f32 %v5325_v41, %v3311_v36 }
 0xe8d   :  { %v3377_v46 = vadd.f32 %v3369_v21, %v3359_v14  ;;  %v3370_v28 = vmul.f32 %v5337_v33, %v3320_v39  ;;  %v3353_v7 = vmul.f32 %v5320_v51, %v1084_v0  ;;  %v3356_v52 = vmul.f32 %v5320_v51, %v1087_v13  ;;  %v3347_v14 = vld [vmem:[%s5440_s0 + $0x38] sm:$0xff] }
 0xe8e   :  { %v3375_v56 = vadd.f32 %v3367_v15, %v3357_v25  ;;  %v3368_v40 = vmul.f32 %v5337_v33, %v3312_v22  ;;  %v3354_v21 = vmul.f32 %v5320_v51, %v1085_v8  ;;  %v3363_v39 = vadd.f32 %v3355_v54, %v3346_v18  ;;  %v3345_v25 = vld [vmem:[%s5440_s0 + $0x28] sm:$0xff] }
 0xe8f   :  { %3385 = vst.msk [vmem:[%s5452_s12 + $0x10] sm:$0xff] %vm51_vm0, %v3377_v46  ;;  %v3378_v17 = vadd.f32 %v3370_v28, %v3360_v60  ;;  %v3361_v15 = vadd.f32 %v3353_v7, %v3344_v9  ;;  %v3364_v60 = vadd.f32 %v3356_v52, %v3347_v14 }
 0xe90   :  { %3383 = vst.msk [vmem:[%s5452_s12] sm:$0xff] %vm51_vm0, %v3375_v56  ;;  %v3376_v27 = vadd.f32 %v3368_v40, %v3358_v12  ;;  %v3362_v35 = vadd.f32 %v3354_v21, %v3345_v25 }
 0xe91   :  { %3386 = vst.msk [vmem:[%s5452_s12 + $0x18] sm:$0xff] %vm51_vm0, %v3378_v17 }
 0xe92   :  { %3384 = vst.msk [vmem:[%s5452_s12 + $0x8] sm:$0xff] %vm51_vm0, %v3376_v27 }
 0xeb9   :  { %v3767_v59 = vpop.f32.mrb[80].mxu0 }
 0xeba   :  { %v3333_v32 = vadd.f32 %v3767_v59, %v5325_v41  ;;  %v3324_v37 = vpop.f32.mrb[81].mxu0 }
 0xebb   :  { %v3325_v63 = vadd.f32 %v5325_v41, %v3324_v37  ;;  %v3768_v50 = vpop.f32.mrb[82].mxu0 }
 0xebc   :  { %v3373_v36 = vmul.f32 %v5337_v33, %v3333_v32  ;;  %v3336_v19 = vadd.f32 %v3768_v50, %v5325_v41  ;;  %v3327_v61 = vpop.f32.mrb[83].mxu0 }
 0xebd   :  { %v3371_v22 = vmul.f32 %v5337_v33, %v3325_v63  ;;  %v3328_v48 = vadd.f32 %v5325_v41, %v3327_v61 }
 0xebe   :  { %v3381_v46 = vadd.f32 %v3373_v36, %v3363_v39  ;;  %v3374_v28 = vmul.f32 %v5337_v33, %v3336_v19 }
 0xebf   :  { %v3379_v51 = vadd.f32 %v3371_v22, %v3361_v15  ;;  %v3372_v56 = vmul.f32 %v5337_v33, %v3328_v48 }
 0xec0   :  { %3389 = vst.msk [vmem:[%s5452_s12 + $0x30] sm:$0xff] %vm51_vm0, %v3381_v46  ;;  %v3382_v12 = vadd.f32 %v3374_v28, %v3364_v60 }
 0xec1   :  { %3387 = vst.msk [vmem:[%s5452_s12 + $0x20] sm:$0xff] %vm51_vm0, %v3379_v51  ;;  %v3380_v41 = vadd.f32 %v3372_v56, %v3362_v35 }
 0xec2   :  { %3390 = vst.msk [vmem:[%s5452_s12 + $0x38] sm:$0xff] %vm51_vm0, %v3382_v12 }
 0xec3   :  { %3388 = vst.msk [vmem:[%s5452_s12 + $0x28] sm:$0xff] %vm51_vm0, %v3380_v41 }

</bundles_post_ra>
